<compile_context>
chip_gen: v5e
topology: v5e:2x2
jax: 0.10.0
libtpu: 0.0.40
codegen_flags: <defaults>
</compile_context>

<pallas_src>
import jax
import jax.numpy as jnp
from jax.experimental import pallas as pl
from jax.experimental.pallas import tpu as pltpu


# ------------------------- fused bidirectional LSTM layer kernel -------------------------
def _bidir_lstm_layer_kernel(ff_f, fb_f, pf_f, pb_f,          # fwd-order chunk: feed/pre parts
                             ff_b, fb_b, pf_b, pb_b,          # bwd-order chunk: feed/pre parts
                             wih_ref, whh_ref, bias_ref,      # weights (all directions)
                             out_f, out_b,                    # per-direction hidden sequences
                             gxf, gxb, hf, cf, hb, cb):       # scratch
    """One time-chunk of a bidirectional LSTM layer; grid=(num_chunks,) is sequential."""
    B, H = hf.shape
    Tc = out_f.shape[0]
    Hp = ff_f.shape[-1]

    @pl.when(pl.program_id(0) == 0)
    def _init():
        hf[...] = jnp.zeros_like(hf)
        cf[...] = jnp.zeros_like(cf)
        hb[...] = jnp.zeros_like(hb)
        cb[...] = jnp.zeros_like(cb)

    # Hoisted input projection for this chunk (both directions), fused residual add.
    x0f = (ff_f[...] + pf_f[...]).reshape(Tc * B, Hp)
    x1f = (fb_f[...] + pb_f[...]).reshape(Tc * B, Hp)
    gxf[...] = (jnp.dot(x0f, wih_ref[0], preferred_element_type=jnp.float32)
                + jnp.dot(x1f, wih_ref[1], preferred_element_type=jnp.float32)
                + bias_ref[0]).reshape(Tc, B, 4 * H)
    x0b = (ff_b[...] + pf_b[...]).reshape(Tc * B, Hp)
    x1b = (fb_b[...] + pb_b[...]).reshape(Tc * B, Hp)
    gxb[...] = (jnp.dot(x0b, wih_ref[2], preferred_element_type=jnp.float32)
                + jnp.dot(x1b, wih_ref[3], preferred_element_type=jnp.float32)
                + bias_ref[1]).reshape(Tc, B, 4 * H)

    whh_f = whh_ref[0]                    # (H, 4H), resident across the recurrence
    whh_b = whh_ref[1]
    cdt = whh_f.dtype

    def gates(g):
        # gate columns were permuted to [i, f, o, g] at init:
        # one sigmoid over 3H lanes + one tanh over H lanes per chain per step.
        sg = jax.nn.sigmoid(g[:, :3 * H])
        ng = jnp.tanh(g[:, 3 * H:])
        return sg[:, :H], sg[:, H:2 * H], sg[:, 2 * H:3 * H], ng

    def step(s, carry):
        # Two independent recurrence chains per step (fwd & bwd) so the scheduler can overlap
        # their MXU pushes/pops and EUP calls — key win on single-TC v5e/v6e.
        sb = Tc - 1 - s
        g_f = gxf[s] + jnp.dot(hf[...].astype(cdt), whh_f,
                               preferred_element_type=jnp.float32)
        g_b = gxb[sb] + jnp.dot(hb[...].astype(cdt), whh_b,
                                preferred_element_type=jnp.float32)
        i_f, f_f, o_f, n_f = gates(g_f)
        i_b, f_b, o_b, n_b = gates(g_b)
        c_f = f_f * cf[...] + i_f * n_f
        c_b = f_b * cb[...] + i_b * n_b
        h_f = o_f * jnp.tanh(c_f)
        h_b = o_b * jnp.tanh(c_b)
        cf[...] = c_f
        hf[...] = h_f
        cb[...] = c_b
        hb[...] = h_b
        out_f[s] = h_f.astype(out_f.dtype)
        out_b[sb] = h_b.astype(out_b.dtype)
        return carry

    # Bounded partial unroll: full unroll only for tiny chunks.
    unroll = Tc if Tc <= 8 else (8 if Tc % 8 == 0 else (4 if Tc % 4 == 0 else
                                 (2 if Tc % 2 == 0 else 1)))
    jax.lax.fori_loop(0, Tc, step, 0, unroll=unroll)


def _pick_time_chunk(T, B, Hp, H, act_bytes, budget=8 * 1024 * 1024):
    """Largest divisor of T whose chunk-scaled VMEM (double-buffered acts + f32 gx) fits budget."""
    per_t = B * (2 * (8 * Hp + 2 * H) * act_bytes + 2 * 4 * H * 4)
    best = 1
    for d in range(1, T + 1):
        if T % d == 0 and d * per_t <= budget:
            best = d
    return best


def bidirectional_lstm_layer(feed_f, feed_b, pre_f, pre_b, lp):
    """feed/pre parts: (T, B, Hp).  Returns (out_f, out_b), each (T, B, H)."""
    T, B, Hp = feed_f.shape
    H = lp["w_hh"].shape[1]
    act_bytes = feed_f.dtype.itemsize
    Tc = _pick_time_chunk(T, B, Hp, H, act_bytes)
    nC = T // Tc

    # explicit scoped-VMEM limit sized from the actual blocks (defaults are 16/32 MiB).
    blk_in = Tc * B * Hp * act_bytes
    blk_out = Tc * B * H * act_bytes
    w_bytes = (4 * Hp + 2 * H) * 4 * H * act_bytes + 2 * 4 * H * 4
    scr_bytes = 2 * Tc * B * 4 * H * 4 + 4 * B * H * 4
    est = 2 * (8 * blk_in + 2 * blk_out + w_bytes) + scr_bytes
    vmem_limit = int(min(max(2 * est, 32 * 1024 * 1024), 64 * 1024 * 1024))

    fwd = lambda c: (c, 0, 0)              # fwd chain consumes chunk c
    bwd = lambda c: (nC - 1 - c, 0, 0)     # bwd chain consumes chunks in reverse
    act_spec_f = pl.BlockSpec((Tc, B, Hp), fwd)
    act_spec_b = pl.BlockSpec((Tc, B, Hp), bwd)

    out_f, out_b = pl.pallas_call(
        _bidir_lstm_layer_kernel,
        out_shape=(jax.ShapeDtypeStruct((T, B, H), feed_f.dtype),
                   jax.ShapeDtypeStruct((T, B, H), feed_f.dtype)),
        grid_spec=pltpu.PrefetchScalarGridSpec(
            num_scalar_prefetch=0,
            grid=(nC,),                                            # time-chunk axis
            in_specs=[
                act_spec_f, act_spec_f, act_spec_f, act_spec_f,    # feed_f/feed_b/pre_f/pre_b (fwd order)
                act_spec_b, act_spec_b, act_spec_b, act_spec_b,    # same arrays, bwd chunk order
                pl.BlockSpec((4, Hp, 4 * H), lambda c: (0, 0, 0)),  # W_ih [fwd p0, fwd p1, bwd p0, bwd p1]
                pl.BlockSpec((2, H, 4 * H), lambda c: (0, 0, 0)),   # W_hh [fwd, bwd]
                pl.BlockSpec((2, 1, 4 * H), lambda c: (0, 0, 0)),   # bias [fwd, bwd] (b_ih + b_hh)
            ],
            out_specs=[pl.BlockSpec((Tc, B, H), fwd),
                       pl.BlockSpec((Tc, B, H), bwd)],
            scratch_shapes=[
                pltpu.VMEM((Tc, B, 4 * H), jnp.float32),   # fwd input-gate preactivations (chunk)
                pltpu.VMEM((Tc, B, 4 * H), jnp.float32),   # bwd input-gate preactivations (chunk)
                pltpu.VMEM((B, H), jnp.float32),           # h fwd
                pltpu.VMEM((B, H), jnp.float32),           # c fwd
                pltpu.VMEM((B, H), jnp.float32),           # h bwd
                pltpu.VMEM((B, H), jnp.float32),           # c bwd
            ],
        ),
        compiler_params=pltpu.CompilerParams(
            # h/c carry across time-chunks -> sequential axis.
            # TODO(synk): on v7x, split the two directions across the 2 TensorCores
            # (pl.core_map over create_tensorcore_mesh / CORE_PARALLEL) instead of fusing them.
            dimension_semantics=("arbitrary",),
            vmem_limit_bytes=vmem_limit,
        ),
    )(feed_f, feed_b, pre_f, pre_b, feed_f, feed_b, pre_f, pre_b,
      lp["w_ih"], lp["w_hh"], lp["b"])
    return out_f, out_b


# ------------------------------- embedding Linear kernel --------------------------------
def _emb_linear_kernel(hf_ref, hb_ref, wf_ref, wb_ref, b_ref, o_ref):
    o_ref[...] = (jnp.dot(hf_ref[...], wf_ref[...], preferred_element_type=jnp.float32)
                  + jnp.dot(hb_ref[...], wb_ref[...], preferred_element_type=jnp.float32)
                  + b_ref[...]).astype(o_ref.dtype)


def embedding_linear(h_f, h_b, w_f, w_b, b_pad, n_out):
    """h_f/h_b: (M, H); w_f/w_b: (H, Npad); b_pad: (1, Npad) -> (M, n_out) f32."""
    M, H = h_f.shape
    Np = w_f.shape[-1]
    if M >= 128:
        tm = 128
        Mp = pl.cdiv(M, tm) * tm
        if Mp != M:                                      # pad rows -> fixed 128-row tiles
            h_f = jnp.pad(h_f, ((0, Mp - M), (0, 0)))
            h_b = jnp.pad(h_b, ((0, Mp - M), (0, 0)))
    else:
        tm, Mp = M, M                                    # tiny case: one full block
    out = pl.pallas_call(
        _emb_linear_kernel,
        out_shape=jax.ShapeDtypeStruct((Mp, Np), jnp.float32),
        grid_spec=pltpu.PrefetchScalarGridSpec(
            num_scalar_prefetch=0,
            grid=(Mp // tm,),
            in_specs=[
                pl.BlockSpec((tm, H), lambda i: (i, 0)),
                pl.BlockSpec((tm, H), lambda i: (i, 0)),
                pl.BlockSpec((H, Np), lambda i: (0, 0)),
                pl.BlockSpec((H, Np), lambda i: (0, 0)),
                pl.BlockSpec((1, Np), lambda i: (0, 0)),
            ],
            out_specs=pl.BlockSpec((tm, Np), lambda i: (i, 0)),   # lane-dense: Np % 128 == 0
        ),
        compiler_params=pltpu.CompilerParams(dimension_semantics=("parallel",)),
    )(h_f, h_b, w_f, w_b, b_pad)
    return out[:M, :n_out]


# -------------------------------------- model glue --------------------------------------
def bidirectional_res_lstm_forward(x, params):
    """Mirrors BidirectionalResLSTM.forward (dropout p=0 / eval => identity)."""
    T, B, D = x.shape
    assert D % 2 == 0, "feature dim must be even (it is 2*rnn_size in this module)"
    Hp = D // 2
    cdt = params["compute_dtype"]

    # Split activations once into (T, B, D/2) halves; all layers produce/consume this split
    # layout so the per-layer concat/flip of a bidirectional output never hits HBM.
    feed_f = x[:, :, :Hp].astype(cdt)
    feed_b = x[:, :, Hp:].astype(cdt)
    pre_f = jnp.zeros_like(feed_f)
    pre_b = jnp.zeros_like(feed_b)

    for lp in params["layers"]:
        out_f, out_b = bidirectional_lstm_layer(feed_f, feed_b, pre_f, pre_b, lp)
        pre_f, pre_b = feed_f, feed_b      # residual: next layer input = this output + this input
        feed_f, feed_b = out_f, out_b
        # TODO(synk): nn.Dropout between layers is identity here (p=0.0 / eval mode).

    # PyTorch feeds the LAST layer output (no residual) to the embedding Linear.
    M = T * B
    H = feed_f.shape[-1]
    out = embedding_linear(feed_f.reshape(M, H), feed_b.reshape(M, H),
                           params["emb_w_f"], params["emb_w_b"],
                           params["emb_b"], params["n_out"])
    return out.reshape(T, B, -1)


# ---------------------------------- deterministic init ----------------------------------
def init_params(key, num_layers, input_size, rnn_size, n_out,
                weight_dtype=jnp.bfloat16, compute_dtype=jnp.bfloat16):
    assert input_size % 2 == 0
    if num_layers > 1:
        assert input_size == 2 * rnn_size, "residual stacking requires input_size == 2*rnn_size"
    H = rnn_size
    Hp = input_size // 2
    k = float(rnn_size) ** -0.5

    def reorder(w):
        # PyTorch gate order [i, f, g, o] -> kernel order [i, f, o, g] (sigmoid gates contiguous).
        i_, f_, g_, o_ = jnp.split(w, 4, axis=-1)
        return jnp.concatenate([i_, f_, o_, g_], axis=-1)

    layers = []
    for _ in range(num_layers):
        wih_parts, whh_dirs, b_dirs = [], [], []
        for _d in range(2):                # 0 = forward, 1 = backward
            key, k1, k2, k3, k4 = jax.random.split(key, 5)
            w_ih = jax.random.uniform(k1, (input_size, 4 * H), jnp.float32, -k, k)
            w_hh = jax.random.uniform(k2, (H, 4 * H), jnp.float32, -k, k)
            b_ih = jax.random.uniform(k3, (1, 4 * H), jnp.float32, -k, k)
            b_hh = jax.random.uniform(k4, (1, 4 * H), jnp.float32, -k, k)
            w_ih, w_hh, bias = reorder(w_ih), reorder(w_hh), reorder(b_ih + b_hh)
            wih_parts.append(w_ih[:Hp])    # rows multiplying the first feature half
            wih_parts.append(w_ih[Hp:])    # rows multiplying the second feature half
            whh_dirs.append(w_hh)
            b_dirs.append(bias)
        layers.append({
            "w_ih": jnp.stack(wih_parts, 0).astype(weight_dtype),   # (4, Hp, 4H)
            "w_hh": jnp.stack(whh_dirs, 0).astype(weight_dtype),    # (2, H, 4H)
            "b":    jnp.stack(b_dirs, 0),                            # (2, 1, 4H) f32
        })

    key, k5, k6 = jax.random.split(key, 3)
    ke = float(2 * H) ** -0.5
    emb_w = jax.random.uniform(k5, (2 * H, n_out), jnp.float32, -ke, ke)
    emb_b = jax.random.uniform(k6, (1, n_out), jnp.float32, -ke, ke)
    n_pad = ((n_out + 127) // 128) * 128             # lane-dense output for the final GEMM
    emb_w = jnp.pad(emb_w, ((0, 0), (0, n_pad - n_out)))
    emb_b = jnp.pad(emb_b, ((0, 0), (0, n_pad - n_out)))
    return {
        "layers": layers,
        "emb_w_f": emb_w[:H].astype(weight_dtype),   # (H, Npad) for fwd half
        "emb_w_b": emb_w[H:].astype(weight_dtype),   # (H, Npad) for bwd half
        "emb_b": emb_b,                               # (1, Npad) f32
        "n_out": n_out,
        "compute_dtype": compute_dtype,
    }, key


# --------------------------- pure-JAX reference (same cast points) ---------------------------
def _ref_bidir_layer(x0, x1, lp):
    T, B, Hp = x0.shape
    H = lp["w_hh"].shape[1]
    outs = []
    for d in range(2):
        gx = (jnp.dot(x0.reshape(T * B, Hp), lp["w_ih"][2 * d], preferred_element_type=jnp.float32)
              + jnp.dot(x1.reshape(T * B, Hp), lp["w_ih"][2 * d + 1], preferred_element_type=jnp.float32)
              ).reshape(T, B, 4 * H) + lp["b"][d]
        w = lp["w_hh"][d]
        h = jnp.zeros((B, H), jnp.float32)
        c = jnp.zeros((B, H), jnp.float32)
        hs = [None] * T
        order = range(T) if d == 0 else range(T - 1, -1, -1)
        for t in order:
            g = gx[t] + jnp.dot(h.astype(w.dtype), w, preferred_element_type=jnp.float32)
            i_g = jax.nn.sigmoid(g[:, :H])
            f_g = jax.nn.sigmoid(g[:, H:2 * H])
            o_g = jax.nn.sigmoid(g[:, 2 * H:3 * H])
            n_g = jnp.tanh(g[:, 3 * H:])
            c = f_g * c + i_g * n_g
            h = o_g * jnp.tanh(c)
            hs[t] = h
        outs.append(jnp.stack(hs, 0))
    return outs[0], outs[1]


def ref_forward(x, params):
    T, B, D = x.shape
    Hp = D // 2
    cdt = params["compute_dtype"]
    feed_f = x[:, :, :Hp].astype(cdt)
    feed_b = x[:, :, Hp:].astype(cdt)
    pre_f = jnp.zeros_like(feed_f)
    pre_b = jnp.zeros_like(feed_b)
    for lp in params["layers"]:
        h_f, h_b = _ref_bidir_layer(feed_f + pre_f, feed_b + pre_b, lp)
        pre_f, pre_b = feed_f, feed_b
        feed_f, feed_b = h_f.astype(cdt), h_b.astype(cdt)
    M = T * B
    H = feed_f.shape[-1]
    out = (jnp.dot(feed_f.reshape(M, H), params["emb_w_f"], preferred_element_type=jnp.float32)
           + jnp.dot(feed_b.reshape(M, H), params["emb_w_b"], preferred_element_type=jnp.float32)
           + params["emb_b"])[:, :params["n_out"]]
    return out.reshape(T, B, -1)


# -------------------------------------------- main --------------------------------------------
if __name__ == "__main__":
    T, B = 8, 2
    NUM_LAYERS = 2
    RNN_SIZE = 32
    INPUT_SIZE = 2 * RNN_SIZE   # required for the cross-layer residual add (as in the PyTorch module)
    N_OUT = 16

    key = jax.random.PRNGKey(0)
    params, key = init_params(key, NUM_LAYERS, INPUT_SIZE, RNN_SIZE, N_OUT)
    key, xk = jax.random.split(key)
    x = jax.random.normal(xk, (T, B, INPUT_SIZE), dtype=jnp.float32)

    out = jax.block_until_ready(bidirectional_res_lstm_forward(x, params))
    assert out.shape == (T, B, N_OUT), out.shape
    assert bool(jnp.all(jnp.isfinite(out)))

    ref = jax.block_until_ready(ref_forward(x, params))
    err = float(jnp.max(jnp.abs(out - ref)))
    assert err < 5e-2, f"max abs err vs reference: {err}"

    print("KERNEL_OK")
</pallas_src>

<mosaic_0001>
module attributes {stable_mosaic.version = 11 : i64} {
  func.func @_bidir_lstm_layer_kernel(%arg0: i32, %arg1: memref<8x2x32xbf16, #tpu.memory_space<vmem>>, %arg2: memref<8x2x32xbf16, #tpu.memory_space<vmem>>, %arg3: memref<8x2x32xbf16, #tpu.memory_space<vmem>>, %arg4: memref<8x2x32xbf16, #tpu.memory_space<vmem>>, %arg5: memref<8x2x32xbf16, #tpu.memory_space<vmem>>, %arg6: memref<8x2x32xbf16, #tpu.memory_space<vmem>>, %arg7: memref<8x2x32xbf16, #tpu.memory_space<vmem>>, %arg8: memref<8x2x32xbf16, #tpu.memory_space<vmem>>, %arg9: memref<4x32x128xbf16, #tpu.memory_space<vmem>>, %arg10: memref<2x32x128xbf16, #tpu.memory_space<vmem>>, %arg11: memref<2x1x128xf32, #tpu.memory_space<vmem>>, %arg12: memref<8x2x32xbf16, #tpu.memory_space<vmem>>, %arg13: memref<8x2x32xbf16, #tpu.memory_space<vmem>>, %arg14: memref<8x2x128xf32, #tpu.memory_space<vmem>>, %arg15: memref<8x2x128xf32, #tpu.memory_space<vmem>>, %arg16: memref<2x32xf32, #tpu.memory_space<vmem>>, %arg17: memref<2x32xf32, #tpu.memory_space<vmem>>, %arg18: memref<2x32xf32, #tpu.memory_space<vmem>>, %arg19: memref<2x32xf32, #tpu.memory_space<vmem>>) attributes {dimension_semantics = [#tpu.dimension_semantics<arbitrary>], iteration_bounds = array<i64: 1>, scalar_prefetch = 0 : i64, scratch_operands = 6 : i64, tpu.core_type = #tpu.core_type<tc>, window_params = [{transform_indices = @transform_0, window_bounds = array<i64: 8, 2, 32>}, {transform_indices = @transform_1, window_bounds = array<i64: 8, 2, 32>}, {transform_indices = @transform_2, window_bounds = array<i64: 8, 2, 32>}, {transform_indices = @transform_3, window_bounds = array<i64: 8, 2, 32>}, {transform_indices = @transform_4, window_bounds = array<i64: 8, 2, 32>}, {transform_indices = @transform_5, window_bounds = array<i64: 8, 2, 32>}, {transform_indices = @transform_6, window_bounds = array<i64: 8, 2, 32>}, {transform_indices = @transform_7, window_bounds = array<i64: 8, 2, 32>}, {pipeline_mode = #tpu.pipeline_mode<synchronous>, transform_indices = @transform_8, window_bounds = array<i64: 4, 32, 128>}, {pipeline_mode = #tpu.pipeline_mode<synchronous>, transform_indices = @transform_9, window_bounds = array<i64: 2, 32, 128>}, {pipeline_mode = #tpu.pipeline_mode<synchronous>, transform_indices = @transform_10, window_bounds = array<i64: 2, 1, 128>}, {transform_indices = @transform_11, window_bounds = array<i64: 8, 2, 32>}, {transform_indices = @transform_12, window_bounds = array<i64: 8, 2, 32>}]} {
    %c0_i32 = arith.constant 0 : i32
    %0 = arith.cmpi eq, %arg0, %c0_i32 : i32
    %1 = arith.extui %0 : i1 to i32
    %c0_i32_0 = arith.constant 0 : i32
    %2 = arith.cmpi ne, %1, %c0_i32_0 : i32
    scf.if %2 {
      %cst_287 = arith.constant 0.000000e+00 : f32
      %553 = vector.broadcast %cst_287 : f32 to vector<2x32xf32>
      %c0_288 = arith.constant 0 : index
      %c0_289 = arith.constant 0 : index
      %554 = vector.load %arg16[%c0_288, %c0_289] : memref<2x32xf32, #tpu.memory_space<vmem>>, vector<2x32xf32>
      tpu.vector_store %arg16[%c0_288, %c0_289], %553 {strides = array<i32>} : memref<2x32xf32, #tpu.memory_space<vmem>>, vector<2x32xf32>,
      %cst_290 = arith.constant 0.000000e+00 : f32
      %555 = vector.broadcast %cst_290 : f32 to vector<2x32xf32>
      %c0_291 = arith.constant 0 : index
      %c0_292 = arith.constant 0 : index
      %556 = vector.load %arg17[%c0_291, %c0_292] : memref<2x32xf32, #tpu.memory_space<vmem>>, vector<2x32xf32>
      tpu.vector_store %arg17[%c0_291, %c0_292], %555 {strides = array<i32>} : memref<2x32xf32, #tpu.memory_space<vmem>>, vector<2x32xf32>,
      %cst_293 = arith.constant 0.000000e+00 : f32
      %557 = vector.broadcast %cst_293 : f32 to vector<2x32xf32>
      %c0_294 = arith.constant 0 : index
      %c0_295 = arith.constant 0 : index
      %558 = vector.load %arg18[%c0_294, %c0_295] : memref<2x32xf32, #tpu.memory_space<vmem>>, vector<2x32xf32>
      tpu.vector_store %arg18[%c0_294, %c0_295], %557 {strides = array<i32>} : memref<2x32xf32, #tpu.memory_space<vmem>>, vector<2x32xf32>,
      %cst_296 = arith.constant 0.000000e+00 : f32
      %559 = vector.broadcast %cst_296 : f32 to vector<2x32xf32>
      %c0_297 = arith.constant 0 : index
      %c0_298 = arith.constant 0 : index
      %560 = vector.load %arg19[%c0_297, %c0_298] : memref<2x32xf32, #tpu.memory_space<vmem>>, vector<2x32xf32>
      tpu.vector_store %arg19[%c0_297, %c0_298], %559 {strides = array<i32>} : memref<2x32xf32, #tpu.memory_space<vmem>>, vector<2x32xf32>,
    } else {
    }
    %c0 = arith.constant 0 : index
    %c0_1 = arith.constant 0 : index
    %c0_2 = arith.constant 0 : index
    %3 = vector.load %arg1[%c0, %c0_1, %c0_2] : memref<8x2x32xbf16, #tpu.memory_space<vmem>>, vector<8x2x32xbf16>
    %c0_3 = arith.constant 0 : index
    %c0_4 = arith.constant 0 : index
    %c0_5 = arith.constant 0 : index
    %4 = vector.load %arg3[%c0_3, %c0_4, %c0_5] : memref<8x2x32xbf16, #tpu.memory_space<vmem>>, vector<8x2x32xbf16>
    %5 = arith.addf %3, %4 : vector<8x2x32xbf16>
    %6 = vector.shape_cast %5 : vector<8x2x32xbf16> to vector<16x32xbf16>
    %c0_6 = arith.constant 0 : index
    %c0_7 = arith.constant 0 : index
    %c0_8 = arith.constant 0 : index
    %7 = vector.load %arg2[%c0_6, %c0_7, %c0_8] : memref<8x2x32xbf16, #tpu.memory_space<vmem>>, vector<8x2x32xbf16>
    %c0_9 = arith.constant 0 : index
    %c0_10 = arith.constant 0 : index
    %c0_11 = arith.constant 0 : index
    %8 = vector.load %arg4[%c0_9, %c0_10, %c0_11] : memref<8x2x32xbf16, #tpu.memory_space<vmem>>, vector<8x2x32xbf16>
    %9 = arith.addf %7, %8 : vector<8x2x32xbf16>
    %10 = vector.shape_cast %9 : vector<8x2x32xbf16> to vector<16x32xbf16>
    %c0_12 = arith.constant 0 : index
    %c0_13 = arith.constant 0 : index
    %c0_14 = arith.constant 0 : index
    %11 = vector.load %arg9[%c0_12, %c0_13, %c0_14] : memref<4x32x128xbf16, #tpu.memory_space<vmem>>, vector<1x32x128xbf16>
    %12 = vector.shape_cast %11 : vector<1x32x128xbf16> to vector<32x128xbf16>
    %cst = arith.constant dense<0.000000e+00> : vector<16x128xf32>
    %13 = tpu.matmul %6, %12, %cst {dimension_numbers = #tpu.dot_dimension_numbers<[1], [0], [0], [1], [0, 0, 1, 1], [], []>} : vector<16x32xbf16>, vector<32x128xbf16>, vector<16x128xf32> -> vector<16x128xf32>
    %c1 = arith.constant 1 : index
    %c0_15 = arith.constant 0 : index
    %c0_16 = arith.constant 0 : index
    %14 = vector.load %arg9[%c1, %c0_15, %c0_16] : memref<4x32x128xbf16, #tpu.memory_space<vmem>>, vector<1x32x128xbf16>
    %15 = vector.shape_cast %14 : vector<1x32x128xbf16> to vector<32x128xbf16>
    %cst_17 = arith.constant dense<0.000000e+00> : vector<16x128xf32>
    %16 = tpu.matmul %10, %15, %cst_17 {dimension_numbers = #tpu.dot_dimension_numbers<[1], [0], [0], [1], [0, 0, 1, 1], [], []>} : vector<16x32xbf16>, vector<32x128xbf16>, vector<16x128xf32> -> vector<16x128xf32>
    %17 = arith.addf %13, %16 : vector<16x128xf32>
    %c0_18 = arith.constant 0 : index
    %c0_19 = arith.constant 0 : index
    %c0_20 = arith.constant 0 : index
    %18 = vector.load %arg11[%c0_18, %c0_19, %c0_20] : memref<2x1x128xf32, #tpu.memory_space<vmem>>, vector<1x1x128xf32>
    %19 = vector.shape_cast %18 : vector<1x1x128xf32> to vector<1x128xf32>
    %20 = vector.broadcast %19 : vector<1x128xf32> to vector<16x128xf32>
    %21 = arith.addf %17, %20 : vector<16x128xf32>
    %22 = vector.shape_cast %21 : vector<16x128xf32> to vector<8x2x128xf32>
    %c0_21 = arith.constant 0 : index
    %c0_22 = arith.constant 0 : index
    %c0_23 = arith.constant 0 : index
    %23 = vector.load %arg14[%c0_21, %c0_22, %c0_23] : memref<8x2x128xf32, #tpu.memory_space<vmem>>, vector<8x2x128xf32>
    tpu.vector_store %arg14[%c0_21, %c0_22, %c0_23], %22 {strides = array<i32>} : memref<8x2x128xf32, #tpu.memory_space<vmem>>, vector<8x2x128xf32>,
    %c0_24 = arith.constant 0 : index
    %c0_25 = arith.constant 0 : index
    %c0_26 = arith.constant 0 : index
    %24 = vector.load %arg5[%c0_24, %c0_25, %c0_26] : memref<8x2x32xbf16, #tpu.memory_space<vmem>>, vector<8x2x32xbf16>
    %c0_27 = arith.constant 0 : index
    %c0_28 = arith.constant 0 : index
    %c0_29 = arith.constant 0 : index
    %25 = vector.load %arg7[%c0_27, %c0_28, %c0_29] : memref<8x2x32xbf16, #tpu.memory_space<vmem>>, vector<8x2x32xbf16>
    %26 = arith.addf %24, %25 : vector<8x2x32xbf16>
    %27 = vector.shape_cast %26 : vector<8x2x32xbf16> to vector<16x32xbf16>
    %c0_30 = arith.constant 0 : index
    %c0_31 = arith.constant 0 : index
    %c0_32 = arith.constant 0 : index
    %28 = vector.load %arg6[%c0_30, %c0_31, %c0_32] : memref<8x2x32xbf16, #tpu.memory_space<vmem>>, vector<8x2x32xbf16>
    %c0_33 = arith.constant 0 : index
    %c0_34 = arith.constant 0 : index
    %c0_35 = arith.constant 0 : index
    %29 = vector.load %arg8[%c0_33, %c0_34, %c0_35] : memref<8x2x32xbf16, #tpu.memory_space<vmem>>, vector<8x2x32xbf16>
    %30 = arith.addf %28, %29 : vector<8x2x32xbf16>
    %31 = vector.shape_cast %30 : vector<8x2x32xbf16> to vector<16x32xbf16>
    %c2 = arith.constant 2 : index
    %c0_36 = arith.constant 0 : index
    %c0_37 = arith.constant 0 : index
    %32 = vector.load %arg9[%c2, %c0_36, %c0_37] : memref<4x32x128xbf16, #tpu.memory_space<vmem>>, vector<1x32x128xbf16>
    %33 = vector.shape_cast %32 : vector<1x32x128xbf16> to vector<32x128xbf16>
    %cst_38 = arith.constant dense<0.000000e+00> : vector<16x128xf32>
    %34 = tpu.matmul %27, %33, %cst_38 {dimension_numbers = #tpu.dot_dimension_numbers<[1], [0], [0], [1], [0, 0, 1, 1], [], []>} : vector<16x32xbf16>, vector<32x128xbf16>, vector<16x128xf32> -> vector<16x128xf32>
    %c3 = arith.constant 3 : index
    %c0_39 = arith.constant 0 : index
    %c0_40 = arith.constant 0 : index
    %35 = vector.load %arg9[%c3, %c0_39, %c0_40] : memref<4x32x128xbf16, #tpu.memory_space<vmem>>, vector<1x32x128xbf16>
    %36 = vector.shape_cast %35 : vector<1x32x128xbf16> to vector<32x128xbf16>
    %cst_41 = arith.constant dense<0.000000e+00> : vector<16x128xf32>
    %37 = tpu.matmul %31, %36, %cst_41 {dimension_numbers = #tpu.dot_dimension_numbers<[1], [0], [0], [1], [0, 0, 1, 1], [], []>} : vector<16x32xbf16>, vector<32x128xbf16>, vector<16x128xf32> -> vector<16x128xf32>
    %38 = arith.addf %34, %37 : vector<16x128xf32>
    %c1_42 = arith.constant 1 : index
    %c0_43 = arith.constant 0 : index
    %c0_44 = arith.constant 0 : index
    %39 = vector.load %arg11[%c1_42, %c0_43, %c0_44] : memref<2x1x128xf32, #tpu.memory_space<vmem>>, vector<1x1x128xf32>
    %40 = vector.shape_cast %39 : vector<1x1x128xf32> to vector<1x128xf32>
    %41 = vector.broadcast %40 : vector<1x128xf32> to vector<16x128xf32>
    %42 = arith.addf %38, %41 : vector<16x128xf32>
    %43 = vector.shape_cast %42 : vector<16x128xf32> to vector<8x2x128xf32>
    %c0_45 = arith.constant 0 : index
    %c0_46 = arith.constant 0 : index
    %c0_47 = arith.constant 0 : index
    %44 = vector.load %arg15[%c0_45, %c0_46, %c0_47] : memref<8x2x128xf32, #tpu.memory_space<vmem>>, vector<8x2x128xf32>
    tpu.vector_store %arg15[%c0_45, %c0_46, %c0_47], %43 {strides = array<i32>} : memref<8x2x128xf32, #tpu.memory_space<vmem>>, vector<8x2x128xf32>,
    %c0_48 = arith.constant 0 : index
    %c0_49 = arith.constant 0 : index
    %c0_50 = arith.constant 0 : index
    %45 = vector.load %arg10[%c0_48, %c0_49, %c0_50] : memref<2x32x128xbf16, #tpu.memory_space<vmem>>, vector<1x32x128xbf16>
    %46 = vector.shape_cast %45 : vector<1x32x128xbf16> to vector<32x128xbf16>
    %c1_51 = arith.constant 1 : index
    %c0_52 = arith.constant 0 : index
    %c0_53 = arith.constant 0 : index
    %47 = vector.load %arg10[%c1_51, %c0_52, %c0_53] : memref<2x32x128xbf16, #tpu.memory_space<vmem>>, vector<1x32x128xbf16>
    %48 = vector.shape_cast %47 : vector<1x32x128xbf16> to vector<32x128xbf16>
    %c0_i32_54 = arith.constant 0 : i32
    %c7_i32 = arith.constant 7 : i32
    %49 = arith.subi %c7_i32, %c0_i32_54 : i32
    %50 = arith.index_cast %c0_i32_54 : i32 to index
    %c0_55 = arith.constant 0 : index
    %c0_56 = arith.constant 0 : index
    %51 = vector.load %arg14[%50, %c0_55, %c0_56] : memref<8x2x128xf32, #tpu.memory_space<vmem>>, vector<1x2x128xf32>
    %52 = vector.shape_cast %51 : vector<1x2x128xf32> to vector<2x128xf32>
    %c0_57 = arith.constant 0 : index
    %c0_58 = arith.constant 0 : index
    %53 = vector.load %arg16[%c0_57, %c0_58] : memref<2x32xf32, #tpu.memory_space<vmem>>, vector<2x32xf32>
    %54 = arith.truncf %53 : vector<2x32xf32> to vector<2x32xbf16>
    %cst_59 = arith.constant dense<0.000000e+00> : vector<2x128xf32>
    %55 = tpu.matmul %54, %46, %cst_59 {dimension_numbers = #tpu.dot_dimension_numbers<[1], [0], [0], [1], [0, 0, 1, 1], [], []>} : vector<2x32xbf16>, vector<32x128xbf16>, vector<2x128xf32> -> vector<2x128xf32>
    %56 = arith.addf %52, %55 : vector<2x128xf32>
    %57 = arith.index_cast %49 : i32 to index
    %c0_60 = arith.constant 0 : index
    %c0_61 = arith.constant 0 : index
    %58 = vector.load %arg15[%57, %c0_60, %c0_61] : memref<8x2x128xf32, #tpu.memory_space<vmem>>, vector<1x2x128xf32>
    %59 = vector.shape_cast %58 : vector<1x2x128xf32> to vector<2x128xf32>
    %c0_62 = arith.constant 0 : index
    %c0_63 = arith.constant 0 : index
    %60 = vector.load %arg18[%c0_62, %c0_63] : memref<2x32xf32, #tpu.memory_space<vmem>>, vector<2x32xf32>
    %61 = arith.truncf %60 : vector<2x32xf32> to vector<2x32xbf16>
    %cst_64 = arith.constant dense<0.000000e+00> : vector<2x128xf32>
    %62 = tpu.matmul %61, %48, %cst_64 {dimension_numbers = #tpu.dot_dimension_numbers<[1], [0], [0], [1], [0, 0, 1, 1], [], []>} : vector<2x32xbf16>, vector<32x128xbf16>, vector<2x128xf32> -> vector<2x128xf32>
    %63 = arith.addf %59, %62 : vector<2x128xf32>
    %64 = vector.extract_strided_slice %56 {offsets = [0, 0], sizes = [2, 96], strides = [1, 1]} : vector<2x128xf32> to vector<2x96xf32>
    %65 = arith.negf %64 : vector<2x96xf32>
    %66 = math.exp %65 : vector<2x96xf32>
    %cst_65 = arith.constant 1.000000e+00 : f32
    %67 = vector.broadcast %cst_65 : f32 to vector<2x96xf32>
    %68 = arith.addf %67, %66 : vector<2x96xf32>
    %69 = arith.divf %67, %68 : vector<2x96xf32>
    %70 = vector.extract_strided_slice %56 {offsets = [0, 96], sizes = [2, 32], strides = [1, 1]} : vector<2x128xf32> to vector<2x32xf32>
    %71 = math.tanh %70 : vector<2x32xf32>
    %72 = vector.extract_strided_slice %69 {offsets = [0, 0], sizes = [2, 32], strides = [1, 1]} : vector<2x96xf32> to vector<2x32xf32>
    %73 = vector.extract_strided_slice %69 {offsets = [0, 32], sizes = [2, 32], strides = [1, 1]} : vector<2x96xf32> to vector<2x32xf32>
    %74 = vector.extract_strided_slice %69 {offsets = [0, 64], sizes = [2, 32], strides = [1, 1]} : vector<2x96xf32> to vector<2x32xf32>
    %75 = vector.extract_strided_slice %63 {offsets = [0, 0], sizes = [2, 96], strides = [1, 1]} : vector<2x128xf32> to vector<2x96xf32>
    %76 = arith.negf %75 : vector<2x96xf32>
    %77 = math.exp %76 : vector<2x96xf32>
    %cst_66 = arith.constant 1.000000e+00 : f32
    %78 = vector.broadcast %cst_66 : f32 to vector<2x96xf32>
    %79 = arith.addf %78, %77 : vector<2x96xf32>
    %80 = arith.divf %78, %79 : vector<2x96xf32>
    %81 = vector.extract_strided_slice %63 {offsets = [0, 96], sizes = [2, 32], strides = [1, 1]} : vector<2x128xf32> to vector<2x32xf32>
    %82 = math.tanh %81 : vector<2x32xf32>
    %83 = vector.extract_strided_slice %80 {offsets = [0, 0], sizes = [2, 32], strides = [1, 1]} : vector<2x96xf32> to vector<2x32xf32>
    %84 = vector.extract_strided_slice %80 {offsets = [0, 32], sizes = [2, 32], strides = [1, 1]} : vector<2x96xf32> to vector<2x32xf32>
    %85 = vector.extract_strided_slice %80 {offsets = [0, 64], sizes = [2, 32], strides = [1, 1]} : vector<2x96xf32> to vector<2x32xf32>
    %c0_67 = arith.constant 0 : index
    %c0_68 = arith.constant 0 : index
    %86 = vector.load %arg17[%c0_67, %c0_68] : memref<2x32xf32, #tpu.memory_space<vmem>>, vector<2x32xf32>
    %87 = arith.mulf %73, %86 : vector<2x32xf32>
    %88 = arith.mulf %72, %71 : vector<2x32xf32>
    %89 = arith.addf %87, %88 : vector<2x32xf32>
    %c0_69 = arith.constant 0 : index
    %c0_70 = arith.constant 0 : index
    %90 = vector.load %arg19[%c0_69, %c0_70] : memref<2x32xf32, #tpu.memory_space<vmem>>, vector<2x32xf32>
    %91 = arith.mulf %84, %90 : vector<2x32xf32>
    %92 = arith.mulf %83, %82 : vector<2x32xf32>
    %93 = arith.addf %91, %92 : vector<2x32xf32>
    %94 = math.tanh %89 : vector<2x32xf32>
    %95 = arith.mulf %74, %94 : vector<2x32xf32>
    %96 = math.tanh %93 : vector<2x32xf32>
    %97 = arith.mulf %85, %96 : vector<2x32xf32>
    %c0_71 = arith.constant 0 : index
    %c0_72 = arith.constant 0 : index
    %98 = vector.load %arg17[%c0_71, %c0_72] : memref<2x32xf32, #tpu.memory_space<vmem>>, vector<2x32xf32>
    tpu.vector_store %arg17[%c0_71, %c0_72], %89 {strides = array<i32>} : memref<2x32xf32, #tpu.memory_space<vmem>>, vector<2x32xf32>,
    %c0_73 = arith.constant 0 : index
    %c0_74 = arith.constant 0 : index
    %99 = vector.load %arg16[%c0_73, %c0_74] : memref<2x32xf32, #tpu.memory_space<vmem>>, vector<2x32xf32>
    tpu.vector_store %arg16[%c0_73, %c0_74], %95 {strides = array<i32>} : memref<2x32xf32, #tpu.memory_space<vmem>>, vector<2x32xf32>,
    %c0_75 = arith.constant 0 : index
    %c0_76 = arith.constant 0 : index
    %100 = vector.load %arg19[%c0_75, %c0_76] : memref<2x32xf32, #tpu.memory_space<vmem>>, vector<2x32xf32>
    tpu.vector_store %arg19[%c0_75, %c0_76], %93 {strides = array<i32>} : memref<2x32xf32, #tpu.memory_space<vmem>>, vector<2x32xf32>,
    %c0_77 = arith.constant 0 : index
    %c0_78 = arith.constant 0 : index
    %101 = vector.load %arg18[%c0_77, %c0_78] : memref<2x32xf32, #tpu.memory_space<vmem>>, vector<2x32xf32>
    tpu.vector_store %arg18[%c0_77, %c0_78], %97 {strides = array<i32>} : memref<2x32xf32, #tpu.memory_space<vmem>>, vector<2x32xf32>,
    %102 = arith.truncf %95 : vector<2x32xf32> to vector<2x32xbf16>
    %103 = arith.index_cast %c0_i32_54 : i32 to index
    %c0_79 = arith.constant 0 : index
    %c0_80 = arith.constant 0 : index
    %104 = vector.load %arg12[%103, %c0_79, %c0_80] : memref<8x2x32xbf16, #tpu.memory_space<vmem>>, vector<1x2x32xbf16>
    %105 = vector.shape_cast %104 : vector<1x2x32xbf16> to vector<2x32xbf16>
    %106 = vector.shape_cast %102 : vector<2x32xbf16> to vector<1x2x32xbf16>
    tpu.vector_store %arg12[%103, %c0_79, %c0_80], %106 {strides = array<i32>} : memref<8x2x32xbf16, #tpu.memory_space<vmem>>, vector<1x2x32xbf16>,
    %107 = arith.truncf %97 : vector<2x32xf32> to vector<2x32xbf16>
    %108 = arith.index_cast %49 : i32 to index
    %c0_81 = arith.constant 0 : index
    %c0_82 = arith.constant 0 : index
    %109 = vector.load %arg13[%108, %c0_81, %c0_82] : memref<8x2x32xbf16, #tpu.memory_space<vmem>>, vector<1x2x32xbf16>
    %110 = vector.shape_cast %109 : vector<1x2x32xbf16> to vector<2x32xbf16>
    %111 = vector.shape_cast %107 : vector<2x32xbf16> to vector<1x2x32xbf16>
    tpu.vector_store %arg13[%108, %c0_81, %c0_82], %111 {strides = array<i32>} : memref<8x2x32xbf16, #tpu.memory_space<vmem>>, vector<1x2x32xbf16>,
    %c1_i32 = arith.constant 1 : i32
    %c7_i32_83 = arith.constant 7 : i32
    %112 = arith.subi %c7_i32_83, %c1_i32 : i32
    %113 = arith.index_cast %c1_i32 : i32 to index
    %c0_84 = arith.constant 0 : index
    %c0_85 = arith.constant 0 : index
    %114 = vector.load %arg14[%113, %c0_84, %c0_85] : memref<8x2x128xf32, #tpu.memory_space<vmem>>, vector<1x2x128xf32>
    %115 = vector.shape_cast %114 : vector<1x2x128xf32> to vector<2x128xf32>
    %c0_86 = arith.constant 0 : index
    %c0_87 = arith.constant 0 : index
    %116 = vector.load %arg16[%c0_86, %c0_87] : memref<2x32xf32, #tpu.memory_space<vmem>>, vector<2x32xf32>
    %117 = arith.truncf %116 : vector<2x32xf32> to vector<2x32xbf16>
    %cst_88 = arith.constant dense<0.000000e+00> : vector<2x128xf32>
    %118 = tpu.matmul %117, %46, %cst_88 {dimension_numbers = #tpu.dot_dimension_numbers<[1], [0], [0], [1], [0, 0, 1, 1], [], []>} : vector<2x32xbf16>, vector<32x128xbf16>, vector<2x128xf32> -> vector<2x128xf32>
    %119 = arith.addf %115, %118 : vector<2x128xf32>
    %120 = arith.index_cast %112 : i32 to index
    %c0_89 = arith.constant 0 : index
    %c0_90 = arith.constant 0 : index
    %121 = vector.load %arg15[%120, %c0_89, %c0_90] : memref<8x2x128xf32, #tpu.memory_space<vmem>>, vector<1x2x128xf32>
    %122 = vector.shape_cast %121 : vector<1x2x128xf32> to vector<2x128xf32>
    %c0_91 = arith.constant 0 : index
    %c0_92 = arith.constant 0 : index
    %123 = vector.load %arg18[%c0_91, %c0_92] : memref<2x32xf32, #tpu.memory_space<vmem>>, vector<2x32xf32>
    %124 = arith.truncf %123 : vector<2x32xf32> to vector<2x32xbf16>
    %cst_93 = arith.constant dense<0.000000e+00> : vector<2x128xf32>
    %125 = tpu.matmul %124, %48, %cst_93 {dimension_numbers = #tpu.dot_dimension_numbers<[1], [0], [0], [1], [0, 0, 1, 1], [], []>} : vector<2x32xbf16>, vector<32x128xbf16>, vector<2x128xf32> -> vector<2x128xf32>
    %126 = arith.addf %122, %125 : vector<2x128xf32>
    %127 = vector.extract_strided_slice %119 {offsets = [0, 0], sizes = [2, 96], strides = [1, 1]} : vector<2x128xf32> to vector<2x96xf32>
    %128 = arith.negf %127 : vector<2x96xf32>
    %129 = math.exp %128 : vector<2x96xf32>
    %cst_94 = arith.constant 1.000000e+00 : f32
    %130 = vector.broadcast %cst_94 : f32 to vector<2x96xf32>
    %131 = arith.addf %130, %129 : vector<2x96xf32>
    %132 = arith.divf %130, %131 : vector<2x96xf32>
    %133 = vector.extract_strided_slice %119 {offsets = [0, 96], sizes = [2, 32], strides = [1, 1]} : vector<2x128xf32> to vector<2x32xf32>
    %134 = math.tanh %133 : vector<2x32xf32>
    %135 = vector.extract_strided_slice %132 {offsets = [0, 0], sizes = [2, 32], strides = [1, 1]} : vector<2x96xf32> to vector<2x32xf32>
    %136 = vector.extract_strided_slice %132 {offsets = [0, 32], sizes = [2, 32], strides = [1, 1]} : vector<2x96xf32> to vector<2x32xf32>
    %137 = vector.extract_strided_slice %132 {offsets = [0, 64], sizes = [2, 32], strides = [1, 1]} : vector<2x96xf32> to vector<2x32xf32>
    %138 = vector.extract_strided_slice %126 {offsets = [0, 0], sizes = [2, 96], strides = [1, 1]} : vector<2x128xf32> to vector<2x96xf32>
    %139 = arith.negf %138 : vector<2x96xf32>
    %140 = math.exp %139 : vector<2x96xf32>
    %cst_95 = arith.constant 1.000000e+00 : f32
    %141 = vector.broadcast %cst_95 : f32 to vector<2x96xf32>
    %142 = arith.addf %141, %140 : vector<2x96xf32>
    %143 = arith.divf %141, %142 : vector<2x96xf32>
    %144 = vector.extract_strided_slice %126 {offsets = [0, 96], sizes = [2, 32], strides = [1, 1]} : vector<2x128xf32> to vector<2x32xf32>
    %145 = math.tanh %144 : vector<2x32xf32>
    %146 = vector.extract_strided_slice %143 {offsets = [0, 0], sizes = [2, 32], strides = [1, 1]} : vector<2x96xf32> to vector<2x32xf32>
    %147 = vector.extract_strided_slice %143 {offsets = [0, 32], sizes = [2, 32], strides = [1, 1]} : vector<2x96xf32> to vector<2x32xf32>
    %148 = vector.extract_strided_slice %143 {offsets = [0, 64], sizes = [2, 32], strides = [1, 1]} : vector<2x96xf32> to vector<2x32xf32>
    %c0_96 = arith.constant 0 : index
    %c0_97 = arith.constant 0 : index
    %149 = vector.load %arg17[%c0_96, %c0_97] : memref<2x32xf32, #tpu.memory_space<vmem>>, vector<2x32xf32>
    %150 = arith.mulf %136, %149 : vector<2x32xf32>
    %151 = arith.mulf %135, %134 : vector<2x32xf32>
    %152 = arith.addf %150, %151 : vector<2x32xf32>
    %c0_98 = arith.constant 0 : index
    %c0_99 = arith.constant 0 : index
    %153 = vector.load %arg19[%c0_98, %c0_99] : memref<2x32xf32, #tpu.memory_space<vmem>>, vector<2x32xf32>
    %154 = arith.mulf %147, %153 : vector<2x32xf32>
    %155 = arith.mulf %146, %145 : vector<2x32xf32>
    %156 = arith.addf %154, %155 : vector<2x32xf32>
    %157 = math.tanh %152 : vector<2x32xf32>
    %158 = arith.mulf %137, %157 : vector<2x32xf32>
    %159 = math.tanh %156 : vector<2x32xf32>
    %160 = arith.mulf %148, %159 : vector<2x32xf32>
    %c0_100 = arith.constant 0 : index
    %c0_101 = arith.constant 0 : index
    %161 = vector.load %arg17[%c0_100, %c0_101] : memref<2x32xf32, #tpu.memory_space<vmem>>, vector<2x32xf32>
    tpu.vector_store %arg17[%c0_100, %c0_101], %152 {strides = array<i32>} : memref<2x32xf32, #tpu.memory_space<vmem>>, vector<2x32xf32>,
    %c0_102 = arith.constant 0 : index
    %c0_103 = arith.constant 0 : index
    %162 = vector.load %arg16[%c0_102, %c0_103] : memref<2x32xf32, #tpu.memory_space<vmem>>, vector<2x32xf32>
    tpu.vector_store %arg16[%c0_102, %c0_103], %158 {strides = array<i32>} : memref<2x32xf32, #tpu.memory_space<vmem>>, vector<2x32xf32>,
    %c0_104 = arith.constant 0 : index
    %c0_105 = arith.constant 0 : index
    %163 = vector.load %arg19[%c0_104, %c0_105] : memref<2x32xf32, #tpu.memory_space<vmem>>, vector<2x32xf32>
    tpu.vector_store %arg19[%c0_104, %c0_105], %156 {strides = array<i32>} : memref<2x32xf32, #tpu.memory_space<vmem>>, vector<2x32xf32>,
    %c0_106 = arith.constant 0 : index
    %c0_107 = arith.constant 0 : index
    %164 = vector.load %arg18[%c0_106, %c0_107] : memref<2x32xf32, #tpu.memory_space<vmem>>, vector<2x32xf32>
    tpu.vector_store %arg18[%c0_106, %c0_107], %160 {strides = array<i32>} : memref<2x32xf32, #tpu.memory_space<vmem>>, vector<2x32xf32>,
    %165 = arith.truncf %158 : vector<2x32xf32> to vector<2x32xbf16>
    %166 = arith.index_cast %c1_i32 : i32 to index
    %c0_108 = arith.constant 0 : index
    %c0_109 = arith.constant 0 : index
    %167 = vector.load %arg12[%166, %c0_108, %c0_109] : memref<8x2x32xbf16, #tpu.memory_space<vmem>>, vector<1x2x32xbf16>
    %168 = vector.shape_cast %167 : vector<1x2x32xbf16> to vector<2x32xbf16>
    %169 = vector.shape_cast %165 : vector<2x32xbf16> to vector<1x2x32xbf16>
    tpu.vector_store %arg12[%166, %c0_108, %c0_109], %169 {strides = array<i32>} : memref<8x2x32xbf16, #tpu.memory_space<vmem>>, vector<1x2x32xbf16>,
    %170 = arith.truncf %160 : vector<2x32xf32> to vector<2x32xbf16>
    %171 = arith.index_cast %112 : i32 to index
    %c0_110 = arith.constant 0 : index
    %c0_111 = arith.constant 0 : index
    %172 = vector.load %arg13[%171, %c0_110, %c0_111] : memref<8x2x32xbf16, #tpu.memory_space<vmem>>, vector<1x2x32xbf16>
    %173 = vector.shape_cast %172 : vector<1x2x32xbf16> to vector<2x32xbf16>
    %174 = vector.shape_cast %170 : vector<2x32xbf16> to vector<1x2x32xbf16>
    tpu.vector_store %arg13[%171, %c0_110, %c0_111], %174 {strides = array<i32>} : memref<8x2x32xbf16, #tpu.memory_space<vmem>>, vector<1x2x32xbf16>,
    %c2_i32 = arith.constant 2 : i32
    %c7_i32_112 = arith.constant 7 : i32
    %175 = arith.subi %c7_i32_112, %c2_i32 : i32
    %176 = arith.index_cast %c2_i32 : i32 to index
    %c0_113 = arith.constant 0 : index
    %c0_114 = arith.constant 0 : index
    %177 = vector.load %arg14[%176, %c0_113, %c0_114] : memref<8x2x128xf32, #tpu.memory_space<vmem>>, vector<1x2x128xf32>
    %178 = vector.shape_cast %177 : vector<1x2x128xf32> to vector<2x128xf32>
    %c0_115 = arith.constant 0 : index
    %c0_116 = arith.constant 0 : index
    %179 = vector.load %arg16[%c0_115, %c0_116] : memref<2x32xf32, #tpu.memory_space<vmem>>, vector<2x32xf32>
    %180 = arith.truncf %179 : vector<2x32xf32> to vector<2x32xbf16>
    %cst_117 = arith.constant dense<0.000000e+00> : vector<2x128xf32>
    %181 = tpu.matmul %180, %46, %cst_117 {dimension_numbers = #tpu.dot_dimension_numbers<[1], [0], [0], [1], [0, 0, 1, 1], [], []>} : vector<2x32xbf16>, vector<32x128xbf16>, vector<2x128xf32> -> vector<2x128xf32>
    %182 = arith.addf %178, %181 : vector<2x128xf32>
    %183 = arith.index_cast %175 : i32 to index
    %c0_118 = arith.constant 0 : index
    %c0_119 = arith.constant 0 : index
    %184 = vector.load %arg15[%183, %c0_118, %c0_119] : memref<8x2x128xf32, #tpu.memory_space<vmem>>, vector<1x2x128xf32>
    %185 = vector.shape_cast %184 : vector<1x2x128xf32> to vector<2x128xf32>
    %c0_120 = arith.constant 0 : index
    %c0_121 = arith.constant 0 : index
    %186 = vector.load %arg18[%c0_120, %c0_121] : memref<2x32xf32, #tpu.memory_space<vmem>>, vector<2x32xf32>
    %187 = arith.truncf %186 : vector<2x32xf32> to vector<2x32xbf16>
    %cst_122 = arith.constant dense<0.000000e+00> : vector<2x128xf32>
    %188 = tpu.matmul %187, %48, %cst_122 {dimension_numbers = #tpu.dot_dimension_numbers<[1], [0], [0], [1], [0, 0, 1, 1], [], []>} : vector<2x32xbf16>, vector<32x128xbf16>, vector<2x128xf32> -> vector<2x128xf32>
    %189 = arith.addf %185, %188 : vector<2x128xf32>
    %190 = vector.extract_strided_slice %182 {offsets = [0, 0], sizes = [2, 96], strides = [1, 1]} : vector<2x128xf32> to vector<2x96xf32>
    %191 = arith.negf %190 : vector<2x96xf32>
    %192 = math.exp %191 : vector<2x96xf32>
    %cst_123 = arith.constant 1.000000e+00 : f32
    %193 = vector.broadcast %cst_123 : f32 to vector<2x96xf32>
    %194 = arith.addf %193, %192 : vector<2x96xf32>
    %195 = arith.divf %193, %194 : vector<2x96xf32>
    %196 = vector.extract_strided_slice %182 {offsets = [0, 96], sizes = [2, 32], strides = [1, 1]} : vector<2x128xf32> to vector<2x32xf32>
    %197 = math.tanh %196 : vector<2x32xf32>
    %198 = vector.extract_strided_slice %195 {offsets = [0, 0], sizes = [2, 32], strides = [1, 1]} : vector<2x96xf32> to vector<2x32xf32>
    %199 = vector.extract_strided_slice %195 {offsets = [0, 32], sizes = [2, 32], strides = [1, 1]} : vector<2x96xf32> to vector<2x32xf32>
    %200 = vector.extract_strided_slice %195 {offsets = [0, 64], sizes = [2, 32], strides = [1, 1]} : vector<2x96xf32> to vector<2x32xf32>
    %201 = vector.extract_strided_slice %189 {offsets = [0, 0], sizes = [2, 96], strides = [1, 1]} : vector<2x128xf32> to vector<2x96xf32>
    %202 = arith.negf %201 : vector<2x96xf32>
    %203 = math.exp %202 : vector<2x96xf32>
    %cst_124 = arith.constant 1.000000e+00 : f32
    %204 = vector.broadcast %cst_124 : f32 to vector<2x96xf32>
    %205 = arith.addf %204, %203 : vector<2x96xf32>
    %206 = arith.divf %204, %205 : vector<2x96xf32>
    %207 = vector.extract_strided_slice %189 {offsets = [0, 96], sizes = [2, 32], strides = [1, 1]} : vector<2x128xf32> to vector<2x32xf32>
    %208 = math.tanh %207 : vector<2x32xf32>
    %209 = vector.extract_strided_slice %206 {offsets = [0, 0], sizes = [2, 32], strides = [1, 1]} : vector<2x96xf32> to vector<2x32xf32>
    %210 = vector.extract_strided_slice %206 {offsets = [0, 32], sizes = [2, 32], strides = [1, 1]} : vector<2x96xf32> to vector<2x32xf32>
    %211 = vector.extract_strided_slice %206 {offsets = [0, 64], sizes = [2, 32], strides = [1, 1]} : vector<2x96xf32> to vector<2x32xf32>
    %c0_125 = arith.constant 0 : index
    %c0_126 = arith.constant 0 : index
    %212 = vector.load %arg17[%c0_125, %c0_126] : memref<2x32xf32, #tpu.memory_space<vmem>>, vector<2x32xf32>
    %213 = arith.mulf %199, %212 : vector<2x32xf32>
    %214 = arith.mulf %198, %197 : vector<2x32xf32>
    %215 = arith.addf %213, %214 : vector<2x32xf32>
    %c0_127 = arith.constant 0 : index
    %c0_128 = arith.constant 0 : index
    %216 = vector.load %arg19[%c0_127, %c0_128] : memref<2x32xf32, #tpu.memory_space<vmem>>, vector<2x32xf32>
    %217 = arith.mulf %210, %216 : vector<2x32xf32>
    %218 = arith.mulf %209, %208 : vector<2x32xf32>
    %219 = arith.addf %217, %218 : vector<2x32xf32>
    %220 = math.tanh %215 : vector<2x32xf32>
    %221 = arith.mulf %200, %220 : vector<2x32xf32>
    %222 = math.tanh %219 : vector<2x32xf32>
    %223 = arith.mulf %211, %222 : vector<2x32xf32>
    %c0_129 = arith.constant 0 : index
    %c0_130 = arith.constant 0 : index
    %224 = vector.load %arg17[%c0_129, %c0_130] : memref<2x32xf32, #tpu.memory_space<vmem>>, vector<2x32xf32>
    tpu.vector_store %arg17[%c0_129, %c0_130], %215 {strides = array<i32>} : memref<2x32xf32, #tpu.memory_space<vmem>>, vector<2x32xf32>,
    %c0_131 = arith.constant 0 : index
    %c0_132 = arith.constant 0 : index
    %225 = vector.load %arg16[%c0_131, %c0_132] : memref<2x32xf32, #tpu.memory_space<vmem>>, vector<2x32xf32>
    tpu.vector_store %arg16[%c0_131, %c0_132], %221 {strides = array<i32>} : memref<2x32xf32, #tpu.memory_space<vmem>>, vector<2x32xf32>,
    %c0_133 = arith.constant 0 : index
    %c0_134 = arith.constant 0 : index
    %226 = vector.load %arg19[%c0_133, %c0_134] : memref<2x32xf32, #tpu.memory_space<vmem>>, vector<2x32xf32>
    tpu.vector_store %arg19[%c0_133, %c0_134], %219 {strides = array<i32>} : memref<2x32xf32, #tpu.memory_space<vmem>>, vector<2x32xf32>,
    %c0_135 = arith.constant 0 : index
    %c0_136 = arith.constant 0 : index
    %227 = vector.load %arg18[%c0_135, %c0_136] : memref<2x32xf32, #tpu.memory_space<vmem>>, vector<2x32xf32>
    tpu.vector_store %arg18[%c0_135, %c0_136], %223 {strides = array<i32>} : memref<2x32xf32, #tpu.memory_space<vmem>>, vector<2x32xf32>,
    %228 = arith.truncf %221 : vector<2x32xf32> to vector<2x32xbf16>
    %229 = arith.index_cast %c2_i32 : i32 to index
    %c0_137 = arith.constant 0 : index
    %c0_138 = arith.constant 0 : index
    %230 = vector.load %arg12[%229, %c0_137, %c0_138] : memref<8x2x32xbf16, #tpu.memory_space<vmem>>, vector<1x2x32xbf16>
    %231 = vector.shape_cast %230 : vector<1x2x32xbf16> to vector<2x32xbf16>
    %232 = vector.shape_cast %228 : vector<2x32xbf16> to vector<1x2x32xbf16>
    tpu.vector_store %arg12[%229, %c0_137, %c0_138], %232 {strides = array<i32>} : memref<8x2x32xbf16, #tpu.memory_space<vmem>>, vector<1x2x32xbf16>,
    %233 = arith.truncf %223 : vector<2x32xf32> to vector<2x32xbf16>
    %234 = arith.index_cast %175 : i32 to index
    %c0_139 = arith.constant 0 : index
    %c0_140 = arith.constant 0 : index
    %235 = vector.load %arg13[%234, %c0_139, %c0_140] : memref<8x2x32xbf16, #tpu.memory_space<vmem>>, vector<1x2x32xbf16>
    %236 = vector.shape_cast %235 : vector<1x2x32xbf16> to vector<2x32xbf16>
    %237 = vector.shape_cast %233 : vector<2x32xbf16> to vector<1x2x32xbf16>
    tpu.vector_store %arg13[%234, %c0_139, %c0_140], %237 {strides = array<i32>} : memref<8x2x32xbf16, #tpu.memory_space<vmem>>, vector<1x2x32xbf16>,
    %c3_i32 = arith.constant 3 : i32
    %c7_i32_141 = arith.constant 7 : i32
    %238 = arith.subi %c7_i32_141, %c3_i32 : i32
    %239 = arith.index_cast %c3_i32 : i32 to index
    %c0_142 = arith.constant 0 : index
    %c0_143 = arith.constant 0 : index
    %240 = vector.load %arg14[%239, %c0_142, %c0_143] : memref<8x2x128xf32, #tpu.memory_space<vmem>>, vector<1x2x128xf32>
    %241 = vector.shape_cast %240 : vector<1x2x128xf32> to vector<2x128xf32>
    %c0_144 = arith.constant 0 : index
    %c0_145 = arith.constant 0 : index
    %242 = vector.load %arg16[%c0_144, %c0_145] : memref<2x32xf32, #tpu.memory_space<vmem>>, vector<2x32xf32>
    %243 = arith.truncf %242 : vector<2x32xf32> to vector<2x32xbf16>
    %cst_146 = arith.constant dense<0.000000e+00> : vector<2x128xf32>
    %244 = tpu.matmul %243, %46, %cst_146 {dimension_numbers = #tpu.dot_dimension_numbers<[1], [0], [0], [1], [0, 0, 1, 1], [], []>} : vector<2x32xbf16>, vector<32x128xbf16>, vector<2x128xf32> -> vector<2x128xf32>
    %245 = arith.addf %241, %244 : vector<2x128xf32>
    %246 = arith.index_cast %238 : i32 to index
    %c0_147 = arith.constant 0 : index
    %c0_148 = arith.constant 0 : index
    %247 = vector.load %arg15[%246, %c0_147, %c0_148] : memref<8x2x128xf32, #tpu.memory_space<vmem>>, vector<1x2x128xf32>
    %248 = vector.shape_cast %247 : vector<1x2x128xf32> to vector<2x128xf32>
    %c0_149 = arith.constant 0 : index
    %c0_150 = arith.constant 0 : index
    %249 = vector.load %arg18[%c0_149, %c0_150] : memref<2x32xf32, #tpu.memory_space<vmem>>, vector<2x32xf32>
    %250 = arith.truncf %249 : vector<2x32xf32> to vector<2x32xbf16>
    %cst_151 = arith.constant dense<0.000000e+00> : vector<2x128xf32>
    %251 = tpu.matmul %250, %48, %cst_151 {dimension_numbers = #tpu.dot_dimension_numbers<[1], [0], [0], [1], [0, 0, 1, 1], [], []>} : vector<2x32xbf16>, vector<32x128xbf16>, vector<2x128xf32> -> vector<2x128xf32>
    %252 = arith.addf %248, %251 : vector<2x128xf32>
    %253 = vector.extract_strided_slice %245 {offsets = [0, 0], sizes = [2, 96], strides = [1, 1]} : vector<2x128xf32> to vector<2x96xf32>
    %254 = arith.negf %253 : vector<2x96xf32>
    %255 = math.exp %254 : vector<2x96xf32>
    %cst_152 = arith.constant 1.000000e+00 : f32
    %256 = vector.broadcast %cst_152 : f32 to vector<2x96xf32>
    %257 = arith.addf %256, %255 : vector<2x96xf32>
    %258 = arith.divf %256, %257 : vector<2x96xf32>
    %259 = vector.extract_strided_slice %245 {offsets = [0, 96], sizes = [2, 32], strides = [1, 1]} : vector<2x128xf32> to vector<2x32xf32>
    %260 = math.tanh %259 : vector<2x32xf32>
    %261 = vector.extract_strided_slice %258 {offsets = [0, 0], sizes = [2, 32], strides = [1, 1]} : vector<2x96xf32> to vector<2x32xf32>
    %262 = vector.extract_strided_slice %258 {offsets = [0, 32], sizes = [2, 32], strides = [1, 1]} : vector<2x96xf32> to vector<2x32xf32>
    %263 = vector.extract_strided_slice %258 {offsets = [0, 64], sizes = [2, 32], strides = [1, 1]} : vector<2x96xf32> to vector<2x32xf32>
    %264 = vector.extract_strided_slice %252 {offsets = [0, 0], sizes = [2, 96], strides = [1, 1]} : vector<2x128xf32> to vector<2x96xf32>
    %265 = arith.negf %264 : vector<2x96xf32>
    %266 = math.exp %265 : vector<2x96xf32>
    %cst_153 = arith.constant 1.000000e+00 : f32
    %267 = vector.broadcast %cst_153 : f32 to vector<2x96xf32>
    %268 = arith.addf %267, %266 : vector<2x96xf32>
    %269 = arith.divf %267, %268 : vector<2x96xf32>
    %270 = vector.extract_strided_slice %252 {offsets = [0, 96], sizes = [2, 32], strides = [1, 1]} : vector<2x128xf32> to vector<2x32xf32>
    %271 = math.tanh %270 : vector<2x32xf32>
    %272 = vector.extract_strided_slice %269 {offsets = [0, 0], sizes = [2, 32], strides = [1, 1]} : vector<2x96xf32> to vector<2x32xf32>
    %273 = vector.extract_strided_slice %269 {offsets = [0, 32], sizes = [2, 32], strides = [1, 1]} : vector<2x96xf32> to vector<2x32xf32>
    %274 = vector.extract_strided_slice %269 {offsets = [0, 64], sizes = [2, 32], strides = [1, 1]} : vector<2x96xf32> to vector<2x32xf32>
    %c0_154 = arith.constant 0 : index
    %c0_155 = arith.constant 0 : index
    %275 = vector.load %arg17[%c0_154, %c0_155] : memref<2x32xf32, #tpu.memory_space<vmem>>, vector<2x32xf32>
    %276 = arith.mulf %262, %275 : vector<2x32xf32>
    %277 = arith.mulf %261, %260 : vector<2x32xf32>
    %278 = arith.addf %276, %277 : vector<2x32xf32>
    %c0_156 = arith.constant 0 : index
    %c0_157 = arith.constant 0 : index
    %279 = vector.load %arg19[%c0_156, %c0_157] : memref<2x32xf32, #tpu.memory_space<vmem>>, vector<2x32xf32>
    %280 = arith.mulf %273, %279 : vector<2x32xf32>
    %281 = arith.mulf %272, %271 : vector<2x32xf32>
    %282 = arith.addf %280, %281 : vector<2x32xf32>
    %283 = math.tanh %278 : vector<2x32xf32>
    %284 = arith.mulf %263, %283 : vector<2x32xf32>
    %285 = math.tanh %282 : vector<2x32xf32>
    %286 = arith.mulf %274, %285 : vector<2x32xf32>
    %c0_158 = arith.constant 0 : index
    %c0_159 = arith.constant 0 : index
    %287 = vector.load %arg17[%c0_158, %c0_159] : memref<2x32xf32, #tpu.memory_space<vmem>>, vector<2x32xf32>
    tpu.vector_store %arg17[%c0_158, %c0_159], %278 {strides = array<i32>} : memref<2x32xf32, #tpu.memory_space<vmem>>, vector<2x32xf32>,
    %c0_160 = arith.constant 0 : index
    %c0_161 = arith.constant 0 : index
    %288 = vector.load %arg16[%c0_160, %c0_161] : memref<2x32xf32, #tpu.memory_space<vmem>>, vector<2x32xf32>
    tpu.vector_store %arg16[%c0_160, %c0_161], %284 {strides = array<i32>} : memref<2x32xf32, #tpu.memory_space<vmem>>, vector<2x32xf32>,
    %c0_162 = arith.constant 0 : index
    %c0_163 = arith.constant 0 : index
    %289 = vector.load %arg19[%c0_162, %c0_163] : memref<2x32xf32, #tpu.memory_space<vmem>>, vector<2x32xf32>
    tpu.vector_store %arg19[%c0_162, %c0_163], %282 {strides = array<i32>} : memref<2x32xf32, #tpu.memory_space<vmem>>, vector<2x32xf32>,
    %c0_164 = arith.constant 0 : index
    %c0_165 = arith.constant 0 : index
    %290 = vector.load %arg18[%c0_164, %c0_165] : memref<2x32xf32, #tpu.memory_space<vmem>>, vector<2x32xf32>
    tpu.vector_store %arg18[%c0_164, %c0_165], %286 {strides = array<i32>} : memref<2x32xf32, #tpu.memory_space<vmem>>, vector<2x32xf32>,
    %291 = arith.truncf %284 : vector<2x32xf32> to vector<2x32xbf16>
    %292 = arith.index_cast %c3_i32 : i32 to index
    %c0_166 = arith.constant 0 : index
    %c0_167 = arith.constant 0 : index
    %293 = vector.load %arg12[%292, %c0_166, %c0_167] : memref<8x2x32xbf16, #tpu.memory_space<vmem>>, vector<1x2x32xbf16>
    %294 = vector.shape_cast %293 : vector<1x2x32xbf16> to vector<2x32xbf16>
    %295 = vector.shape_cast %291 : vector<2x32xbf16> to vector<1x2x32xbf16>
    tpu.vector_store %arg12[%292, %c0_166, %c0_167], %295 {strides = array<i32>} : memref<8x2x32xbf16, #tpu.memory_space<vmem>>, vector<1x2x32xbf16>,
    %296 = arith.truncf %286 : vector<2x32xf32> to vector<2x32xbf16>
    %297 = arith.index_cast %238 : i32 to index
    %c0_168 = arith.constant 0 : index
    %c0_169 = arith.constant 0 : index
    %298 = vector.load %arg13[%297, %c0_168, %c0_169] : memref<8x2x32xbf16, #tpu.memory_space<vmem>>, vector<1x2x32xbf16>
    %299 = vector.shape_cast %298 : vector<1x2x32xbf16> to vector<2x32xbf16>
    %300 = vector.shape_cast %296 : vector<2x32xbf16> to vector<1x2x32xbf16>
    tpu.vector_store %arg13[%297, %c0_168, %c0_169], %300 {strides = array<i32>} : memref<8x2x32xbf16, #tpu.memory_space<vmem>>, vector<1x2x32xbf16>,
    %c4_i32 = arith.constant 4 : i32
    %c7_i32_170 = arith.constant 7 : i32
    %301 = arith.subi %c7_i32_170, %c4_i32 : i32
    %302 = arith.index_cast %c4_i32 : i32 to index
    %c0_171 = arith.constant 0 : index
    %c0_172 = arith.constant 0 : index
    %303 = vector.load %arg14[%302, %c0_171, %c0_172] : memref<8x2x128xf32, #tpu.memory_space<vmem>>, vector<1x2x128xf32>
    %304 = vector.shape_cast %303 : vector<1x2x128xf32> to vector<2x128xf32>
    %c0_173 = arith.constant 0 : index
    %c0_174 = arith.constant 0 : index
    %305 = vector.load %arg16[%c0_173, %c0_174] : memref<2x32xf32, #tpu.memory_space<vmem>>, vector<2x32xf32>
    %306 = arith.truncf %305 : vector<2x32xf32> to vector<2x32xbf16>
    %cst_175 = arith.constant dense<0.000000e+00> : vector<2x128xf32>
    %307 = tpu.matmul %306, %46, %cst_175 {dimension_numbers = #tpu.dot_dimension_numbers<[1], [0], [0], [1], [0, 0, 1, 1], [], []>} : vector<2x32xbf16>, vector<32x128xbf16>, vector<2x128xf32> -> vector<2x128xf32>
    %308 = arith.addf %304, %307 : vector<2x128xf32>
    %309 = arith.index_cast %301 : i32 to index
    %c0_176 = arith.constant 0 : index
    %c0_177 = arith.constant 0 : index
    %310 = vector.load %arg15[%309, %c0_176, %c0_177] : memref<8x2x128xf32, #tpu.memory_space<vmem>>, vector<1x2x128xf32>
    %311 = vector.shape_cast %310 : vector<1x2x128xf32> to vector<2x128xf32>
    %c0_178 = arith.constant 0 : index
    %c0_179 = arith.constant 0 : index
    %312 = vector.load %arg18[%c0_178, %c0_179] : memref<2x32xf32, #tpu.memory_space<vmem>>, vector<2x32xf32>
    %313 = arith.truncf %312 : vector<2x32xf32> to vector<2x32xbf16>
    %cst_180 = arith.constant dense<0.000000e+00> : vector<2x128xf32>
    %314 = tpu.matmul %313, %48, %cst_180 {dimension_numbers = #tpu.dot_dimension_numbers<[1], [0], [0], [1], [0, 0, 1, 1], [], []>} : vector<2x32xbf16>, vector<32x128xbf16>, vector<2x128xf32> -> vector<2x128xf32>
    %315 = arith.addf %311, %314 : vector<2x128xf32>
    %316 = vector.extract_strided_slice %308 {offsets = [0, 0], sizes = [2, 96], strides = [1, 1]} : vector<2x128xf32> to vector<2x96xf32>
    %317 = arith.negf %316 : vector<2x96xf32>
    %318 = math.exp %317 : vector<2x96xf32>
    %cst_181 = arith.constant 1.000000e+00 : f32
    %319 = vector.broadcast %cst_181 : f32 to vector<2x96xf32>
    %320 = arith.addf %319, %318 : vector<2x96xf32>
    %321 = arith.divf %319, %320 : vector<2x96xf32>
    %322 = vector.extract_strided_slice %308 {offsets = [0, 96], sizes = [2, 32], strides = [1, 1]} : vector<2x128xf32> to vector<2x32xf32>
    %323 = math.tanh %322 : vector<2x32xf32>
    %324 = vector.extract_strided_slice %321 {offsets = [0, 0], sizes = [2, 32], strides = [1, 1]} : vector<2x96xf32> to vector<2x32xf32>
    %325 = vector.extract_strided_slice %321 {offsets = [0, 32], sizes = [2, 32], strides = [1, 1]} : vector<2x96xf32> to vector<2x32xf32>
    %326 = vector.extract_strided_slice %321 {offsets = [0, 64], sizes = [2, 32], strides = [1, 1]} : vector<2x96xf32> to vector<2x32xf32>
    %327 = vector.extract_strided_slice %315 {offsets = [0, 0], sizes = [2, 96], strides = [1, 1]} : vector<2x128xf32> to vector<2x96xf32>
    %328 = arith.negf %327 : vector<2x96xf32>
    %329 = math.exp %328 : vector<2x96xf32>
    %cst_182 = arith.constant 1.000000e+00 : f32
    %330 = vector.broadcast %cst_182 : f32 to vector<2x96xf32>
    %331 = arith.addf %330, %329 : vector<2x96xf32>
    %332 = arith.divf %330, %331 : vector<2x96xf32>
    %333 = vector.extract_strided_slice %315 {offsets = [0, 96], sizes = [2, 32], strides = [1, 1]} : vector<2x128xf32> to vector<2x32xf32>
    %334 = math.tanh %333 : vector<2x32xf32>
    %335 = vector.extract_strided_slice %332 {offsets = [0, 0], sizes = [2, 32], strides = [1, 1]} : vector<2x96xf32> to vector<2x32xf32>
    %336 = vector.extract_strided_slice %332 {offsets = [0, 32], sizes = [2, 32], strides = [1, 1]} : vector<2x96xf32> to vector<2x32xf32>
    %337 = vector.extract_strided_slice %332 {offsets = [0, 64], sizes = [2, 32], strides = [1, 1]} : vector<2x96xf32> to vector<2x32xf32>
    %c0_183 = arith.constant 0 : index
    %c0_184 = arith.constant 0 : index
    %338 = vector.load %arg17[%c0_183, %c0_184] : memref<2x32xf32, #tpu.memory_space<vmem>>, vector<2x32xf32>
    %339 = arith.mulf %325, %338 : vector<2x32xf32>
    %340 = arith.mulf %324, %323 : vector<2x32xf32>
    %341 = arith.addf %339, %340 : vector<2x32xf32>
    %c0_185 = arith.constant 0 : index
    %c0_186 = arith.constant 0 : index
    %342 = vector.load %arg19[%c0_185, %c0_186] : memref<2x32xf32, #tpu.memory_space<vmem>>, vector<2x32xf32>
    %343 = arith.mulf %336, %342 : vector<2x32xf32>
    %344 = arith.mulf %335, %334 : vector<2x32xf32>
    %345 = arith.addf %343, %344 : vector<2x32xf32>
    %346 = math.tanh %341 : vector<2x32xf32>
    %347 = arith.mulf %326, %346 : vector<2x32xf32>
    %348 = math.tanh %345 : vector<2x32xf32>
    %349 = arith.mulf %337, %348 : vector<2x32xf32>
    %c0_187 = arith.constant 0 : index
    %c0_188 = arith.constant 0 : index
    %350 = vector.load %arg17[%c0_187, %c0_188] : memref<2x32xf32, #tpu.memory_space<vmem>>, vector<2x32xf32>
    tpu.vector_store %arg17[%c0_187, %c0_188], %341 {strides = array<i32>} : memref<2x32xf32, #tpu.memory_space<vmem>>, vector<2x32xf32>,
    %c0_189 = arith.constant 0 : index
    %c0_190 = arith.constant 0 : index
    %351 = vector.load %arg16[%c0_189, %c0_190] : memref<2x32xf32, #tpu.memory_space<vmem>>, vector<2x32xf32>
    tpu.vector_store %arg16[%c0_189, %c0_190], %347 {strides = array<i32>} : memref<2x32xf32, #tpu.memory_space<vmem>>, vector<2x32xf32>,
    %c0_191 = arith.constant 0 : index
    %c0_192 = arith.constant 0 : index
    %352 = vector.load %arg19[%c0_191, %c0_192] : memref<2x32xf32, #tpu.memory_space<vmem>>, vector<2x32xf32>
    tpu.vector_store %arg19[%c0_191, %c0_192], %345 {strides = array<i32>} : memref<2x32xf32, #tpu.memory_space<vmem>>, vector<2x32xf32>,
    %c0_193 = arith.constant 0 : index
    %c0_194 = arith.constant 0 : index
    %353 = vector.load %arg18[%c0_193, %c0_194] : memref<2x32xf32, #tpu.memory_space<vmem>>, vector<2x32xf32>
    tpu.vector_store %arg18[%c0_193, %c0_194], %349 {strides = array<i32>} : memref<2x32xf32, #tpu.memory_space<vmem>>, vector<2x32xf32>,
    %354 = arith.truncf %347 : vector<2x32xf32> to vector<2x32xbf16>
    %355 = arith.index_cast %c4_i32 : i32 to index
    %c0_195 = arith.constant 0 : index
    %c0_196 = arith.constant 0 : index
    %356 = vector.load %arg12[%355, %c0_195, %c0_196] : memref<8x2x32xbf16, #tpu.memory_space<vmem>>, vector<1x2x32xbf16>
    %357 = vector.shape_cast %356 : vector<1x2x32xbf16> to vector<2x32xbf16>
    %358 = vector.shape_cast %354 : vector<2x32xbf16> to vector<1x2x32xbf16>
    tpu.vector_store %arg12[%355, %c0_195, %c0_196], %358 {strides = array<i32>} : memref<8x2x32xbf16, #tpu.memory_space<vmem>>, vector<1x2x32xbf16>,
    %359 = arith.truncf %349 : vector<2x32xf32> to vector<2x32xbf16>
    %360 = arith.index_cast %301 : i32 to index
    %c0_197 = arith.constant 0 : index
    %c0_198 = arith.constant 0 : index
    %361 = vector.load %arg13[%360, %c0_197, %c0_198] : memref<8x2x32xbf16, #tpu.memory_space<vmem>>, vector<1x2x32xbf16>
    %362 = vector.shape_cast %361 : vector<1x2x32xbf16> to vector<2x32xbf16>
    %363 = vector.shape_cast %359 : vector<2x32xbf16> to vector<1x2x32xbf16>
    tpu.vector_store %arg13[%360, %c0_197, %c0_198], %363 {strides = array<i32>} : memref<8x2x32xbf16, #tpu.memory_space<vmem>>, vector<1x2x32xbf16>,
    %c5_i32 = arith.constant 5 : i32
    %c7_i32_199 = arith.constant 7 : i32
    %364 = arith.subi %c7_i32_199, %c5_i32 : i32
    %365 = arith.index_cast %c5_i32 : i32 to index
    %c0_200 = arith.constant 0 : index
    %c0_201 = arith.constant 0 : index
    %366 = vector.load %arg14[%365, %c0_200, %c0_201] : memref<8x2x128xf32, #tpu.memory_space<vmem>>, vector<1x2x128xf32>
    %367 = vector.shape_cast %366 : vector<1x2x128xf32> to vector<2x128xf32>
    %c0_202 = arith.constant 0 : index
    %c0_203 = arith.constant 0 : index
    %368 = vector.load %arg16[%c0_202, %c0_203] : memref<2x32xf32, #tpu.memory_space<vmem>>, vector<2x32xf32>
    %369 = arith.truncf %368 : vector<2x32xf32> to vector<2x32xbf16>
    %cst_204 = arith.constant dense<0.000000e+00> : vector<2x128xf32>
    %370 = tpu.matmul %369, %46, %cst_204 {dimension_numbers = #tpu.dot_dimension_numbers<[1], [0], [0], [1], [0, 0, 1, 1], [], []>} : vector<2x32xbf16>, vector<32x128xbf16>, vector<2x128xf32> -> vector<2x128xf32>
    %371 = arith.addf %367, %370 : vector<2x128xf32>
    %372 = arith.index_cast %364 : i32 to index
    %c0_205 = arith.constant 0 : index
    %c0_206 = arith.constant 0 : index
    %373 = vector.load %arg15[%372, %c0_205, %c0_206] : memref<8x2x128xf32, #tpu.memory_space<vmem>>, vector<1x2x128xf32>
    %374 = vector.shape_cast %373 : vector<1x2x128xf32> to vector<2x128xf32>
    %c0_207 = arith.constant 0 : index
    %c0_208 = arith.constant 0 : index
    %375 = vector.load %arg18[%c0_207, %c0_208] : memref<2x32xf32, #tpu.memory_space<vmem>>, vector<2x32xf32>
    %376 = arith.truncf %375 : vector<2x32xf32> to vector<2x32xbf16>
    %cst_209 = arith.constant dense<0.000000e+00> : vector<2x128xf32>
    %377 = tpu.matmul %376, %48, %cst_209 {dimension_numbers = #tpu.dot_dimension_numbers<[1], [0], [0], [1], [0, 0, 1, 1], [], []>} : vector<2x32xbf16>, vector<32x128xbf16>, vector<2x128xf32> -> vector<2x128xf32>
    %378 = arith.addf %374, %377 : vector<2x128xf32>
    %379 = vector.extract_strided_slice %371 {offsets = [0, 0], sizes = [2, 96], strides = [1, 1]} : vector<2x128xf32> to vector<2x96xf32>
    %380 = arith.negf %379 : vector<2x96xf32>
    %381 = math.exp %380 : vector<2x96xf32>
    %cst_210 = arith.constant 1.000000e+00 : f32
    %382 = vector.broadcast %cst_210 : f32 to vector<2x96xf32>
    %383 = arith.addf %382, %381 : vector<2x96xf32>
    %384 = arith.divf %382, %383 : vector<2x96xf32>
    %385 = vector.extract_strided_slice %371 {offsets = [0, 96], sizes = [2, 32], strides = [1, 1]} : vector<2x128xf32> to vector<2x32xf32>
    %386 = math.tanh %385 : vector<2x32xf32>
    %387 = vector.extract_strided_slice %384 {offsets = [0, 0], sizes = [2, 32], strides = [1, 1]} : vector<2x96xf32> to vector<2x32xf32>
    %388 = vector.extract_strided_slice %384 {offsets = [0, 32], sizes = [2, 32], strides = [1, 1]} : vector<2x96xf32> to vector<2x32xf32>
    %389 = vector.extract_strided_slice %384 {offsets = [0, 64], sizes = [2, 32], strides = [1, 1]} : vector<2x96xf32> to vector<2x32xf32>
    %390 = vector.extract_strided_slice %378 {offsets = [0, 0], sizes = [2, 96], strides = [1, 1]} : vector<2x128xf32> to vector<2x96xf32>
    %391 = arith.negf %390 : vector<2x96xf32>
    %392 = math.exp %391 : vector<2x96xf32>
    %cst_211 = arith.constant 1.000000e+00 : f32
    %393 = vector.broadcast %cst_211 : f32 to vector<2x96xf32>
    %394 = arith.addf %393, %392 : vector<2x96xf32>
    %395 = arith.divf %393, %394 : vector<2x96xf32>
    %396 = vector.extract_strided_slice %378 {offsets = [0, 96], sizes = [2, 32], strides = [1, 1]} : vector<2x128xf32> to vector<2x32xf32>
    %397 = math.tanh %396 : vector<2x32xf32>
    %398 = vector.extract_strided_slice %395 {offsets = [0, 0], sizes = [2, 32], strides = [1, 1]} : vector<2x96xf32> to vector<2x32xf32>
    %399 = vector.extract_strided_slice %395 {offsets = [0, 32], sizes = [2, 32], strides = [1, 1]} : vector<2x96xf32> to vector<2x32xf32>
    %400 = vector.extract_strided_slice %395 {offsets = [0, 64], sizes = [2, 32], strides = [1, 1]} : vector<2x96xf32> to vector<2x32xf32>
    %c0_212 = arith.constant 0 : index
    %c0_213 = arith.constant 0 : index
    %401 = vector.load %arg17[%c0_212, %c0_213] : memref<2x32xf32, #tpu.memory_space<vmem>>, vector<2x32xf32>
    %402 = arith.mulf %388, %401 : vector<2x32xf32>
    %403 = arith.mulf %387, %386 : vector<2x32xf32>
    %404 = arith.addf %402, %403 : vector<2x32xf32>
    %c0_214 = arith.constant 0 : index
    %c0_215 = arith.constant 0 : index
    %405 = vector.load %arg19[%c0_214, %c0_215] : memref<2x32xf32, #tpu.memory_space<vmem>>, vector<2x32xf32>
    %406 = arith.mulf %399, %405 : vector<2x32xf32>
    %407 = arith.mulf %398, %397 : vector<2x32xf32>
    %408 = arith.addf %406, %407 : vector<2x32xf32>
    %409 = math.tanh %404 : vector<2x32xf32>
    %410 = arith.mulf %389, %409 : vector<2x32xf32>
    %411 = math.tanh %408 : vector<2x32xf32>
    %412 = arith.mulf %400, %411 : vector<2x32xf32>
    %c0_216 = arith.constant 0 : index
    %c0_217 = arith.constant 0 : index
    %413 = vector.load %arg17[%c0_216, %c0_217] : memref<2x32xf32, #tpu.memory_space<vmem>>, vector<2x32xf32>
    tpu.vector_store %arg17[%c0_216, %c0_217], %404 {strides = array<i32>} : memref<2x32xf32, #tpu.memory_space<vmem>>, vector<2x32xf32>,
    %c0_218 = arith.constant 0 : index
    %c0_219 = arith.constant 0 : index
    %414 = vector.load %arg16[%c0_218, %c0_219] : memref<2x32xf32, #tpu.memory_space<vmem>>, vector<2x32xf32>
    tpu.vector_store %arg16[%c0_218, %c0_219], %410 {strides = array<i32>} : memref<2x32xf32, #tpu.memory_space<vmem>>, vector<2x32xf32>,
    %c0_220 = arith.constant 0 : index
    %c0_221 = arith.constant 0 : index
    %415 = vector.load %arg19[%c0_220, %c0_221] : memref<2x32xf32, #tpu.memory_space<vmem>>, vector<2x32xf32>
    tpu.vector_store %arg19[%c0_220, %c0_221], %408 {strides = array<i32>} : memref<2x32xf32, #tpu.memory_space<vmem>>, vector<2x32xf32>,
    %c0_222 = arith.constant 0 : index
    %c0_223 = arith.constant 0 : index
    %416 = vector.load %arg18[%c0_222, %c0_223] : memref<2x32xf32, #tpu.memory_space<vmem>>, vector<2x32xf32>
    tpu.vector_store %arg18[%c0_222, %c0_223], %412 {strides = array<i32>} : memref<2x32xf32, #tpu.memory_space<vmem>>, vector<2x32xf32>,
    %417 = arith.truncf %410 : vector<2x32xf32> to vector<2x32xbf16>
    %418 = arith.index_cast %c5_i32 : i32 to index
    %c0_224 = arith.constant 0 : index
    %c0_225 = arith.constant 0 : index
    %419 = vector.load %arg12[%418, %c0_224, %c0_225] : memref<8x2x32xbf16, #tpu.memory_space<vmem>>, vector<1x2x32xbf16>
    %420 = vector.shape_cast %419 : vector<1x2x32xbf16> to vector<2x32xbf16>
    %421 = vector.shape_cast %417 : vector<2x32xbf16> to vector<1x2x32xbf16>
    tpu.vector_store %arg12[%418, %c0_224, %c0_225], %421 {strides = array<i32>} : memref<8x2x32xbf16, #tpu.memory_space<vmem>>, vector<1x2x32xbf16>,
    %422 = arith.truncf %412 : vector<2x32xf32> to vector<2x32xbf16>
    %423 = arith.index_cast %364 : i32 to index
    %c0_226 = arith.constant 0 : index
    %c0_227 = arith.constant 0 : index
    %424 = vector.load %arg13[%423, %c0_226, %c0_227] : memref<8x2x32xbf16, #tpu.memory_space<vmem>>, vector<1x2x32xbf16>
    %425 = vector.shape_cast %424 : vector<1x2x32xbf16> to vector<2x32xbf16>
    %426 = vector.shape_cast %422 : vector<2x32xbf16> to vector<1x2x32xbf16>
    tpu.vector_store %arg13[%423, %c0_226, %c0_227], %426 {strides = array<i32>} : memref<8x2x32xbf16, #tpu.memory_space<vmem>>, vector<1x2x32xbf16>,
    %c6_i32 = arith.constant 6 : i32
    %c7_i32_228 = arith.constant 7 : i32
    %427 = arith.subi %c7_i32_228, %c6_i32 : i32
    %428 = arith.index_cast %c6_i32 : i32 to index
    %c0_229 = arith.constant 0 : index
    %c0_230 = arith.constant 0 : index
    %429 = vector.load %arg14[%428, %c0_229, %c0_230] : memref<8x2x128xf32, #tpu.memory_space<vmem>>, vector<1x2x128xf32>
    %430 = vector.shape_cast %429 : vector<1x2x128xf32> to vector<2x128xf32>
    %c0_231 = arith.constant 0 : index
    %c0_232 = arith.constant 0 : index
    %431 = vector.load %arg16[%c0_231, %c0_232] : memref<2x32xf32, #tpu.memory_space<vmem>>, vector<2x32xf32>
    %432 = arith.truncf %431 : vector<2x32xf32> to vector<2x32xbf16>
    %cst_233 = arith.constant dense<0.000000e+00> : vector<2x128xf32>
    %433 = tpu.matmul %432, %46, %cst_233 {dimension_numbers = #tpu.dot_dimension_numbers<[1], [0], [0], [1], [0, 0, 1, 1], [], []>} : vector<2x32xbf16>, vector<32x128xbf16>, vector<2x128xf32> -> vector<2x128xf32>
    %434 = arith.addf %430, %433 : vector<2x128xf32>
    %435 = arith.index_cast %427 : i32 to index
    %c0_234 = arith.constant 0 : index
    %c0_235 = arith.constant 0 : index
    %436 = vector.load %arg15[%435, %c0_234, %c0_235] : memref<8x2x128xf32, #tpu.memory_space<vmem>>, vector<1x2x128xf32>
    %437 = vector.shape_cast %436 : vector<1x2x128xf32> to vector<2x128xf32>
    %c0_236 = arith.constant 0 : index
    %c0_237 = arith.constant 0 : index
    %438 = vector.load %arg18[%c0_236, %c0_237] : memref<2x32xf32, #tpu.memory_space<vmem>>, vector<2x32xf32>
    %439 = arith.truncf %438 : vector<2x32xf32> to vector<2x32xbf16>
    %cst_238 = arith.constant dense<0.000000e+00> : vector<2x128xf32>
    %440 = tpu.matmul %439, %48, %cst_238 {dimension_numbers = #tpu.dot_dimension_numbers<[1], [0], [0], [1], [0, 0, 1, 1], [], []>} : vector<2x32xbf16>, vector<32x128xbf16>, vector<2x128xf32> -> vector<2x128xf32>
    %441 = arith.addf %437, %440 : vector<2x128xf32>
    %442 = vector.extract_strided_slice %434 {offsets = [0, 0], sizes = [2, 96], strides = [1, 1]} : vector<2x128xf32> to vector<2x96xf32>
    %443 = arith.negf %442 : vector<2x96xf32>
    %444 = math.exp %443 : vector<2x96xf32>
    %cst_239 = arith.constant 1.000000e+00 : f32
    %445 = vector.broadcast %cst_239 : f32 to vector<2x96xf32>
    %446 = arith.addf %445, %444 : vector<2x96xf32>
    %447 = arith.divf %445, %446 : vector<2x96xf32>
    %448 = vector.extract_strided_slice %434 {offsets = [0, 96], sizes = [2, 32], strides = [1, 1]} : vector<2x128xf32> to vector<2x32xf32>
    %449 = math.tanh %448 : vector<2x32xf32>
    %450 = vector.extract_strided_slice %447 {offsets = [0, 0], sizes = [2, 32], strides = [1, 1]} : vector<2x96xf32> to vector<2x32xf32>
    %451 = vector.extract_strided_slice %447 {offsets = [0, 32], sizes = [2, 32], strides = [1, 1]} : vector<2x96xf32> to vector<2x32xf32>
    %452 = vector.extract_strided_slice %447 {offsets = [0, 64], sizes = [2, 32], strides = [1, 1]} : vector<2x96xf32> to vector<2x32xf32>
    %453 = vector.extract_strided_slice %441 {offsets = [0, 0], sizes = [2, 96], strides = [1, 1]} : vector<2x128xf32> to vector<2x96xf32>
    %454 = arith.negf %453 : vector<2x96xf32>
    %455 = math.exp %454 : vector<2x96xf32>
    %cst_240 = arith.constant 1.000000e+00 : f32
    %456 = vector.broadcast %cst_240 : f32 to vector<2x96xf32>
    %457 = arith.addf %456, %455 : vector<2x96xf32>
    %458 = arith.divf %456, %457 : vector<2x96xf32>
    %459 = vector.extract_strided_slice %441 {offsets = [0, 96], sizes = [2, 32], strides = [1, 1]} : vector<2x128xf32> to vector<2x32xf32>
    %460 = math.tanh %459 : vector<2x32xf32>
    %461 = vector.extract_strided_slice %458 {offsets = [0, 0], sizes = [2, 32], strides = [1, 1]} : vector<2x96xf32> to vector<2x32xf32>
    %462 = vector.extract_strided_slice %458 {offsets = [0, 32], sizes = [2, 32], strides = [1, 1]} : vector<2x96xf32> to vector<2x32xf32>
    %463 = vector.extract_strided_slice %458 {offsets = [0, 64], sizes = [2, 32], strides = [1, 1]} : vector<2x96xf32> to vector<2x32xf32>
    %c0_241 = arith.constant 0 : index
    %c0_242 = arith.constant 0 : index
    %464 = vector.load %arg17[%c0_241, %c0_242] : memref<2x32xf32, #tpu.memory_space<vmem>>, vector<2x32xf32>
    %465 = arith.mulf %451, %464 : vector<2x32xf32>
    %466 = arith.mulf %450, %449 : vector<2x32xf32>
    %467 = arith.addf %465, %466 : vector<2x32xf32>
    %c0_243 = arith.constant 0 : index
    %c0_244 = arith.constant 0 : index
    %468 = vector.load %arg19[%c0_243, %c0_244] : memref<2x32xf32, #tpu.memory_space<vmem>>, vector<2x32xf32>
    %469 = arith.mulf %462, %468 : vector<2x32xf32>
    %470 = arith.mulf %461, %460 : vector<2x32xf32>
    %471 = arith.addf %469, %470 : vector<2x32xf32>
    %472 = math.tanh %467 : vector<2x32xf32>
    %473 = arith.mulf %452, %472 : vector<2x32xf32>
    %474 = math.tanh %471 : vector<2x32xf32>
    %475 = arith.mulf %463, %474 : vector<2x32xf32>
    %c0_245 = arith.constant 0 : index
    %c0_246 = arith.constant 0 : index
    %476 = vector.load %arg17[%c0_245, %c0_246] : memref<2x32xf32, #tpu.memory_space<vmem>>, vector<2x32xf32>
    tpu.vector_store %arg17[%c0_245, %c0_246], %467 {strides = array<i32>} : memref<2x32xf32, #tpu.memory_space<vmem>>, vector<2x32xf32>,
    %c0_247 = arith.constant 0 : index
    %c0_248 = arith.constant 0 : index
    %477 = vector.load %arg16[%c0_247, %c0_248] : memref<2x32xf32, #tpu.memory_space<vmem>>, vector<2x32xf32>
    tpu.vector_store %arg16[%c0_247, %c0_248], %473 {strides = array<i32>} : memref<2x32xf32, #tpu.memory_space<vmem>>, vector<2x32xf32>,
    %c0_249 = arith.constant 0 : index
    %c0_250 = arith.constant 0 : index
    %478 = vector.load %arg19[%c0_249, %c0_250] : memref<2x32xf32, #tpu.memory_space<vmem>>, vector<2x32xf32>
    tpu.vector_store %arg19[%c0_249, %c0_250], %471 {strides = array<i32>} : memref<2x32xf32, #tpu.memory_space<vmem>>, vector<2x32xf32>,
    %c0_251 = arith.constant 0 : index
    %c0_252 = arith.constant 0 : index
    %479 = vector.load %arg18[%c0_251, %c0_252] : memref<2x32xf32, #tpu.memory_space<vmem>>, vector<2x32xf32>
    tpu.vector_store %arg18[%c0_251, %c0_252], %475 {strides = array<i32>} : memref<2x32xf32, #tpu.memory_space<vmem>>, vector<2x32xf32>,
    %480 = arith.truncf %473 : vector<2x32xf32> to vector<2x32xbf16>
    %481 = arith.index_cast %c6_i32 : i32 to index
    %c0_253 = arith.constant 0 : index
    %c0_254 = arith.constant 0 : index
    %482 = vector.load %arg12[%481, %c0_253, %c0_254] : memref<8x2x32xbf16, #tpu.memory_space<vmem>>, vector<1x2x32xbf16>
    %483 = vector.shape_cast %482 : vector<1x2x32xbf16> to vector<2x32xbf16>
    %484 = vector.shape_cast %480 : vector<2x32xbf16> to vector<1x2x32xbf16>
    tpu.vector_store %arg12[%481, %c0_253, %c0_254], %484 {strides = array<i32>} : memref<8x2x32xbf16, #tpu.memory_space<vmem>>, vector<1x2x32xbf16>,
    %485 = arith.truncf %475 : vector<2x32xf32> to vector<2x32xbf16>
    %486 = arith.index_cast %427 : i32 to index
    %c0_255 = arith.constant 0 : index
    %c0_256 = arith.constant 0 : index
    %487 = vector.load %arg13[%486, %c0_255, %c0_256] : memref<8x2x32xbf16, #tpu.memory_space<vmem>>, vector<1x2x32xbf16>
    %488 = vector.shape_cast %487 : vector<1x2x32xbf16> to vector<2x32xbf16>
    %489 = vector.shape_cast %485 : vector<2x32xbf16> to vector<1x2x32xbf16>
    tpu.vector_store %arg13[%486, %c0_255, %c0_256], %489 {strides = array<i32>} : memref<8x2x32xbf16, #tpu.memory_space<vmem>>, vector<1x2x32xbf16>,
    %c7_i32_257 = arith.constant 7 : i32
    %c7_i32_258 = arith.constant 7 : i32
    %490 = arith.subi %c7_i32_258, %c7_i32_257 : i32
    %491 = arith.index_cast %c7_i32_257 : i32 to index
    %c0_259 = arith.constant 0 : index
    %c0_260 = arith.constant 0 : index
    %492 = vector.load %arg14[%491, %c0_259, %c0_260] : memref<8x2x128xf32, #tpu.memory_space<vmem>>, vector<1x2x128xf32>
    %493 = vector.shape_cast %492 : vector<1x2x128xf32> to vector<2x128xf32>
    %c0_261 = arith.constant 0 : index
    %c0_262 = arith.constant 0 : index
    %494 = vector.load %arg16[%c0_261, %c0_262] : memref<2x32xf32, #tpu.memory_space<vmem>>, vector<2x32xf32>
    %495 = arith.truncf %494 : vector<2x32xf32> to vector<2x32xbf16>
    %cst_263 = arith.constant dense<0.000000e+00> : vector<2x128xf32>
    %496 = tpu.matmul %495, %46, %cst_263 {dimension_numbers = #tpu.dot_dimension_numbers<[1], [0], [0], [1], [0, 0, 1, 1], [], []>} : vector<2x32xbf16>, vector<32x128xbf16>, vector<2x128xf32> -> vector<2x128xf32>
    %497 = arith.addf %493, %496 : vector<2x128xf32>
    %498 = arith.index_cast %490 : i32 to index
    %c0_264 = arith.constant 0 : index
    %c0_265 = arith.constant 0 : index
    %499 = vector.load %arg15[%498, %c0_264, %c0_265] : memref<8x2x128xf32, #tpu.memory_space<vmem>>, vector<1x2x128xf32>
    %500 = vector.shape_cast %499 : vector<1x2x128xf32> to vector<2x128xf32>
    %c0_266 = arith.constant 0 : index
    %c0_267 = arith.constant 0 : index
    %501 = vector.load %arg18[%c0_266, %c0_267] : memref<2x32xf32, #tpu.memory_space<vmem>>, vector<2x32xf32>
    %502 = arith.truncf %501 : vector<2x32xf32> to vector<2x32xbf16>
    %cst_268 = arith.constant dense<0.000000e+00> : vector<2x128xf32>
    %503 = tpu.matmul %502, %48, %cst_268 {dimension_numbers = #tpu.dot_dimension_numbers<[1], [0], [0], [1], [0, 0, 1, 1], [], []>} : vector<2x32xbf16>, vector<32x128xbf16>, vector<2x128xf32> -> vector<2x128xf32>
    %504 = arith.addf %500, %503 : vector<2x128xf32>
    %505 = vector.extract_strided_slice %497 {offsets = [0, 0], sizes = [2, 96], strides = [1, 1]} : vector<2x128xf32> to vector<2x96xf32>
    %506 = arith.negf %505 : vector<2x96xf32>
    %507 = math.exp %506 : vector<2x96xf32>
    %cst_269 = arith.constant 1.000000e+00 : f32
    %508 = vector.broadcast %cst_269 : f32 to vector<2x96xf32>
    %509 = arith.addf %508, %507 : vector<2x96xf32>
    %510 = arith.divf %508, %509 : vector<2x96xf32>
    %511 = vector.extract_strided_slice %497 {offsets = [0, 96], sizes = [2, 32], strides = [1, 1]} : vector<2x128xf32> to vector<2x32xf32>
    %512 = math.tanh %511 : vector<2x32xf32>
    %513 = vector.extract_strided_slice %510 {offsets = [0, 0], sizes = [2, 32], strides = [1, 1]} : vector<2x96xf32> to vector<2x32xf32>
    %514 = vector.extract_strided_slice %510 {offsets = [0, 32], sizes = [2, 32], strides = [1, 1]} : vector<2x96xf32> to vector<2x32xf32>
    %515 = vector.extract_strided_slice %510 {offsets = [0, 64], sizes = [2, 32], strides = [1, 1]} : vector<2x96xf32> to vector<2x32xf32>
    %516 = vector.extract_strided_slice %504 {offsets = [0, 0], sizes = [2, 96], strides = [1, 1]} : vector<2x128xf32> to vector<2x96xf32>
    %517 = arith.negf %516 : vector<2x96xf32>
    %518 = math.exp %517 : vector<2x96xf32>
    %cst_270 = arith.constant 1.000000e+00 : f32
    %519 = vector.broadcast %cst_270 : f32 to vector<2x96xf32>
    %520 = arith.addf %519, %518 : vector<2x96xf32>
    %521 = arith.divf %519, %520 : vector<2x96xf32>
    %522 = vector.extract_strided_slice %504 {offsets = [0, 96], sizes = [2, 32], strides = [1, 1]} : vector<2x128xf32> to vector<2x32xf32>
    %523 = math.tanh %522 : vector<2x32xf32>
    %524 = vector.extract_strided_slice %521 {offsets = [0, 0], sizes = [2, 32], strides = [1, 1]} : vector<2x96xf32> to vector<2x32xf32>
    %525 = vector.extract_strided_slice %521 {offsets = [0, 32], sizes = [2, 32], strides = [1, 1]} : vector<2x96xf32> to vector<2x32xf32>
    %526 = vector.extract_strided_slice %521 {offsets = [0, 64], sizes = [2, 32], strides = [1, 1]} : vector<2x96xf32> to vector<2x32xf32>
    %c0_271 = arith.constant 0 : index
    %c0_272 = arith.constant 0 : index
    %527 = vector.load %arg17[%c0_271, %c0_272] : memref<2x32xf32, #tpu.memory_space<vmem>>, vector<2x32xf32>
    %528 = arith.mulf %514, %527 : vector<2x32xf32>
    %529 = arith.mulf %513, %512 : vector<2x32xf32>
    %530 = arith.addf %528, %529 : vector<2x32xf32>
    %c0_273 = arith.constant 0 : index
    %c0_274 = arith.constant 0 : index
    %531 = vector.load %arg19[%c0_273, %c0_274] : memref<2x32xf32, #tpu.memory_space<vmem>>, vector<2x32xf32>
    %532 = arith.mulf %525, %531 : vector<2x32xf32>
    %533 = arith.mulf %524, %523 : vector<2x32xf32>
    %534 = arith.addf %532, %533 : vector<2x32xf32>
    %535 = math.tanh %530 : vector<2x32xf32>
    %536 = arith.mulf %515, %535 : vector<2x32xf32>
    %537 = math.tanh %534 : vector<2x32xf32>
    %538 = arith.mulf %526, %537 : vector<2x32xf32>
    %c0_275 = arith.constant 0 : index
    %c0_276 = arith.constant 0 : index
    %539 = vector.load %arg17[%c0_275, %c0_276] : memref<2x32xf32, #tpu.memory_space<vmem>>, vector<2x32xf32>
    tpu.vector_store %arg17[%c0_275, %c0_276], %530 {strides = array<i32>} : memref<2x32xf32, #tpu.memory_space<vmem>>, vector<2x32xf32>,
    %c0_277 = arith.constant 0 : index
    %c0_278 = arith.constant 0 : index
    %540 = vector.load %arg16[%c0_277, %c0_278] : memref<2x32xf32, #tpu.memory_space<vmem>>, vector<2x32xf32>
    tpu.vector_store %arg16[%c0_277, %c0_278], %536 {strides = array<i32>} : memref<2x32xf32, #tpu.memory_space<vmem>>, vector<2x32xf32>,
    %c0_279 = arith.constant 0 : index
    %c0_280 = arith.constant 0 : index
    %541 = vector.load %arg19[%c0_279, %c0_280] : memref<2x32xf32, #tpu.memory_space<vmem>>, vector<2x32xf32>
    tpu.vector_store %arg19[%c0_279, %c0_280], %534 {strides = array<i32>} : memref<2x32xf32, #tpu.memory_space<vmem>>, vector<2x32xf32>,
    %c0_281 = arith.constant 0 : index
    %c0_282 = arith.constant 0 : index
    %542 = vector.load %arg18[%c0_281, %c0_282] : memref<2x32xf32, #tpu.memory_space<vmem>>, vector<2x32xf32>
    tpu.vector_store %arg18[%c0_281, %c0_282], %538 {strides = array<i32>} : memref<2x32xf32, #tpu.memory_space<vmem>>, vector<2x32xf32>,
    %543 = arith.truncf %536 : vector<2x32xf32> to vector<2x32xbf16>
    %544 = arith.index_cast %c7_i32_257 : i32 to index
    %c0_283 = arith.constant 0 : index
    %c0_284 = arith.constant 0 : index
    %545 = vector.load %arg12[%544, %c0_283, %c0_284] : memref<8x2x32xbf16, #tpu.memory_space<vmem>>, vector<1x2x32xbf16>
    %546 = vector.shape_cast %545 : vector<1x2x32xbf16> to vector<2x32xbf16>
    %547 = vector.shape_cast %543 : vector<2x32xbf16> to vector<1x2x32xbf16>
    tpu.vector_store %arg12[%544, %c0_283, %c0_284], %547 {strides = array<i32>} : memref<8x2x32xbf16, #tpu.memory_space<vmem>>, vector<1x2x32xbf16>,
    %548 = arith.truncf %538 : vector<2x32xf32> to vector<2x32xbf16>
    %549 = arith.index_cast %490 : i32 to index
    %c0_285 = arith.constant 0 : index
    %c0_286 = arith.constant 0 : index
    %550 = vector.load %arg13[%549, %c0_285, %c0_286] : memref<8x2x32xbf16, #tpu.memory_space<vmem>>, vector<1x2x32xbf16>
    %551 = vector.shape_cast %550 : vector<1x2x32xbf16> to vector<2x32xbf16>
    %552 = vector.shape_cast %548 : vector<2x32xbf16> to vector<1x2x32xbf16>
    tpu.vector_store %arg13[%549, %c0_285, %c0_286], %552 {strides = array<i32>} : memref<8x2x32xbf16, #tpu.memory_space<vmem>>, vector<1x2x32xbf16>,
    %c8_i32 = arith.constant 8 : i32
    return
  }
  func.func @transform_0(%arg0: i32) -> (i32, i32, i32) {
    %c0_i32 = arith.constant 0 : i32
    %c0_i32_0 = arith.constant 0 : i32
    %c0_i32_1 = arith.constant 0 : i32
    return %arg0, %c0_i32, %c0_i32_0 : i32, i32, i32
  }
  func.func @transform_1(%arg0: i32) -> (i32, i32, i32) {
    %c0_i32 = arith.constant 0 : i32
    %c0_i32_0 = arith.constant 0 : i32
    %c0_i32_1 = arith.constant 0 : i32
    return %arg0, %c0_i32, %c0_i32_0 : i32, i32, i32
  }
  func.func @transform_2(%arg0: i32) -> (i32, i32, i32) {
    %c0_i32 = arith.constant 0 : i32
    %c0_i32_0 = arith.constant 0 : i32
    %c0_i32_1 = arith.constant 0 : i32
    return %arg0, %c0_i32, %c0_i32_0 : i32, i32, i32
  }
  func.func @transform_3(%arg0: i32) -> (i32, i32, i32) {
    %c0_i32 = arith.constant 0 : i32
    %c0_i32_0 = arith.constant 0 : i32
    %c0_i32_1 = arith.constant 0 : i32
    return %arg0, %c0_i32, %c0_i32_0 : i32, i32, i32
  }
  func.func @transform_4(%arg0: i32) -> (i32, i32, i32) {
    %c0_i32 = arith.constant 0 : i32
    %0 = arith.subi %c0_i32, %arg0 : i32
    %c0_i32_0 = arith.constant 0 : i32
    %c0_i32_1 = arith.constant 0 : i32
    %c0_i32_2 = arith.constant 0 : i32
    return %0, %c0_i32_0, %c0_i32_1 : i32, i32, i32
  }
  func.func @transform_5(%arg0: i32) -> (i32, i32, i32) {
    %c0_i32 = arith.constant 0 : i32
    %0 = arith.subi %c0_i32, %arg0 : i32
    %c0_i32_0 = arith.constant 0 : i32
    %c0_i32_1 = arith.constant 0 : i32
    %c0_i32_2 = arith.constant 0 : i32
    return %0, %c0_i32_0, %c0_i32_1 : i32, i32, i32
  }
  func.func @transform_6(%arg0: i32) -> (i32, i32, i32) {
    %c0_i32 = arith.constant 0 : i32
    %0 = arith.subi %c0_i32, %arg0 : i32
    %c0_i32_0 = arith.constant 0 : i32
    %c0_i32_1 = arith.constant 0 : i32
    %c0_i32_2 = arith.constant 0 : i32
    return %0, %c0_i32_0, %c0_i32_1 : i32, i32, i32
  }
  func.func @transform_7(%arg0: i32) -> (i32, i32, i32) {
    %c0_i32 = arith.constant 0 : i32
    %0 = arith.subi %c0_i32, %arg0 : i32
    %c0_i32_0 = arith.constant 0 : i32
    %c0_i32_1 = arith.constant 0 : i32
    %c0_i32_2 = arith.constant 0 : i32
    return %0, %c0_i32_0, %c0_i32_1 : i32, i32, i32
  }
  func.func @transform_8(%arg0: i32) -> (i32, i32, i32) {
    %c0_i32 = arith.constant 0 : i32
    %c0_i32_0 = arith.constant 0 : i32
    %c0_i32_1 = arith.constant 0 : i32
    %c0_i32_2 = arith.constant 0 : i32
    return %c0_i32, %c0_i32_0, %c0_i32_1 : i32, i32, i32
  }
  func.func @transform_9(%arg0: i32) -> (i32, i32, i32) {
    %c0_i32 = arith.constant 0 : i32
    %c0_i32_0 = arith.constant 0 : i32
    %c0_i32_1 = arith.constant 0 : i32
    %c0_i32_2 = arith.constant 0 : i32
    return %c0_i32, %c0_i32_0, %c0_i32_1 : i32, i32, i32
  }
  func.func @transform_10(%arg0: i32) -> (i32, i32, i32) {
    %c0_i32 = arith.constant 0 : i32
    %c0_i32_0 = arith.constant 0 : i32
    %c0_i32_1 = arith.constant 0 : i32
    %c0_i32_2 = arith.constant 0 : i32
    return %c0_i32, %c0_i32_0, %c0_i32_1 : i32, i32, i32
  }
  func.func @transform_11(%arg0: i32) -> (i32, i32, i32) {
    %c0_i32 = arith.constant 0 : i32
    %c0_i32_0 = arith.constant 0 : i32
    %c0_i32_1 = arith.constant 0 : i32
    return %arg0, %c0_i32, %c0_i32_0 : i32, i32, i32
  }
  func.func @transform_12(%arg0: i32) -> (i32, i32, i32) {
    %c0_i32 = arith.constant 0 : i32
    %0 = arith.subi %c0_i32, %arg0 : i32
    %c0_i32_0 = arith.constant 0 : i32
    %c0_i32_1 = arith.constant 0 : i32
    %c0_i32_2 = arith.constant 0 : i32
    return %0, %c0_i32_0, %c0_i32_1 : i32, i32, i32
  }
}

</mosaic_0001>

<bundles_post_ra>
// kernel: tpu_custom_call.1
= control target key start
LH: loop header
LB: loop body
LE: loop exit
PB: predicated region body
PF: predicated region fallthrough
CT: control target
= control target key end

     0   :  { %18 = vsyncpa [#allocation9], 0  ;;  %s3187_s0 = inlined_call_operand.hbm [shape: bf16[8,2,32], index: 0, kind: input, shape index: {}]   ;;  %s3188_s1 = inlined_call_operand.hbm [shape: bf16[8,2,32], index: 1, kind: input, shape index: {}]   ;;  %s3189_s2 = inlined_call_operand.hbm [shape: bf16[8,2,32], index: 2, kind: input, shape index: {}]   ;;  %s3190_s3 = inlined_call_operand.hbm [shape: bf16[8,2,32], index: 3, kind: input, shape index: {}]   ;;  %s3191_s4 = inlined_call_operand.hbm [shape: bf16[8,2,32], index: 4, kind: input, shape index: {}]   ;;  %s3192_s5 = inlined_call_operand.hbm [shape: bf16[8,2,32], index: 5, kind: input, shape index: {}]   ;;  %s3193_s6 = inlined_call_operand.hbm [shape: bf16[8,2,32], index: 6, kind: input, shape index: {}]   ;;  %s3194_s7 = inlined_call_operand.hbm [shape: bf16[8,2,32], index: 7, kind: input, shape index: {}]   ;;  %s3195_s8 = inlined_call_operand.hbm [shape: bf16[4,32,128], index: 8, kind: input, shape index: {}]   ;;  %s3196_s9 = inlined_call_operand.hbm [shape: bf16[2,32,128], index: 9, kind: input, shape index: {}]   ;;  %s3197_s10 = inlined_call_operand.vmem [shape: f32[2,1,128], index: 10, kind: input, shape index: {}]   ;;  %s3198_s11 = inlined_call_operand.hbm [shape: bf16[8,2,32], index: 11, kind: output, shape index: {0}]   ;;  %s3199_s12 = inlined_call_operand.hbm [shape: bf16[8,2,32], index: 12, kind: output, shape index: {1}]  }
   0x1   :  { %19 = vsyncpa [#allocation12], 0 }
   0x2   :  { %20 = vsyncpa [#allocation15], 0 }
   0x3   :  { %21 = vsyncpa [#allocation18], 0 }
   0x4   :  { %22 = vsyncpa [#allocation21], 0 }
   0x5   :  { %23 = vsyncpa [#allocation24], 0 }
   0x6   :  { %24 = vsyncpa [#allocation10], 0 }
   0x7   :  { %25 = vsyncpa [#allocation27], 0  ;;  %s43_s23 = sshll.u32 %s3188_s1, 4  ;;  %s2706_s24 = smov [#allocation11]   ;;  %s44_s23 = int_to_ptr.hbm [resolvable:$true] %s43_s23 }
   0x8   :  { %s45_s25 = sshll.u32 %s2706_s24, 4  ;;  %s69_s28 = sshll.u32 %s3190_s3, 4  ;;  %s46_s25 = int_to_ptr.vmem [resolvable:$true] %s45_s25  ;;  %s70_s28 = int_to_ptr.hbm [resolvable:$true] %s69_s28 }
   0x9   :  { %s2707_s29 = smov 16   ;;  %s2708_s30 = smov 1  }
   0xa   :  { %51 = dma.hbm_to_vmem [thread:$0]  %s44_s23, 128, %s46_s25, [#allocation12], %s2707_s29, %s2707_s29, %s2708_s30  }
   0xb   :  { %s2709_s13 = smov [#allocation14]   ;;  %s101_s1 = sshll.u32 %s3192_s5, 4  ;;  %s102_s1 = int_to_ptr.hbm [resolvable:$true] %s101_s1 }
   0xc   :  { %s71_s14 = sshll.u32 %s2709_s13, 4  ;;  %s133_s18 = sshll.u32 %s3194_s7, 4  ;;  %s72_s14 = int_to_ptr.vmem [resolvable:$true] %s71_s14  ;;  %s134_s18 = int_to_ptr.hbm [resolvable:$true] %s133_s18 }
   0xd   :  { %77 = dma.hbm_to_vmem [thread:$0]  %s70_s28, 128, %s72_s14, [#allocation15], %s2707_s29, %s2707_s29, %s2708_s30  }
   0xe   :  { %s2710_s19 = smov [#allocation17]   ;;  %s2711_s21 = smov [#allocation20]  }
   0xf   :  { %s103_s20 = sshll.u32 %s2710_s19, 4  ;;  %s135_s5 = sshll.u32 %s2711_s21, 4  ;;  %s104_s20 = int_to_ptr.vmem [resolvable:$true] %s103_s20  ;;  %s136_s5 = int_to_ptr.vmem [resolvable:$true] %s135_s5 }
  0x10   :  { %109 = dma.hbm_to_vmem [thread:$0]  %s102_s1, 128, %s104_s20, [#allocation18], %s2707_s29, %s2707_s29, %s2708_s30  }
  0x11   :  { %s30_s24 = sshll.u32 %s3187_s0, 4  ;;  %s56_s26 = sshll.u32 %s3189_s2, 4  ;;  %s31_s24 = int_to_ptr.hbm [resolvable:$true] %s30_s24  ;;  %s57_s26 = int_to_ptr.hbm [resolvable:$true] %s56_s26 }
  0x12   :  { %141 = dma.hbm_to_vmem [thread:$0]  %s134_s18, 128, %s136_s5, [#allocation21], %s2707_s29, %s2707_s29, %s2708_s30  }
  0x13   :  { %s2712_s27 = smov [#allocation8]   ;;  %s2713_s13 = smov [#allocation13]  }
  0x14   :  { %s32_s28 = sshll.u32 %s2712_s27, 4  ;;  %s58_s0 = sshll.u32 %s2713_s13, 4  ;;  %s33_s28 = int_to_ptr.vmem [resolvable:$true] %s32_s28  ;;  %s59_s0 = int_to_ptr.vmem [resolvable:$true] %s58_s0 }
  0x15   :  { %38 = dma.hbm_to_vmem [thread:$0]  %s31_s24, 128, %s33_s28, [#allocation9], %s2707_s29, %s2707_s29, %s2708_s30  }
  0x16   :  { %s85_s16 = sshll.u32 %s3191_s4, 4  ;;  %s117_s3 = sshll.u32 %s3193_s6, 4  ;;  %s86_s16 = int_to_ptr.hbm [resolvable:$true] %s85_s16  ;;  %s118_s3 = int_to_ptr.hbm [resolvable:$true] %s117_s3 }
  0x17   :  { %64 = dma.hbm_to_vmem [thread:$0]  %s57_s26, 128, %s59_s0, [#allocation12], %s2707_s29, %s2707_s29, %s2708_s30  }
  0x18   :  { %s2714_s17 = smov [#allocation16]   ;;  %s2715_s19 = smov [#allocation19]  }
  0x19   :  { %s87_s18 = sshll.u32 %s2714_s17, 4  ;;  %s119_s4 = sshll.u32 %s2715_s19, 4  ;;  %s88_s18 = int_to_ptr.vmem [resolvable:$true] %s87_s18  ;;  %s120_s4 = int_to_ptr.vmem [resolvable:$true] %s119_s4 }
  0x1a   :  { %93 = dma.hbm_to_vmem [thread:$0]  %s86_s16, 128, %s88_s18, [#allocation15], %s2707_s29, %s2707_s29, %s2708_s30  }
  0x1b   :  { %s146_s5 = sshll.u32 %s3195_s8, 4  ;;  %s2716_s6 = smov [#allocation22]   ;;  %s147_s5 = int_to_ptr.hbm [resolvable:$true] %s146_s5 }
  0x1c   :  { %125 = dma.hbm_to_vmem [thread:$0]  %s118_s3, 128, %s120_s4, [#allocation18], %s2707_s29, %s2707_s29, %s2708_s30  }
  0x1d   :  { %s148_s22 = sshll.u32 %s2716_s6, 4  ;;  %s159_s7 = sshll.u32 %s3196_s9, 4  ;;  %s149_s22 = int_to_ptr.vmem [resolvable:$true] %s148_s22  ;;  %s160_s7 = int_to_ptr.hbm [resolvable:$true] %s159_s7 }
  0x1e   :  { %s2717_s25 = smov 64   ;;  %s2718_s26 = smov 4  }
  0x1f   :  { %154 = dma.hbm_to_vmem [thread:$0]  %s147_s5, 1024, %s149_s22, [#allocation21], %s2717_s25, %s2717_s25, %s2718_s26  }
  0x20   :  { %s2719_s8 = smov [#allocation23]  }
  0x21   :  { %s161_s27 = sshll.u32 %s2719_s8, 4  ;;  %s162_s27 = int_to_ptr.vmem [resolvable:$true] %s161_s27 }
  0x22   :  { %167 = dma.hbm_to_vmem [thread:$0]  %s160_s7, 512, %s162_s27, [#allocation24], %s2717_s25, %s2717_s25, %s2718_s26  }
  0x23   :  { %2690 = dma.done.wait [#allocation9], 128  }
  0x24   :  { %2691 = vsyncadd [#allocation9], 4294967168 }
  0x25   :  { %2692 = dma.done.wait [#allocation12], 256  }
  0x26   :  { %2693 = vsyncadd [#allocation12], 4294967040 }
  0x27   :  { %2694 = dma.done.wait [#allocation15], 256  }
  0x28   :  { %2695 = vsyncadd [#allocation15], 4294967040 }
  0x29   :  { %2696 = dma.done.wait [#allocation18], 256  }
  0x2a   :  { %2697 = vsyncadd [#allocation18], 4294967040 }
  0x2b   :  { %2698 = dma.done.wait [#allocation21], 1152  }
  0x2c   :  { %2699 = vsyncadd [#allocation21], 4294966144 }
  0x2d   :  { %2700 = dma.done.wait [#allocation24], 512  }
  0x2e   :  { %2701 = vsyncadd [#allocation24], 4294966784  ;;  %v2242_v0 = vld [vmem:[#allocation22 + $0x18] sm:$0xff]  ;;  %v2241_v1 = vld [vmem:[#allocation22 + $0x10] sm:$0xff]  ;;  %vm371_vm0 = vcmask 261120   ;;  %vm225_vm1 = vcmask 254976  }
  0x2f   :  { %v2240_v2 = vld [vmem:[#allocation22 + $0x8] sm:$0xff]  ;;  %380 = vmatpush.bf16.msra.mxu0 %v2242_v0  ;;  %v286_v12 = vld [vmem:[#allocation14] sm:$0x1]  ;;  %v287_v16 = vld [vmem:[#allocation14 + $0x1] sm:$0x1]  ;;  %s2721_s9 = smov 32  }
  0x30   :  { %v278_v3 = vld [vmem:[#allocation11] sm:$0x1]  ;;  %v279_v4 = vld [vmem:[#allocation11 + $0x1] sm:$0x1]  ;;  %v280_v5 = vld [vmem:[#allocation11 + $0x2] sm:$0x1]  ;;  %432 = vmatpush.bf16.msra.mxu1 %v2240_v2  ;;  %v302_v22 = vunpack.c.l.bf16 %v286_v12  ;;  %v303_v27 = vunpack.c.l.bf16 %v287_v16 }
  0x31   :  { %v281_v6 = vld [vmem:[#allocation11 + $0x3] sm:$0x1]  ;;  %v282_v7 = vld [vmem:[#allocation11 + $0x4] sm:$0x1]  ;;  %v283_v8 = vld [vmem:[#allocation11 + $0x5] sm:$0x1]  ;;  %v294_v9 = vunpack.c.l.bf16 %v278_v3  ;;  %v295_v13 = vunpack.c.l.bf16 %v279_v4  ;;  %v296_v14 = vunpack.c.l.bf16 %v280_v5 }
  0x32   :  { %v284_v10 = vld [vmem:[#allocation11 + $0x6] sm:$0x1]  ;;  %v285_v11 = vld [vmem:[#allocation11 + $0x7] sm:$0x1]  ;;  %v297_v15 = vunpack.c.l.bf16 %v281_v6  ;;  %v288_v17 = vld [vmem:[#allocation14 + $0x2] sm:$0x1]  ;;  %v298_v19 = vunpack.c.l.bf16 %v282_v7  ;;  %v299_v20 = vunpack.c.l.bf16 %v283_v8 }
  0x33   :  { %v289_v18 = vld [vmem:[#allocation14 + $0x3] sm:$0x1]  ;;  %v300_v21 = vunpack.c.l.bf16 %v284_v10  ;;  %v290_v23 = vld [vmem:[#allocation14 + $0x4] sm:$0x1]  ;;  %v291_v24 = vld [vmem:[#allocation14 + $0x5] sm:$0x1]  ;;  %v301_v26 = vunpack.c.l.bf16 %v285_v11  ;;  %v304_v28 = vunpack.c.l.bf16 %v288_v17  ;;  %381 = vmatpush.bf16.msra.mxu0 %v2241_v1  ;;  %v310_v34 = vadd.f32 %v302_v22, %v294_v9 }
  0x34   :  { %v292_v25 = vld [vmem:[#allocation14 + $0x6] sm:$0x1]  ;;  %v305_v29 = vunpack.c.l.bf16 %v289_v18  ;;  %v293_v30 = vld [vmem:[#allocation14 + $0x7] sm:$0x1]  ;;  %v306_v31 = vunpack.c.l.bf16 %v290_v23  ;;  %v307_v32 = vunpack.c.l.bf16 %v291_v24  ;;  %v2239_v35 = vld [vmem:[#allocation22] sm:$0xff]  ;;  %v311_v37 = vadd.f32 %v303_v27, %v295_v13  ;;  %s2723_s15 = smov [#allocation25]  }
  0x35   :  { %v308_v33 = vunpack.c.l.bf16 %v292_v25  ;;  %v309_v36 = vunpack.c.l.bf16 %v293_v30  ;;  %v312_v38 = vadd.f32 %v304_v28, %v296_v14  ;;  %v318_v43 = vpack.c.bf16 %v310_v34, %v310_v34  ;;  %433 = vmatpush.bf16.msra.mxu1 %v2239_v35  ;;  %v230_v48 = vld [vmem:[#allocation8] sm:$0x1]  ;;  %v231_v49 = vld [vmem:[#allocation8 + $0x1] sm:$0x1]  ;;  %v232_v51 = vld [vmem:[#allocation8 + $0x2] sm:$0x1] }
  0x36   :  { %v313_v39 = vadd.f32 %v305_v29, %v297_v15  ;;  %v314_v40 = vadd.f32 %v306_v31, %v298_v19  ;;  %v315_v41 = vadd.f32 %v307_v32, %v299_v20  ;;  %v319_v45 = vpack.c.bf16 %v311_v37, %v311_v37  ;;  %v238_v52 = vld [vmem:[#allocation13] sm:$0x1]  ;;  %v233_v54 = vld [vmem:[#allocation8 + $0x3] sm:$0x1]  ;;  %v239_v55 = vld [vmem:[#allocation13 + $0x1] sm:$0x1] }
  0x37   :  { %v316_v42 = vadd.f32 %v308_v33, %v300_v21  ;;  %v317_v44 = vadd.f32 %v309_v36, %v301_v26  ;;  %v320_v46 = vpack.c.bf16 %v312_v38, %v312_v38  ;;  %336 = vst [vmem:[#allocation1] ss:$9 sm:$0xff] %v318_v43  ;;  %v234_v57 = vld [vmem:[#allocation8 + $0x4] sm:$0x1]  ;;  %v240_v58 = vld [vmem:[#allocation13 + $0x2] sm:$0x1]  ;;  %v246_v62 = vunpack.c.l.bf16 %v230_v48 }
  0x38   :  { %v321_v47 = vpack.c.bf16 %v313_v39, %v313_v39  ;;  %v322_v50 = vpack.c.bf16 %v314_v40, %v314_v40  ;;  %v323_v53 = vpack.c.bf16 %v315_v41, %v315_v41  ;;  %339 = vst [vmem:[#allocation1 + $0x1] ss:$9 sm:$0xff] %v319_v45  ;;  %v235_v60 = vld [vmem:[#allocation8 + $0x5] sm:$0x1]  ;;  %v241_v61 = vld [vmem:[#allocation13 + $0x3] sm:$0x1]  ;;  %v254_v63 = vunpack.c.l.bf16 %v238_v52 }
  0x39   :  { %v324_v56 = vpack.c.bf16 %v316_v42, %v316_v42  ;;  %342 = vst [vmem:[#allocation1 + $0x2] ss:$9 sm:$0xff] %v320_v46  ;;  %v325_v59 = vpack.c.bf16 %v317_v44, %v317_v44  ;;  %v242_v0 = vld [vmem:[#allocation13 + $0x4] sm:$0x1]  ;;  %v247_v1 = vunpack.c.l.bf16 %v231_v49  ;;  %v255_v2 = vunpack.c.l.bf16 %v239_v55  ;;  %v2246_v3 = vld [vmem:[#allocation22 + $0x38] sm:$0xff]  ;;  %v2848_v7 = vld [vmem:[#allocation23 + $0x8] sm:$0xff] }
  0x3a   :  { %345 = vst [vmem:[#allocation1 + $0x3] ss:$9 sm:$0xff] %v321_v47  ;;  %v243_v4 = vld [vmem:[#allocation13 + $0x5] sm:$0x1]  ;;  %v248_v5 = vunpack.c.l.bf16 %v232_v51  ;;  %v256_v6 = vunpack.c.l.bf16 %v240_v58  ;;  %v236_v8 = vld [vmem:[#allocation8 + $0x6] sm:$0x1]  ;;  %v249_v10 = vunpack.c.l.bf16 %v233_v54  ;;  %v257_v11 = vunpack.c.l.bf16 %v241_v61  ;;  %618 = vmatpush.bf16.msra.mxu2 %v2246_v3  ;;  %740 = vmatpush.bf16.msrb.mxu0 %v2848_v7 }
  0x3b   :  { %348 = vst [vmem:[#allocation1 + $0x4] ss:$9 sm:$0xff] %v322_v50  ;;  %v244_v9 = vld [vmem:[#allocation13 + $0x6] sm:$0x1]  ;;  %v237_v12 = vld [vmem:[#allocation8 + $0x7] sm:$0x1]  ;;  %v250_v14 = vunpack.c.l.bf16 %v234_v57  ;;  %v258_v15 = vunpack.c.l.bf16 %v242_v0  ;;  %v262_v16 = vadd.f32 %v254_v63, %v246_v62  ;;  %v251_v17 = vunpack.c.l.bf16 %v235_v60 }
  0x3c   :  { %351 = vst [vmem:[#allocation1 + $0x5] ss:$9 sm:$0xff] %v323_v53  ;;  %v245_v13 = vld [vmem:[#allocation13 + $0x7] sm:$0x1]  ;;  %v259_v18 = vunpack.c.l.bf16 %v243_v4  ;;  %v263_v19 = vadd.f32 %v255_v2, %v247_v1  ;;  %v252_v21 = vunpack.c.l.bf16 %v236_v8  ;;  %v260_v22 = vunpack.c.l.bf16 %v244_v9  ;;  %v2244_v31 = vld [vmem:[#allocation22 + $0x28] sm:$0xff]  ;;  %v2851_v35 = vld [vmem:[#allocation23] sm:$0xff] }
  0x3d   :  { %354 = vst [vmem:[#allocation1 + $0x6] ss:$9 sm:$0xff] %v324_v56  ;;  %v2245_v20 = vld [vmem:[#allocation22 + $0x30] sm:$0xff]  ;;  %v264_v23 = vadd.f32 %v256_v6, %v248_v5  ;;  %v253_v24 = vunpack.c.l.bf16 %v237_v12  ;;  %v261_v25 = vunpack.c.l.bf16 %v245_v13  ;;  %v265_v26 = vadd.f32 %v257_v11, %v249_v10  ;;  %v516_v34 = vld [vmem:[#allocation17] sm:$0x1]  ;;  %670 = vmatpush.bf16.msra.mxu3 %v2244_v31  ;;  %v2243_v40 = vld [vmem:[#allocation22 + $0x20] sm:$0xff] }
  0x3e   :  { %357 = vst [vmem:[#allocation1 + $0x7] ss:$9 sm:$0xff] %v325_v59  ;;  %v266_v27 = vadd.f32 %v258_v15, %v250_v14  ;;  %v270_v28 = vpack.c.bf16 %v262_v16, %v262_v16  ;;  %v267_v29 = vadd.f32 %v259_v18, %v251_v17  ;;  %v271_v30 = vpack.c.bf16 %v263_v19, %v263_v19  ;;  %v517_v39 = vld [vmem:[#allocation17 + $0x1] sm:$0x1]  ;;  %v518_v42 = vld [vmem:[#allocation17 + $0x2] sm:$0x1] }
  0x3f   :  { %619 = vmatpush.bf16.msra.mxu2 %v2245_v20  ;;  %v268_v32 = vadd.f32 %v260_v22, %v252_v21  ;;  %v272_v33 = vpack.c.bf16 %v264_v23, %v264_v23  ;;  %v269_v37 = vadd.f32 %v261_v25, %v253_v24  ;;  %v273_v38 = vpack.c.bf16 %v265_v26, %v265_v26  ;;  %v524_v43 = vld [vmem:[#allocation20] sm:$0x1]  ;;  %v519_v45 = vld [vmem:[#allocation17 + $0x3] sm:$0x1]  ;;  %v525_v46 = vld [vmem:[#allocation20 + $0x1] sm:$0x1] }
  0x40   :  { %v274_v41 = vpack.c.bf16 %v266_v27, %v266_v27  ;;  %v275_v44 = vpack.c.bf16 %v267_v29, %v267_v29  ;;  %v520_v48 = vld [vmem:[#allocation17 + $0x4] sm:$0x1]  ;;  %v526_v49 = vld [vmem:[#allocation20 + $0x2] sm:$0x1]  ;;  %741 = vmatpush.bf16.msrb.mxu0 %v2851_v35  ;;  %v521_v51 = vld [vmem:[#allocation17 + $0x5] sm:$0x1]  ;;  %v532_v54 = vunpack.c.l.bf16 %v516_v34  ;;  %v540_v55 = vunpack.c.l.bf16 %v524_v43 }
  0x41   :  { %v276_v47 = vpack.c.bf16 %v268_v32, %v268_v32  ;;  %v277_v50 = vpack.c.bf16 %v269_v37, %v269_v37  ;;  %v527_v52 = vld [vmem:[#allocation20 + $0x3] sm:$0x1]  ;;  %v528_v53 = vld [vmem:[#allocation20 + $0x4] sm:$0x1]  ;;  %671 = vmatpush.bf16.msra.mxu3 %v2243_v40  ;;  %v529_v56 = vld [vmem:[#allocation20 + $0x5] sm:$0x1]  ;;  %v533_v57 = vunpack.c.l.bf16 %v517_v39  ;;  %v541_v58 = vunpack.c.l.bf16 %v525_v46 }
  0x42   :  { %v534_v59 = vunpack.c.l.bf16 %v518_v42  ;;  %v542_v60 = vunpack.c.l.bf16 %v526_v49  ;;  %v522_v61 = vld [vmem:[#allocation17 + $0x6] sm:$0x1]  ;;  %v530_v62 = vld [vmem:[#allocation20 + $0x6] sm:$0x1]  ;;  %v535_v63 = vunpack.c.l.bf16 %v519_v45  ;;  %v543_v0 = vunpack.c.l.bf16 %v527_v52  ;;  %v523_v1 = vld [vmem:[#allocation17 + $0x7] sm:$0x1] }
  0x43   :  { %924 = vmatpush.bf16.msrb.mxu2 %v2848_v7  ;;  %v531_v2 = vld [vmem:[#allocation20 + $0x7] sm:$0x1]  ;;  %v536_v3 = vunpack.c.l.bf16 %v520_v48  ;;  %v544_v4 = vunpack.c.l.bf16 %v528_v53  ;;  %v548_v5 = vadd.f32 %v540_v55, %v532_v54  ;;  %v537_v6 = vunpack.c.l.bf16 %v521_v51  ;;  %v468_v23 = vld [vmem:[#allocation16] sm:$0x1]  ;;  %v476_v29 = vld [vmem:[#allocation19] sm:$0x1] }
  0x44   :  { %v545_v8 = vunpack.c.l.bf16 %v529_v56  ;;  %v549_v9 = vadd.f32 %v541_v58, %v533_v57  ;;  %v2720_v10 = vmov 0.0   ;;  %v538_v11 = vunpack.c.l.bf16 %v522_v61  ;;  %v2863_v24 = vld [vmem:[#allocation23 + $0x18] sm:$0xff]  ;;  %v470_v32 = vld [vmem:[#allocation16 + $0x2] sm:$0x1]  ;;  %v2868_v37 = vld [vmem:[#allocation23 + $0x10] sm:$0xff]  ;;  %s2103_s16 = sshll.u32 %s2723_s15, 4  ;;  %s2104_s16 = int_to_ptr.vmem [resolvable:$true] %s2103_s16 }
  0x45   :  { %v358_v36 = vld [vmem:[#allocation1] sm:$0xff]  ;;  %226 = vst.msk [vmem:[#allocation4] sm:$0x3] %vm225_vm1, %v2720_v10  ;;  %v546_v12 = vunpack.c.l.bf16 %v530_v62  ;;  %v550_v13 = vadd.f32 %v542_v60, %v534_v59  ;;  %v539_v14 = vunpack.c.l.bf16 %v523_v1  ;;  %v547_v15 = vunpack.c.l.bf16 %v531_v2  ;;  %945 = vmatpush.bf16.msrb.mxu3 %v2863_v24  ;;  %773 = vmatpush.bf16.msrb.mxu1 %v2863_v24  ;;  %v471_v40 = vld [vmem:[#allocation16 + $0x3] sm:$0x1]  ;;  %s2105_s3 = sshll.u32 %s3198_s11, 4  ;;  %s2106_s3 = int_to_ptr.hbm [resolvable:$true] %s2105_s3 }
  0x46   :  { %2162 = vmatmul.msk.bf16.vlgmr.msra.gmra.mxu0 %vm371_vm0, %v358_v36  ;;  %389 = vst [vmem:[#allocation1] ss:$9 sm:$0xff] %v270_v28  ;;  %v551_v16 = vadd.f32 %v543_v0, %v535_v63  ;;  %v552_v17 = vadd.f32 %v544_v4, %v536_v3  ;;  %v556_v18 = vpack.c.bf16 %v548_v5, %v548_v5  ;;  %v469_v28 = vld [vmem:[#allocation16 + $0x1] sm:$0x1]  ;;  %v472_v43 = vld [vmem:[#allocation16 + $0x4] sm:$0x1]  ;;  %v484_v45 = vunpack.c.l.bf16 %v468_v23 }
  0x47   :  { %392 = vst [vmem:[#allocation1 + $0x1] ss:$9 sm:$0xff] %v271_v30  ;;  %925 = vmatpush.bf16.msrb.mxu2 %v2851_v35  ;;  %1094 = vmatpush.bf16.msra.mxu0 %v2848_v7  ;;  %v553_v19 = vadd.f32 %v545_v8, %v537_v6  ;;  %v557_v20 = vpack.c.bf16 %v549_v9, %v549_v9  ;;  %v492_v46 = vunpack.c.l.bf16 %v476_v29  ;;  %v480_v48 = vld [vmem:[#allocation19 + $0x4] sm:$0x1]  ;;  %v485_v49 = vunpack.c.l.bf16 %v469_v28  ;;  %v474_v51 = vld [vmem:[#allocation16 + $0x6] sm:$0x1] }
  0x48   :  { %395 = vst [vmem:[#allocation1 + $0x2] ss:$9 sm:$0xff] %v272_v33  ;;  %v554_v21 = vadd.f32 %v546_v12, %v538_v11  ;;  %v558_v22 = vpack.c.bf16 %v550_v13, %v550_v13  ;;  %v555_v26 = vadd.f32 %v547_v15, %v539_v14  ;;  %v559_v27 = vpack.c.bf16 %v551_v16, %v551_v16  ;;  %v477_v33 = vld [vmem:[#allocation19 + $0x1] sm:$0x1]  ;;  %v481_v52 = vld [vmem:[#allocation19 + $0x5] sm:$0x1] }
  0x49   :  { %398 = vst [vmem:[#allocation1 + $0x3] ss:$9 sm:$0xff] %v273_v38  ;;  %v560_v30 = vpack.c.bf16 %v552_v17, %v552_v17  ;;  %v561_v34 = vpack.c.bf16 %v553_v19, %v553_v19  ;;  %946 = vmatpush.bf16.msrb.mxu3 %v2868_v37  ;;  %v486_v53 = vunpack.c.l.bf16 %v470_v32  ;;  %774 = vmatpush.bf16.msrb.mxu1 %v2868_v37  ;;  %v475_v55 = vld [vmem:[#allocation16 + $0x7] sm:$0x1]  ;;  %v482_v56 = vld [vmem:[#allocation19 + $0x6] sm:$0x1]  ;;  %v487_v57 = vunpack.c.l.bf16 %v471_v40 }
  0x4a   :  { %401 = vst [vmem:[#allocation1 + $0x4] ss:$9 sm:$0xff] %v274_v41  ;;  %v562_v39 = vpack.c.bf16 %v554_v21, %v554_v21  ;;  %v478_v41 = vld [vmem:[#allocation19 + $0x2] sm:$0x1]  ;;  %v563_v42 = vpack.c.bf16 %v555_v26, %v555_v26  ;;  %v483_v59 = vld [vmem:[#allocation19 + $0x7] sm:$0x1]  ;;  %v488_v60 = vunpack.c.l.bf16 %v472_v43  ;;  %v496_v61 = vunpack.c.l.bf16 %v480_v48 }
  0x4b   :  { %404 = vst [vmem:[#allocation1 + $0x5] ss:$9 sm:$0xff] %v275_v44  ;;  %1095 = vmatpush.bf16.msra.mxu0 %v2851_v35  ;;  %v479_v44 = vld [vmem:[#allocation19 + $0x3] sm:$0x1]  ;;  %v494_v54 = vunpack.c.l.bf16 %v478_v41  ;;  %v500_v62 = vadd.f32 %v492_v46, %v484_v45  ;;  %v497_v1 = vunpack.c.l.bf16 %v481_v52  ;;  %v490_v3 = vunpack.c.l.bf16 %v474_v51  ;;  %v2270_v29 = vld [vmem:[%s3197_s10] ss:$0 sm:$0xff] }
  0x4c   :  { %407 = vst [vmem:[#allocation1 + $0x6] ss:$9 sm:$0xff] %v276_v47  ;;  %v717_v31 = vld [vmem:[#allocation4] sm:$0x3]  ;;  %v473_v47 = vld [vmem:[#allocation16 + $0x5] sm:$0x1]  ;;  %v495_v58 = vunpack.c.l.bf16 %v479_v44  ;;  %v498_v4 = vunpack.c.l.bf16 %v482_v56  ;;  %v491_v8 = vunpack.c.l.bf16 %v475_v55  ;;  %v499_v9 = vunpack.c.l.bf16 %v483_v59 }
  0x4d   :  { %410 = vst [vmem:[#allocation1 + $0x7] ss:$9 sm:$0xff] %v277_v50  ;;  %v718_v36 = vpack.c.bf16 %v717_v31, %v717_v31  ;;  %v493_v50 = vunpack.c.l.bf16 %v477_v33  ;;  %v489_v0 = vunpack.c.l.bf16 %v473_v47  ;;  %v502_v5 = vadd.f32 %v494_v54, %v486_v53  ;;  %v2271_v52 = vld [vmem:[%s3197_s10 + $0x1] ss:$0 sm:$0xff]  ;;  %s2722_s10 = smov 96   ;;  %s2724_s17 = smov [#allocation26]  }
  0x4e   :  { %227 = vst.msk [vmem:[#allocation5] sm:$0x3] %vm225_vm1, %v2720_v10  ;;  %v504_v11 = vadd.f32 %v496_v61, %v488_v60  ;;  %v508_v12 = vpack.c.bf16 %v500_v62, %v500_v62  ;;  %v506_v16 = vadd.f32 %v498_v4, %v490_v3  ;;  %v507_v19 = vadd.f32 %v499_v9, %v491_v8  ;;  %s2119_s18 = sshll.u32 %s2724_s17, 4  ;;  %s2121_s20 = sshll.u32 %s3199_s12, 4  ;;  %s2120_s18 = int_to_ptr.vmem [resolvable:$true] %s2119_s18  ;;  %s2122_s20 = int_to_ptr.hbm [resolvable:$true] %s2121_s20 }
  0x4f   :  { %228 = vst.msk [vmem:[#allocation6] sm:$0x3] %vm225_vm1, %v2720_v10  ;;  %v501_v2 = vadd.f32 %v493_v50, %v485_v49  ;;  %v505_v13 = vadd.f32 %v497_v1, %v489_v0  ;;  %v510_v17 = vpack.c.bf16 %v502_v5, %v502_v5 }
  0x50   :  { %229 = vst.msk [vmem:[#allocation7] sm:$0x3] %vm225_vm1, %v2720_v10  ;;  %v503_v10 = vadd.f32 %v495_v58, %v487_v57  ;;  %v512_v21 = vpack.c.bf16 %v504_v11, %v504_v11  ;;  %v514_v23 = vpack.c.bf16 %v506_v16, %v506_v16 }
  0x51   :  { %v509_v14 = vpack.c.bf16 %v501_v2, %v501_v2 }
  0x54   :  { %v411_v25 = vld [vmem:[#allocation1] sm:$0xff] }
  0x55   :  { %2171 = vmatmul.msk.bf16.vlgmr.msra.gmra.mxu1 %vm371_vm0, %v411_v25  ;;  %575 = vst [vmem:[#allocation1] ss:$9 sm:$0xff] %v556_v18  ;;  %v821_v38 = vld [vmem:[#allocation5] sm:$0x3]  ;;  %v515_v25 = vpack.c.bf16 %v507_v19, %v507_v19 }
  0x56   :  { %578 = vst [vmem:[#allocation1 + $0x1] ss:$9 sm:$0xff] %v557_v20  ;;  %823 = vrot.lane.b32.xlu1 %v821_v38, %s2721_s9  ;;  %2199 = vmatmul.msk.bf16.vlgmr.msrb.gmra.mxu0 %vm371_vm0, %v718_v36  ;;  %v750_v6 = vld [vmem:[#allocation6] sm:$0x3]  ;;  %v511_v20 = vpack.c.bf16 %v503_v10, %v503_v10 }
  0x57   :  { %581 = vst [vmem:[#allocation1 + $0x2] ss:$9 sm:$0xff] %v558_v22  ;;  %1434 = vmatpush.bf16.msrb.mxu0 %v2848_v7  ;;  %1115 = vmatpush.bf16.msra.mxu1 %v2863_v24  ;;  %v837_v63 = vld [vmem:[#allocation7] sm:$0x3]  ;;  %v751_v15 = vpack.c.bf16 %v750_v6, %v750_v6  ;;  %v513_v22 = vpack.c.bf16 %v505_v13, %v505_v13 }
  0x58   :  { %584 = vst [vmem:[#allocation1 + $0x3] ss:$9 sm:$0xff] %v559_v27 }
  0x59   :  { %587 = vst [vmem:[#allocation1 + $0x4] ss:$9 sm:$0xff] %v560_v30 }
  0x5a   :  { %590 = vst [vmem:[#allocation1 + $0x5] ss:$9 sm:$0xff] %v561_v34 }
  0x5b   :  { %593 = vst [vmem:[#allocation1 + $0x6] ss:$9 sm:$0xff] %v562_v39  ;;  %1435 = vmatpush.bf16.msrb.mxu0 %v2851_v35  ;;  %1116 = vmatpush.bf16.msra.mxu1 %v2868_v37 }
  0x5c   :  { %596 = vst [vmem:[#allocation1 + $0x7] ss:$9 sm:$0xff] %v563_v42 }
  0x5e   :  { %839 = vrot.lane.b32.xlu1 %v837_v63, %s2721_s9 }
  0x63   :  { %v597_v18 = vld [vmem:[#allocation1] sm:$0xff] }
  0x64   :  { %2180 = vmatmul.msk.bf16.vlgmr.msra.gmra.mxu2 %vm371_vm0, %v597_v18  ;;  %627 = vst [vmem:[#allocation1] ss:$9 sm:$0xff] %v508_v12 }
  0x65   :  { %630 = vst [vmem:[#allocation1 + $0x1] ss:$9 sm:$0xff] %v509_v14  ;;  %2208 = vmatmul.msk.bf16.vlgmr.msrb.gmra.mxu1 %vm371_vm0, %v751_v15  ;;  %1264 = vmatpush.bf16.msra.mxu2 %v2848_v7 }
  0x66   :  { %633 = vst [vmem:[#allocation1 + $0x2] ss:$9 sm:$0xff] %v510_v17  ;;  %1455 = vmatpush.bf16.msrb.mxu1 %v2863_v24 }
  0x67   :  { %636 = vst [vmem:[#allocation1 + $0x3] ss:$9 sm:$0xff] %v511_v20 }
  0x68   :  { %639 = vst [vmem:[#allocation1 + $0x4] ss:$9 sm:$0xff] %v512_v21 }
  0x69   :  { %642 = vst [vmem:[#allocation1 + $0x5] ss:$9 sm:$0xff] %v513_v22  ;;  %1265 = vmatpush.bf16.msra.mxu2 %v2851_v35 }
  0x6a   :  { %645 = vst [vmem:[#allocation1 + $0x6] ss:$9 sm:$0xff] %v514_v23  ;;  %1456 = vmatpush.bf16.msrb.mxu1 %v2868_v37 }
  0x6b   :  { %648 = vst [vmem:[#allocation1 + $0x7] ss:$9 sm:$0xff] %v515_v25 }
  0x72   :  { %v649_v26 = vld [vmem:[#allocation1] sm:$0xff] }
  0x73   :  { %2189 = vmatmul.msk.bf16.vlgmr.msra.gmra.mxu3 %vm371_vm0, %v649_v26 }
  0x74   :  { %1285 = vmatpush.bf16.msra.mxu3 %v2863_v24 }
  0x78   :  { %1286 = vmatpush.bf16.msra.mxu3 %v2868_v37 }
  0xc3   :  { %v383_v27 = vpop.f32.mrf.mxu0 }
  0xcb   :  { %v385_v28 = vpop.f32.mrf.mxu0 }
  0xd2   :  { %v435_v30 = vpop.f32.mrf.mxu1 }
  0xd3   :  { %v436_v31 = vadd.f32 %v435_v30, %v383_v27  ;;  %v743_v33 = vpop.f32.mrf.mxu0 }
  0xd5   :  { %v444_v32 = vadd.f32 %v2270_v29, %v436_v31 }
  0xd7   :  { %v448_v34 = vrot.slane %v444_v32, 2  ;;  %v449_v36 = vrot.slane %v444_v32, 4  ;;  %v450_v38 = vrot.slane %v444_v32, 6  ;;  %460 = vst [vmem:[#allocation2] sm:$0x3] %v444_v32 }
  0xd9   :  { %461 = vst [vmem:[#allocation2 + $0x2] sm:$0x3] %v448_v34 }
  0xda   :  { %462 = vst [vmem:[#allocation2 + $0x4] sm:$0x3] %v449_v36  ;;  %v437_v39 = vpop.f32.mrf.mxu1 }
  0xdb   :  { %463 = vst [vmem:[#allocation2 + $0x6] sm:$0x3] %v450_v38  ;;  %v438_v40 = vadd.f32 %v437_v39, %v385_v28  ;;  %v745_v42 = vpop.f32.mrf.mxu0  ;;  %v824_v39 = vpop.permute.xlu1 %823 }
  0xdd   :  { %v445_v41 = vadd.f32 %v2270_v29, %v438_v40 }
  0xde   :  { %v716_v43 = vld [vmem:[#allocation2] sm:$0x3] }
  0xdf   :  { %v747_v44 = vadd.f32 %v743_v33, %v716_v43  ;;  %v451_v45 = vrot.slane %v445_v41, 2  ;;  %v452_v46 = vrot.slane %v445_v41, 4  ;;  %v453_v47 = vrot.slane %v445_v41, 6  ;;  %464 = vst [vmem:[#allocation2 + $0x8] sm:$0x3] %v445_v41 }
  0xe1   :  { %2272 = vtanh.f32 %v747_v44  ;;  %465 = vst [vmem:[#allocation2 + $0xa] sm:$0x3] %v451_v45  ;;  %v2209_v5 = vmul.f32 -1.442695, %v747_v44 }
  0xe2   :  { %466 = vst [vmem:[#allocation2 + $0xc] sm:$0x3] %v452_v46  ;;  %v776_v48 = vpop.f32.mrf.mxu1 }
  0xe3   :  { %467 = vst [vmem:[#allocation2 + $0xe] sm:$0x3] %v453_v47  ;;  %v840_v44 = vpop.permute.xlu1 %839 }
  0xe7   :  { %v2273_v49 = vpop.eup %2272  ;;  %v621_v51 = vpop.f32.mrf.mxu2 }
  0xe8   :  { %828 = vrot.lane.b32.xlu0 %v2273_v49, %s2721_s9 }
  0xea   :  { %v778_v50 = vpop.f32.mrf.mxu1 }
  0xef   :  { %v623_v59 = vpop.f32.mrf.mxu2 }
  0xf6   :  { %v673_v53 = vpop.f32.mrf.mxu3 }
  0xf7   :  { %v674_v54 = vadd.f32 %v673_v53, %v621_v51 }
  0xf9   :  { %v683_v55 = vadd.f32 %v2271_v52, %v674_v54 }
  0xfb   :  { %v687_v56 = vrot.slane %v683_v55, 2  ;;  %v688_v57 = vrot.slane %v683_v55, 4  ;;  %v689_v58 = vrot.slane %v683_v55, 6  ;;  %699 = vst [vmem:[#allocation3] sm:$0x3] %v683_v55 }
  0xfd   :  { %700 = vst [vmem:[#allocation3 + $0x2] sm:$0x3] %v687_v56 }
  0xfe   :  { %701 = vst [vmem:[#allocation3 + $0x4] sm:$0x3] %v688_v57  ;;  %v675_v60 = vpop.f32.mrf.mxu3 }
  0xff   :  { %702 = vst [vmem:[#allocation3 + $0x6] sm:$0x3] %v689_v58  ;;  %v676_v61 = vadd.f32 %v675_v60, %v623_v59 }
 0x101   :  { %v684_v62 = vadd.f32 %v2271_v52, %v676_v61 }
 0x103   :  { %v690_v63 = vrot.slane %v684_v62, 2  ;;  %v691_v0 = vrot.slane %v684_v62, 4  ;;  %v692_v1 = vrot.slane %v684_v62, 6  ;;  %703 = vst [vmem:[#allocation3 + $0x8] sm:$0x3] %v684_v62 }
 0x104   :  { %v912_v62 = vld [vmem:[#allocation2 + $0x2] sm:$0x3] }
 0x105   :  { %704 = vst [vmem:[#allocation3 + $0xa] sm:$0x3] %v690_v63 }
 0x106   :  { %705 = vst [vmem:[#allocation3 + $0xc] sm:$0x3] %v691_v0 }
 0x107   :  { %706 = vst [vmem:[#allocation3 + $0xe] sm:$0x3] %v692_v1 }
 0x10e   :  { %v749_v2 = vld [vmem:[#allocation3 + $0xe] sm:$0x3] }
 0x10f   :  { %v780_v3 = vadd.f32 %v776_v48, %v749_v2 }
 0x111   :  { %2274 = vtanh.f32 %v780_v3  ;;  %v2210_v21 = vmul.f32 -1.442695, %v780_v3 }
 0x112   :  { %2276 = vpow2.f32 %v2209_v5 }
 0x117   :  { %v2275_v4 = vpop.eup %2274 }
 0x118   :  { %844 = vrot.lane.b32.xlu0 %v2275_v4, %s2721_s9  ;;  %v2277_v6 = vpop.eup %2276  ;;  %v933_v4 = vld [vmem:[#allocation3 + $0xc] sm:$0x3] }
 0x119   :  { %v784_v8 = vadd.f32 1.0, %v2277_v6 }
 0x11b   :  { %2278 = vrcp.f32 %v784_v8  ;;  %vm790_vm2 = vweird.f32 %v784_v8  ;;  %v796_v13 = vand.u32 2147483648, %v784_v8  ;;  %v794_v15 = vand.u32 2147483647, %v784_v8 }
 0x11c   :  { %2280 = vpow2.f32 %v2210_v21 }
 0x11d   :  { %v797_v16 = vor.u32 1.1754944e-38, %v796_v13  ;;  %vm795_vm5 = vcmp.eq.f32.partialorder %v794_v15, 8.507059e+37 }
 0x121   :  { %v2279_v9 = vpop.eup %2278 }
 0x122   :  { %v786_v10 = vmul.f32 %v2279_v9, %v784_v8  ;;  %vm791_vm3 = vweird.f32 %v2279_v9  ;;  %v2281_v22 = vpop.eup %2280 }
 0x123   :  { %vm792_vm4 = vmor %vm790_vm2, %vm791_vm3  ;;  %v804_v23 = vadd.f32 1.0, %v2281_v22 }
 0x124   :  { %v787_v11 = vsub.f32 1.0, %v786_v10 }
 0x125   :  { %2282 = vrcp.f32 %v804_v23  ;;  %v816_v30 = vand.u32 2147483648, %v804_v23  ;;  %vm810_vm7 = vweird.f32 %v804_v23  ;;  %v814_v31 = vand.u32 2147483647, %v804_v23 }
 0x126   :  { %v788_v12 = vmul.f32 %v2279_v9, %v787_v11 }
 0x127   :  { %v817_v33 = vor.u32 1.1754944e-38, %v816_v30  ;;  %vm815_vm9 = vcmp.eq.f32.partialorder %v814_v31, 8.507059e+37 }
 0x128   :  { %v789_v14 = vadd.f32 %v2279_v9, %v788_v12 }
 0x12a   :  { %v793_v17 = vsel %vm792_vm4, %v2279_v9, %v789_v14 }
 0x12b   :  { %v798_v18 = vsel %vm795_vm5, %v797_v16, %v793_v17  ;;  %v2283_v25 = vpop.eup %2282 }
 0x12c   :  { %v806_v26 = vmul.f32 %v2283_v25, %v804_v23  ;;  %vm811_vm6 = vweird.f32 %v2283_v25  ;;  %v826_v40 = vmul.f32 %v824_v39, %v798_v18 }
 0x12d   :  { %vm812_vm8 = vmor %vm810_vm7, %vm811_vm6 }
 0x12e   :  { %v807_v27 = vsub.f32 1.0, %v806_v26 }
 0x130   :  { %v808_v28 = vmul.f32 %v2283_v25, %v807_v27 }
 0x132   :  { %v809_v29 = vadd.f32 %v2283_v25, %v808_v28 }
 0x134   :  { %v813_v32 = vsel %vm812_vm8, %v2283_v25, %v809_v29 }
 0x135   :  { %v818_v34 = vsel %vm815_vm9, %v817_v33, %v813_v32 }
 0x136   :  { %v842_v45 = vmul.f32 %v840_v44, %v818_v34 }
 0x15a   :  { %v829_v19 = vpop.permute.xlu0 %828 }
 0x15b   :  { %v831_v20 = vmul.f32 %v829_v19, %v798_v18 }
 0x15d   :  { %833 = vrot.lane.b32.xlu2 %v831_v20, %s2721_s9 }
 0x18a   :  { %v845_v36 = vpop.permute.xlu0 %844 }
 0x18b   :  { %v847_v38 = vmul.f32 %v845_v36, %v818_v34 }
 0x18d   :  { %849 = vrot.lane.b32.xlu2 %v847_v38, %s2721_s9 }
 0x1b7   :  { %v834_v41 = vpop.permute.xlu2 %833 }
 0x1b8   :  { %v836_v42 = vadd.f32 %v834_v41, %v826_v40 }
 0x1ba   :  { %2284 = vtanh.f32 %v836_v42 }
 0x1c0   :  { %v2285_v43 = vpop.eup %2284 }
 0x1c1   :  { %855 = vrot.lane.b32.xlu0 %v2285_v43, %s2721_s9 }
 0x1e7   :  { %v850_v46 = vpop.permute.xlu2 %849 }
 0x1e8   :  { %v852_v47 = vadd.f32 %v850_v46, %v842_v45 }
 0x1ea   :  { %2286 = vtanh.f32 %v852_v47 }
 0x1f0   :  { %v2287_v48 = vpop.eup %2286 }
 0x1f1   :  { %861 = vrot.lane.b32.xlu1 %v2287_v48, %s2721_s9 }
 0x1f9   :  { %866 = vrot.lane.b32.xlu1 %v836_v42, %s2722_s10 }
 0x233   :  { %v856_v49 = vpop.permute.xlu0 %855 }
 0x234   :  { %v2901_v50 = vmul.f32 %v856_v49, %v798_v18 }
 0x236   :  { %872 = vrot.lane.b32.xlu2 %v2901_v50, %s2717_s25 }
 0x23e   :  { %877 = vrot.lane.b32.xlu2 %v852_v47, %s2722_s10 }
 0x263   :  { %v862_v51 = vpop.permute.xlu1 %861 }
 0x264   :  { %v2906_v52 = vmul.f32 %v862_v51, %v818_v34 }
 0x266   :  { %882 = vrot.lane.b32.xlu0 %v2906_v52, %s2717_s25 }
 0x26b   :  { %v867_v53 = vpop.permute.xlu1 %866 }
 0x26c   :  { %870 = vst.msk [vmem:[#allocation5] sm:$0x3] %vm225_vm1, %v867_v53 }
 0x273   :  { %v993_v54 = vld [vmem:[#allocation5] sm:$0x3] }
 0x274   :  { %995 = vrot.lane.b32.xlu2 %v993_v54, %s2721_s9 }
 0x290   :  { %v873_v55 = vpop.permute.xlu2 %872 }
 0x291   :  { %875 = vst.msk [vmem:[#allocation4] sm:$0x3] %vm225_vm1, %v873_v55 }
 0x298   :  { %v878_v56 = vpop.permute.xlu2 %877  ;;  %v913_v57 = vld [vmem:[#allocation4] sm:$0x3] }
 0x299   :  { %880 = vst.msk [vmem:[#allocation7] sm:$0x3] %vm225_vm1, %v878_v56  ;;  %v914_v58 = vpack.c.bf16 %v913_v57, %v913_v57 }
 0x29b   :  { %2211 = vmatmul.msk.bf16.vlgmr.msrb.gmra.mxu2 %vm371_vm0, %v914_v58 }
 0x29c   :  { %1604 = vmatpush.bf16.msrb.mxu2 %v2848_v7 }
 0x2a0   :  { %1605 = vmatpush.bf16.msrb.mxu2 %v2851_v35  ;;  %v1009_v3 = vld [vmem:[#allocation7] sm:$0x3] }
 0x2ce   :  { %v996_v43 = vpop.permute.xlu2 %995 }
 0x2d8   :  { %v883_v59 = vpop.permute.xlu0 %882 }
 0x2d9   :  { %885 = vst.msk [vmem:[#allocation6] sm:$0x3] %vm225_vm1, %v883_v59 }
 0x2e0   :  { %v934_v60 = vld [vmem:[#allocation6] sm:$0x3] }
 0x2e1   :  { %v935_v61 = vpack.c.bf16 %v934_v60, %v934_v60 }
 0x2e3   :  { %2212 = vmatmul.msk.bf16.vlgmr.msrb.gmra.mxu3 %vm371_vm0, %v935_v61 }
 0x2e4   :  { %1625 = vmatpush.bf16.msrb.mxu3 %v2863_v24 }
 0x2e8   :  { %1626 = vmatpush.bf16.msrb.mxu3 %v2868_v37 }
 0x31e   :  { %v927_v63 = vpop.f32.mrf.mxu2 }
 0x31f   :  { %v931_v0 = vadd.f32 %v927_v63, %v912_v62 }
 0x321   :  { %2288 = vtanh.f32 %v931_v0  ;;  %v2213_v8 = vmul.f32 -1.442695, %v931_v0 }
 0x326   :  { %v929_v1 = vpop.f32.mrf.mxu2 }
 0x327   :  { %v2289_v2 = vpop.eup %2288 }
 0x328   :  { %1000 = vrot.lane.b32.xlu0 %v2289_v2, %s2721_s9 }
 0x330   :  { %1011 = vrot.lane.b32.xlu0 %v1009_v3, %s2721_s9 }
 0x366   :  { %v948_v5 = vpop.f32.mrf.mxu3 }
 0x367   :  { %v952_v6 = vadd.f32 %v948_v5, %v933_v4  ;;  %v1082_v4 = vld [vmem:[#allocation2 + $0x4] sm:$0x3] }
 0x369   :  { %2290 = vtanh.f32 %v952_v6  ;;  %v2214_v26 = vmul.f32 -1.442695, %v952_v6 }
 0x36a   :  { %2292 = vpow2.f32 %v2213_v8 }
 0x36e   :  { %v950_v9 = vpop.f32.mrf.mxu3 }
 0x36f   :  { %v2291_v10 = vpop.eup %2290 }
 0x370   :  { %1016 = vrot.lane.b32.xlu1 %v2291_v10, %s2721_s9  ;;  %v2293_v11 = vpop.eup %2292 }
 0x371   :  { %v956_v12 = vadd.f32 1.0, %v2293_v11 }
 0x373   :  { %2294 = vrcp.f32 %v956_v12  ;;  %v968_v18 = vand.u32 2147483648, %v956_v12  ;;  %vm962_vm11 = vweird.f32 %v956_v12  ;;  %v966_v19 = vand.u32 2147483647, %v956_v12 }
 0x374   :  { %2296 = vpow2.f32 %v2214_v26 }
 0x375   :  { %v969_v21 = vor.u32 1.1754944e-38, %v968_v18  ;;  %vm967_vm13 = vcmp.eq.f32.partialorder %v966_v19, 8.507059e+37 }
 0x379   :  { %v2295_v13 = vpop.eup %2294 }
 0x37a   :  { %v958_v14 = vmul.f32 %v2295_v13, %v956_v12  ;;  %vm963_vm10 = vweird.f32 %v2295_v13  ;;  %v2297_v27 = vpop.eup %2296 }
 0x37b   :  { %vm964_vm12 = vmor %vm962_vm11, %vm963_vm10  ;;  %v976_v28 = vadd.f32 1.0, %v2297_v27 }
 0x37c   :  { %v959_v15 = vsub.f32 1.0, %v958_v14 }
 0x37d   :  { %2298 = vrcp.f32 %v976_v28  ;;  %v988_v34 = vand.u32 2147483648, %v976_v28  ;;  %vm982_vm15 = vweird.f32 %v976_v28  ;;  %v986_v36 = vand.u32 2147483647, %v976_v28 }
 0x37e   :  { %v960_v16 = vmul.f32 %v2295_v13, %v959_v15 }
 0x37f   :  { %v989_v39 = vor.u32 1.1754944e-38, %v988_v34  ;;  %vm987_vm3 = vcmp.eq.f32.partialorder %v986_v36, 8.507059e+37 }
 0x380   :  { %v961_v17 = vadd.f32 %v2295_v13, %v960_v16 }
 0x382   :  { %v965_v20 = vsel %vm964_vm12, %v2295_v13, %v961_v17 }
 0x383   :  { %v970_v22 = vsel %vm967_vm13, %v969_v21, %v965_v20  ;;  %v2299_v29 = vpop.eup %2298 }
 0x384   :  { %v978_v30 = vmul.f32 %v2299_v29, %v976_v28  ;;  %vm983_vm14 = vweird.f32 %v2299_v29  ;;  %v998_v44 = vmul.f32 %v996_v43, %v970_v22 }
 0x385   :  { %vm984_vm2 = vmor %vm982_vm15, %vm983_vm14 }
 0x386   :  { %v979_v31 = vsub.f32 1.0, %v978_v30 }
 0x388   :  { %v980_v32 = vmul.f32 %v2299_v29, %v979_v31 }
 0x38a   :  { %v981_v33 = vadd.f32 %v2299_v29, %v980_v32 }
 0x38c   :  { %v985_v38 = vsel %vm984_vm2, %v2299_v29, %v981_v33 }
 0x38d   :  { %v990_v40 = vsel %vm987_vm3, %v989_v39, %v985_v38 }
 0x39a   :  { %v1001_v23 = vpop.permute.xlu0 %1000 }
 0x39b   :  { %v1003_v25 = vmul.f32 %v1001_v23, %v970_v22 }
 0x39d   :  { %1005 = vrot.lane.b32.xlu1 %v1003_v25, %s2721_s9 }
 0x3a2   :  { %v1012_v48 = vpop.permute.xlu0 %1011 }
 0x3a3   :  { %v1014_v49 = vmul.f32 %v1012_v48, %v990_v40 }
 0x3e2   :  { %v1017_v41 = vpop.permute.xlu1 %1016 }
 0x3e3   :  { %v1019_v42 = vmul.f32 %v1017_v41, %v990_v40 }
 0x3e5   :  { %1021 = vrot.lane.b32.xlu2 %v1019_v42, %s2721_s9 }
 0x40f   :  { %v1006_v45 = vpop.permute.xlu1 %1005 }
 0x410   :  { %v1008_v46 = vadd.f32 %v1006_v45, %v998_v44 }
 0x412   :  { %2300 = vtanh.f32 %v1008_v46 }
 0x418   :  { %v2301_v47 = vpop.eup %2300 }
 0x419   :  { %1027 = vrot.lane.b32.xlu0 %v2301_v47, %s2721_s9 }
 0x43f   :  { %v1022_v51 = vpop.permute.xlu2 %1021 }
 0x440   :  { %v1024_v53 = vadd.f32 %v1022_v51, %v1014_v49 }
 0x442   :  { %2302 = vtanh.f32 %v1024_v53 }
 0x448   :  { %v2303_v54 = vpop.eup %2302 }
 0x449   :  { %1033 = vrot.lane.b32.xlu1 %v2303_v54, %s2721_s9 }
 0x451   :  { %1038 = vrot.lane.b32.xlu1 %v1008_v46, %s2722_s10 }
 0x48b   :  { %v1028_v55 = vpop.permute.xlu0 %1027 }
 0x48c   :  { %v2929_v56 = vmul.f32 %v1028_v55, %v970_v22 }
 0x48e   :  { %1043 = vrot.lane.b32.xlu2 %v2929_v56, %s2717_s25 }
 0x496   :  { %1048 = vrot.lane.b32.xlu2 %v1024_v53, %s2722_s10 }
 0x4bb   :  { %v1034_v57 = vpop.permute.xlu1 %1033 }
 0x4bc   :  { %v2934_v58 = vmul.f32 %v1034_v57, %v990_v40 }
 0x4be   :  { %1053 = vrot.lane.b32.xlu0 %v2934_v58, %s2717_s25 }
 0x4c3   :  { %v1039_v59 = vpop.permute.xlu1 %1038 }
 0x4c4   :  { %1041 = vst.msk [vmem:[#allocation5] sm:$0x3] %vm225_vm1, %v1039_v59 }
 0x4cb   :  { %v1163_v60 = vld [vmem:[#allocation5] sm:$0x3] }
 0x4cc   :  { %1165 = vrot.lane.b32.xlu2 %v1163_v60, %s2721_s9 }
 0x4e8   :  { %v1044_v61 = vpop.permute.xlu2 %1043 }
 0x4e9   :  { %1046 = vst.msk [vmem:[#allocation4] sm:$0x3] %vm225_vm1, %v1044_v61 }
 0x4f0   :  { %v1049_v62 = vpop.permute.xlu2 %1048  ;;  %v1083_v63 = vld [vmem:[#allocation4] sm:$0x3] }
 0x4f1   :  { %1051 = vst.msk [vmem:[#allocation7] sm:$0x3] %vm225_vm1, %v1049_v62  ;;  %v1084_v0 = vpack.c.bf16 %v1083_v63, %v1083_v63 }
 0x4f3   :  { %2215 = vmatmul.msk.bf16.vlgmr.msra.gmra.mxu0 %vm371_vm0, %v1084_v0 }
 0x4f4   :  { %1774 = vmatpush.bf16.msra.mxu0 %v2848_v7 }
 0x4f8   :  { %1775 = vmatpush.bf16.msra.mxu0 %v2851_v35  ;;  %v1179_v7 = vld [vmem:[#allocation7] sm:$0x3]  ;;  %v1103_v35 = vld [vmem:[#allocation3 + $0xa] sm:$0x3] }
 0x526   :  { %v1166_v47 = vpop.permute.xlu2 %1165 }
 0x530   :  { %v1054_v1 = vpop.permute.xlu0 %1053 }
 0x531   :  { %1056 = vst.msk [vmem:[#allocation6] sm:$0x3] %vm225_vm1, %v1054_v1 }
 0x538   :  { %v1104_v2 = vld [vmem:[#allocation6] sm:$0x3] }
 0x539   :  { %v1105_v3 = vpack.c.bf16 %v1104_v2, %v1104_v2 }
 0x53b   :  { %2216 = vmatmul.msk.bf16.vlgmr.msra.gmra.mxu1 %vm371_vm0, %v1105_v3 }
 0x53c   :  { %1795 = vmatpush.bf16.msra.mxu1 %v2863_v24 }
 0x540   :  { %1796 = vmatpush.bf16.msra.mxu1 %v2868_v37 }
 0x570   :  { %v1097_v5 = vpop.f32.mrf.mxu0 }
 0x571   :  { %v1101_v6 = vadd.f32 %v1097_v5, %v1082_v4 }
 0x573   :  { %2304 = vtanh.f32 %v1101_v6  ;;  %v2217_v12 = vmul.f32 -1.442695, %v1101_v6 }
 0x578   :  { %v1099_v8 = vpop.f32.mrf.mxu0 }
 0x579   :  { %v2305_v9 = vpop.eup %2304  ;;  %v2400_v8 = vld [vmem:[#allocation23 + $0x8] sm:$0xff] }
 0x57a   :  { %1170 = vrot.lane.b32.xlu0 %v2305_v9, %s2721_s9  ;;  %v2401_v9 = vld [vmem:[#allocation23] sm:$0xff] }
 0x582   :  { %1181 = vrot.lane.b32.xlu0 %v1179_v7, %s2721_s9 }
 0x5b8   :  { %v1118_v10 = vpop.f32.mrf.mxu1 }
 0x5b9   :  { %v1122_v11 = vadd.f32 %v1118_v10, %v1103_v35 }
 0x5bb   :  { %2306 = vtanh.f32 %v1122_v11  ;;  %v2218_v30 = vmul.f32 -1.442695, %v1122_v11  ;;  %v1252_v11 = vld [vmem:[#allocation2 + $0x6] sm:$0x3] }
 0x5bc   :  { %2308 = vpow2.f32 %v2217_v12 }
 0x5c0   :  { %v1120_v13 = vpop.f32.mrf.mxu1 }
 0x5c1   :  { %v2307_v14 = vpop.eup %2306 }
 0x5c2   :  { %1186 = vrot.lane.b32.xlu1 %v2307_v14, %s2721_s9  ;;  %v2309_v15 = vpop.eup %2308 }
 0x5c3   :  { %v1126_v16 = vadd.f32 1.0, %v2309_v15 }
 0x5c5   :  { %2310 = vrcp.f32 %v1126_v16  ;;  %v1138_v22 = vand.u32 2147483648, %v1126_v16  ;;  %vm1132_vm5 = vweird.f32 %v1126_v16  ;;  %v1136_v23 = vand.u32 2147483647, %v1126_v16 }
 0x5c6   :  { %2312 = vpow2.f32 %v2218_v30 }
 0x5c7   :  { %v1139_v26 = vor.u32 1.1754944e-38, %v1138_v22  ;;  %vm1137_vm7 = vcmp.eq.f32.partialorder %v1136_v23, 8.507059e+37 }
 0x5cb   :  { %v2311_v17 = vpop.eup %2310 }
 0x5cc   :  { %v1128_v18 = vmul.f32 %v2311_v17, %v1126_v16  ;;  %vm1133_vm4 = vweird.f32 %v2311_v17  ;;  %v2313_v31 = vpop.eup %2312 }
 0x5cd   :  { %vm1134_vm6 = vmor %vm1132_vm5, %vm1133_vm4  ;;  %v1146_v32 = vadd.f32 1.0, %v2313_v31 }
 0x5ce   :  { %v1129_v19 = vsub.f32 1.0, %v1128_v18 }
 0x5cf   :  { %2314 = vrcp.f32 %v1146_v32  ;;  %v1158_v40 = vand.u32 2147483648, %v1146_v32  ;;  %vm1152_vm9 = vweird.f32 %v1146_v32  ;;  %v1156_v41 = vand.u32 2147483647, %v1146_v32 }
 0x5d0   :  { %v1130_v20 = vmul.f32 %v2311_v17, %v1129_v19 }
 0x5d1   :  { %v1159_v43 = vor.u32 1.1754944e-38, %v1158_v40  ;;  %vm1157_vm11 = vcmp.eq.f32.partialorder %v1156_v41, 8.507059e+37 }
 0x5d2   :  { %v1131_v21 = vadd.f32 %v2311_v17, %v1130_v20 }
 0x5d4   :  { %v1135_v25 = vsel %vm1134_vm6, %v2311_v17, %v1131_v21  ;;  %v1273_v17 = vld [vmem:[#allocation3 + $0x8] sm:$0x3] }
 0x5d5   :  { %v1140_v28 = vsel %vm1137_vm7, %v1139_v26, %v1135_v25  ;;  %v2315_v33 = vpop.eup %2314 }
 0x5d6   :  { %v1148_v34 = vmul.f32 %v2315_v33, %v1146_v32  ;;  %vm1153_vm8 = vweird.f32 %v2315_v33  ;;  %v1168_v48 = vmul.f32 %v1166_v47, %v1140_v28 }
 0x5d7   :  { %vm1154_vm10 = vmor %vm1152_vm9, %vm1153_vm8 }
 0x5d8   :  { %v1149_v36 = vsub.f32 1.0, %v1148_v34 }
 0x5da   :  { %v1150_v38 = vmul.f32 %v2315_v33, %v1149_v36 }
 0x5dc   :  { %v1151_v39 = vadd.f32 %v2315_v33, %v1150_v38 }
 0x5de   :  { %v1155_v42 = vsel %vm1154_vm10, %v2315_v33, %v1151_v39 }
 0x5df   :  { %v1160_v44 = vsel %vm1157_vm11, %v1159_v43, %v1155_v42 }
 0x5ec   :  { %v1171_v27 = vpop.permute.xlu0 %1170 }
 0x5ed   :  { %v1173_v29 = vmul.f32 %v1171_v27, %v1140_v28 }
 0x5ef   :  { %1175 = vrot.lane.b32.xlu1 %v1173_v29, %s2721_s9 }
 0x5f4   :  { %v1182_v54 = vpop.permute.xlu0 %1181 }
 0x5f5   :  { %v1184_v55 = vmul.f32 %v1182_v54, %v1160_v44 }
 0x634   :  { %v1187_v45 = vpop.permute.xlu1 %1186 }
 0x635   :  { %v1189_v46 = vmul.f32 %v1187_v45, %v1160_v44 }
 0x637   :  { %1191 = vrot.lane.b32.xlu2 %v1189_v46, %s2721_s9 }
 0x661   :  { %v1176_v49 = vpop.permute.xlu1 %1175 }
 0x662   :  { %v1178_v51 = vadd.f32 %v1176_v49, %v1168_v48 }
 0x664   :  { %2316 = vtanh.f32 %v1178_v51 }
 0x66a   :  { %v2317_v53 = vpop.eup %2316 }
 0x66b   :  { %1197 = vrot.lane.b32.xlu0 %v2317_v53, %s2721_s9 }
 0x691   :  { %v1192_v57 = vpop.permute.xlu2 %1191 }
 0x692   :  { %v1194_v59 = vadd.f32 %v1192_v57, %v1184_v55 }
 0x694   :  { %2318 = vtanh.f32 %v1194_v59 }
 0x69a   :  { %v2319_v60 = vpop.eup %2318 }
 0x69b   :  { %1203 = vrot.lane.b32.xlu1 %v2319_v60, %s2721_s9 }
 0x6a3   :  { %1208 = vrot.lane.b32.xlu1 %v1178_v51, %s2722_s10 }
 0x6dd   :  { %v1198_v61 = vpop.permute.xlu0 %1197 }
 0x6de   :  { %v2957_v62 = vmul.f32 %v1198_v61, %v1140_v28 }
 0x6e0   :  { %1213 = vrot.lane.b32.xlu2 %v2957_v62, %s2717_s25 }
 0x6e8   :  { %1218 = vrot.lane.b32.xlu2 %v1194_v59, %s2722_s10 }
 0x70d   :  { %v1204_v63 = vpop.permute.xlu1 %1203 }
 0x70e   :  { %v2962_v0 = vmul.f32 %v1204_v63, %v1160_v44 }
 0x710   :  { %1223 = vrot.lane.b32.xlu0 %v2962_v0, %s2717_s25 }
 0x715   :  { %v1209_v1 = vpop.permute.xlu1 %1208 }
 0x716   :  { %1211 = vst.msk [vmem:[#allocation5] sm:$0x3] %vm225_vm1, %v1209_v1 }
 0x71d   :  { %v1333_v2 = vld [vmem:[#allocation5] sm:$0x3] }
 0x71e   :  { %1335 = vrot.lane.b32.xlu2 %v1333_v2, %s2721_s9 }
 0x73a   :  { %v1214_v3 = vpop.permute.xlu2 %1213 }
 0x73b   :  { %1216 = vst.msk [vmem:[#allocation4] sm:$0x3] %vm225_vm1, %v1214_v3 }
 0x742   :  { %v1219_v4 = vpop.permute.xlu2 %1218  ;;  %v1253_v5 = vld [vmem:[#allocation4] sm:$0x3] }
 0x743   :  { %1221 = vst.msk [vmem:[#allocation7] sm:$0x3] %vm225_vm1, %v1219_v4  ;;  %v1254_v6 = vpack.c.bf16 %v1253_v5, %v1253_v5 }
 0x745   :  { %2219 = vmatmul.msk.bf16.vlgmr.msra.gmra.mxu2 %vm371_vm0, %v1254_v6 }
 0x746   :  { %1944 = vmatpush.bf16.msra.mxu2 %v2400_v8 }
 0x74a   :  { %1945 = vmatpush.bf16.msra.mxu2 %v2401_v9  ;;  %v1349_v16 = vld [vmem:[#allocation7] sm:$0x3] }
 0x778   :  { %v1336_v55 = vpop.permute.xlu2 %1335 }
 0x782   :  { %v1224_v7 = vpop.permute.xlu0 %1223 }
 0x783   :  { %1226 = vst.msk [vmem:[#allocation6] sm:$0x3] %vm225_vm1, %v1224_v7 }
 0x78a   :  { %v1274_v35 = vld [vmem:[#allocation6] sm:$0x3] }
 0x78b   :  { %v1275_v10 = vpack.c.bf16 %v1274_v35, %v1274_v35 }
 0x78d   :  { %2220 = vmatmul.msk.bf16.vlgmr.msra.gmra.mxu3 %vm371_vm0, %v1275_v10 }
 0x78e   :  { %1964 = vmatpush.bf16.msra.mxu3 %v2863_v24 }
 0x792   :  { %1965 = vmatpush.bf16.msra.mxu3 %v2868_v37 }
 0x7c8   :  { %v1267_v12 = vpop.f32.mrf.mxu2 }
 0x7c9   :  { %v1271_v13 = vadd.f32 %v1267_v12, %v1252_v11 }
 0x7cb   :  { %2320 = vtanh.f32 %v1271_v13  ;;  %v2221_v20 = vmul.f32 -1.442695, %v1271_v13 }
 0x7d0   :  { %v1269_v14 = vpop.f32.mrf.mxu2 }
 0x7d1   :  { %v2321_v15 = vpop.eup %2320 }
 0x7d2   :  { %1340 = vrot.lane.b32.xlu0 %v2321_v15, %s2721_s9 }
 0x7da   :  { %1351 = vrot.lane.b32.xlu0 %v1349_v16, %s2721_s9 }
 0x810   :  { %v1288_v18 = vpop.f32.mrf.mxu3 }
 0x811   :  { %v1292_v19 = vadd.f32 %v1288_v18, %v1273_v17  ;;  %v1422_v17 = vld [vmem:[#allocation2 + $0x8] sm:$0x3] }
 0x813   :  { %2322 = vtanh.f32 %v1292_v19  ;;  %v2222_v38 = vmul.f32 -1.442695, %v1292_v19 }
 0x814   :  { %2324 = vpow2.f32 %v2221_v20 }
 0x818   :  { %v1290_v21 = vpop.f32.mrf.mxu3 }
 0x819   :  { %v2323_v24 = vpop.eup %2322 }
 0x81a   :  { %1356 = vrot.lane.b32.xlu1 %v2323_v24, %s2721_s9  ;;  %v2325_v37 = vpop.eup %2324 }
 0x81b   :  { %v1296_v22 = vadd.f32 1.0, %v2325_v37  ;;  %v1443_v37 = vld [vmem:[#allocation3 + $0x6] sm:$0x3] }
 0x81d   :  { %2326 = vrcp.f32 %v1296_v22  ;;  %v1308_v29 = vand.u32 2147483648, %v1296_v22  ;;  %vm1302_vm13 = vweird.f32 %v1296_v22  ;;  %v1306_v30 = vand.u32 2147483647, %v1296_v22 }
 0x81e   :  { %2328 = vpow2.f32 %v2222_v38 }
 0x81f   :  { %v1309_v32 = vor.u32 1.1754944e-38, %v1308_v29  ;;  %vm1307_vm15 = vcmp.eq.f32.partialorder %v1306_v30, 8.507059e+37 }
 0x823   :  { %v2327_v23 = vpop.eup %2326 }
 0x824   :  { %v1298_v25 = vmul.f32 %v2327_v23, %v1296_v22  ;;  %vm1303_vm12 = vweird.f32 %v2327_v23  ;;  %v2329_v39 = vpop.eup %2328 }
 0x825   :  { %vm1304_vm14 = vmor %vm1302_vm13, %vm1303_vm12  ;;  %v1316_v40 = vadd.f32 1.0, %v2329_v39 }
 0x826   :  { %v1299_v26 = vsub.f32 1.0, %v1298_v25 }
 0x827   :  { %2330 = vrcp.f32 %v1316_v40  ;;  %v1328_v46 = vand.u32 2147483648, %v1316_v40  ;;  %vm1322_vm3 = vweird.f32 %v1316_v40  ;;  %v1326_v47 = vand.u32 2147483647, %v1316_v40 }
 0x828   :  { %v1300_v27 = vmul.f32 %v2327_v23, %v1299_v26 }
 0x829   :  { %v1329_v49 = vor.u32 1.1754944e-38, %v1328_v46  ;;  %vm1327_vm5 = vcmp.eq.f32.partialorder %v1326_v47, 8.507059e+37 }
 0x82a   :  { %v1301_v28 = vadd.f32 %v2327_v23, %v1300_v27 }
 0x82c   :  { %v1305_v31 = vsel %vm1304_vm14, %v2327_v23, %v1301_v28 }
 0x82d   :  { %v1310_v33 = vsel %vm1307_vm15, %v1309_v32, %v1305_v31  ;;  %v2331_v41 = vpop.eup %2330 }
 0x82e   :  { %v1318_v42 = vmul.f32 %v2331_v41, %v1316_v40  ;;  %vm1323_vm2 = vweird.f32 %v2331_v41  ;;  %v1338_v57 = vmul.f32 %v1336_v55, %v1310_v33 }
 0x82f   :  { %vm1324_vm4 = vmor %vm1322_vm3, %vm1323_vm2 }
 0x830   :  { %v1319_v43 = vsub.f32 1.0, %v1318_v42 }
 0x832   :  { %v1320_v44 = vmul.f32 %v2331_v41, %v1319_v43 }
 0x834   :  { %v1321_v45 = vadd.f32 %v2331_v41, %v1320_v44 }
 0x836   :  { %v1325_v48 = vsel %vm1324_vm4, %v2331_v41, %v1321_v45 }
 0x837   :  { %v1330_v51 = vsel %vm1327_vm5, %v1329_v49, %v1325_v48 }
 0x844   :  { %v1341_v34 = vpop.permute.xlu0 %1340 }
 0x845   :  { %v1343_v36 = vmul.f32 %v1341_v34, %v1310_v33 }
 0x847   :  { %1345 = vrot.lane.b32.xlu1 %v1343_v36, %s2721_s9 }
 0x84c   :  { %v1352_v63 = vpop.permute.xlu0 %1351 }
 0x84d   :  { %v1354_v1 = vmul.f32 %v1352_v63, %v1330_v51 }
 0x88c   :  { %v1357_v53 = vpop.permute.xlu1 %1356 }
 0x88d   :  { %v1359_v54 = vmul.f32 %v1357_v53, %v1330_v51 }
 0x88f   :  { %1361 = vrot.lane.b32.xlu2 %v1359_v54, %s2721_s9 }
 0x8b9   :  { %v1346_v59 = vpop.permute.xlu1 %1345 }
 0x8ba   :  { %v1348_v60 = vadd.f32 %v1346_v59, %v1338_v57 }
 0x8bc   :  { %2332 = vtanh.f32 %v1348_v60 }
 0x8c2   :  { %v2333_v61 = vpop.eup %2332 }
 0x8c3   :  { %1367 = vrot.lane.b32.xlu0 %v2333_v61, %s2721_s9 }
 0x8e9   :  { %v1362_v2 = vpop.permute.xlu2 %1361 }
 0x8ea   :  { %v1364_v3 = vadd.f32 %v1362_v2, %v1354_v1 }
 0x8ec   :  { %2334 = vtanh.f32 %v1364_v3 }
 0x8f2   :  { %v2335_v4 = vpop.eup %2334 }
 0x8f3   :  { %1373 = vrot.lane.b32.xlu1 %v2335_v4, %s2721_s9 }
 0x8fb   :  { %1378 = vrot.lane.b32.xlu1 %v1348_v60, %s2722_s10 }
 0x935   :  { %v1368_v5 = vpop.permute.xlu0 %1367 }
 0x936   :  { %v2983_v6 = vmul.f32 %v1368_v5, %v1310_v33 }
 0x938   :  { %1383 = vrot.lane.b32.xlu2 %v2983_v6, %s2717_s25 }
 0x940   :  { %1388 = vrot.lane.b32.xlu2 %v1364_v3, %s2722_s10 }
 0x965   :  { %v1374_v8 = vpop.permute.xlu1 %1373 }
 0x966   :  { %v2988_v9 = vmul.f32 %v1374_v8, %v1330_v51 }
 0x968   :  { %1393 = vrot.lane.b32.xlu0 %v2988_v9, %s2717_s25 }
 0x96d   :  { %v1379_v7 = vpop.permute.xlu1 %1378 }
 0x96e   :  { %1381 = vst.msk [vmem:[#allocation5] sm:$0x3] %vm225_vm1, %v1379_v7 }
 0x975   :  { %v1503_v35 = vld [vmem:[#allocation5] sm:$0x3] }
 0x976   :  { %1505 = vrot.lane.b32.xlu2 %v1503_v35, %s2721_s9 }
 0x992   :  { %v1384_v10 = vpop.permute.xlu2 %1383 }
 0x993   :  { %1386 = vst.msk [vmem:[#allocation4] sm:$0x3] %vm225_vm1, %v1384_v10 }
 0x99a   :  { %v1389_v11 = vpop.permute.xlu2 %1388  ;;  %v1423_v12 = vld [vmem:[#allocation4] sm:$0x3] }
 0x99b   :  { %1391 = vst.msk [vmem:[#allocation7] sm:$0x3] %vm225_vm1, %v1389_v11  ;;  %v1424_v13 = vpack.c.bf16 %v1423_v12, %v1423_v12 }
 0x99d   :  { %2223 = vmatmul.msk.bf16.vlgmr.msrb.gmra.mxu0 %vm371_vm0, %v1424_v13 }
 0x9a2   :  { %v1519_v24 = vld [vmem:[#allocation7] sm:$0x3] }
 0x9d0   :  { %v1506_v1 = vpop.permute.xlu2 %1505 }
 0x9da   :  { %v1394_v14 = vpop.permute.xlu0 %1393 }
 0x9db   :  { %1396 = vst.msk [vmem:[#allocation6] sm:$0x3] %vm225_vm1, %v1394_v14 }
 0x9e2   :  { %v1444_v15 = vld [vmem:[#allocation6] sm:$0x3] }
 0x9e3   :  { %v1445_v16 = vpack.c.bf16 %v1444_v15, %v1444_v15 }
 0x9e5   :  { %2224 = vmatmul.msk.bf16.vlgmr.msrb.gmra.mxu1 %vm371_vm0, %v1445_v16 }
 0xa1a   :  { %v1437_v18 = vpop.f32.mrf.mxu0 }
 0xa1b   :  { %v1441_v19 = vadd.f32 %v1437_v18, %v1422_v17 }
 0xa1d   :  { %2336 = vtanh.f32 %v1441_v19  ;;  %v2225_v25 = vmul.f32 -1.442695, %v1441_v19 }
 0xa22   :  { %v1439_v20 = vpop.f32.mrf.mxu0 }
 0xa23   :  { %v2337_v21 = vpop.eup %2336 }
 0xa24   :  { %1510 = vrot.lane.b32.xlu0 %v2337_v21, %s2721_s9 }
 0xa2c   :  { %1521 = vrot.lane.b32.xlu0 %v1519_v24, %s2721_s9 }
 0xa62   :  { %v1458_v22 = vpop.f32.mrf.mxu1 }
 0xa63   :  { %v1462_v23 = vadd.f32 %v1458_v22, %v1443_v37 }
 0xa65   :  { %2338 = vtanh.f32 %v1462_v23  ;;  %v2226_v44 = vmul.f32 -1.442695, %v1462_v23  ;;  %v1592_v23 = vld [vmem:[#allocation2 + $0xa] sm:$0x3] }
 0xa66   :  { %2340 = vpow2.f32 %v2225_v25 }
 0xa6a   :  { %v1460_v26 = vpop.f32.mrf.mxu1 }
 0xa6b   :  { %v2339_v27 = vpop.eup %2338 }
 0xa6c   :  { %1526 = vrot.lane.b32.xlu1 %v2339_v27, %s2721_s9  ;;  %v2341_v28 = vpop.eup %2340 }
 0xa6d   :  { %v1466_v29 = vadd.f32 1.0, %v2341_v28 }
 0xa6f   :  { %2342 = vrcp.f32 %v1466_v29  ;;  %v1478_v36 = vand.u32 2147483648, %v1466_v29  ;;  %vm1472_vm7 = vweird.f32 %v1466_v29  ;;  %v1476_v38 = vand.u32 2147483647, %v1466_v29 }
 0xa70   :  { %2344 = vpow2.f32 %v2226_v44 }
 0xa71   :  { %v1479_v40 = vor.u32 1.1754944e-38, %v1478_v36  ;;  %vm1477_vm9 = vcmp.eq.f32.partialorder %v1476_v38, 8.507059e+37 }
 0xa75   :  { %v2343_v30 = vpop.eup %2342 }
 0xa76   :  { %v1468_v31 = vmul.f32 %v2343_v30, %v1466_v29  ;;  %vm1473_vm6 = vweird.f32 %v2343_v30  ;;  %v2345_v45 = vpop.eup %2344 }
 0xa77   :  { %vm1474_vm8 = vmor %vm1472_vm7, %vm1473_vm6  ;;  %v1486_v46 = vadd.f32 1.0, %v2345_v45 }
 0xa78   :  { %v1469_v32 = vsub.f32 1.0, %v1468_v31 }
 0xa79   :  { %2346 = vrcp.f32 %v1486_v46  ;;  %v1498_v54 = vand.u32 2147483648, %v1486_v46  ;;  %vm1492_vm11 = vweird.f32 %v1486_v46  ;;  %v1496_v55 = vand.u32 2147483647, %v1486_v46 }
 0xa7a   :  { %v1470_v33 = vmul.f32 %v2343_v30, %v1469_v32 }
 0xa7b   :  { %v1499_v59 = vor.u32 1.1754944e-38, %v1498_v54  ;;  %vm1497_vm13 = vcmp.eq.f32.partialorder %v1496_v55, 8.507059e+37 }
 0xa7c   :  { %v1471_v34 = vadd.f32 %v2343_v30, %v1470_v33 }
 0xa7e   :  { %v1475_v39 = vsel %vm1474_vm8, %v2343_v30, %v1471_v34  ;;  %v1613_v30 = vld [vmem:[#allocation3 + $0x4] sm:$0x3] }
 0xa7f   :  { %v1480_v42 = vsel %vm1477_vm9, %v1479_v40, %v1475_v39  ;;  %v2347_v47 = vpop.eup %2346 }
 0xa80   :  { %v1488_v48 = vmul.f32 %v2347_v47, %v1486_v46  ;;  %vm1493_vm10 = vweird.f32 %v2347_v47  ;;  %v1508_v2 = vmul.f32 %v1506_v1, %v1480_v42 }
 0xa81   :  { %vm1494_vm12 = vmor %vm1492_vm11, %vm1493_vm10 }
 0xa82   :  { %v1489_v49 = vsub.f32 1.0, %v1488_v48 }
 0xa84   :  { %v1490_v51 = vmul.f32 %v2347_v47, %v1489_v49 }
 0xa86   :  { %v1491_v53 = vadd.f32 %v2347_v47, %v1490_v51 }
 0xa88   :  { %v1495_v57 = vsel %vm1494_vm12, %v2347_v47, %v1491_v53 }
 0xa89   :  { %v1500_v60 = vsel %vm1497_vm13, %v1499_v59, %v1495_v57 }
 0xa96   :  { %v1511_v41 = vpop.permute.xlu0 %1510 }
 0xa97   :  { %v1513_v43 = vmul.f32 %v1511_v41, %v1480_v42 }
 0xa99   :  { %1515 = vrot.lane.b32.xlu1 %v1513_v43, %s2721_s9 }
 0xa9e   :  { %v1522_v8 = vpop.permute.xlu0 %1521 }
 0xa9f   :  { %v1524_v7 = vmul.f32 %v1522_v8, %v1500_v60 }
 0xade   :  { %v1527_v61 = vpop.permute.xlu1 %1526 }
 0xadf   :  { %v1529_v63 = vmul.f32 %v1527_v61, %v1500_v60 }
 0xae1   :  { %1531 = vrot.lane.b32.xlu2 %v1529_v63, %s2721_s9 }
 0xb0b   :  { %v1516_v3 = vpop.permute.xlu1 %1515 }
 0xb0c   :  { %v1518_v4 = vadd.f32 %v1516_v3, %v1508_v2 }
 0xb0e   :  { %2348 = vtanh.f32 %v1518_v4 }
 0xb14   :  { %v2349_v5 = vpop.eup %2348 }
 0xb15   :  { %1537 = vrot.lane.b32.xlu0 %v2349_v5, %s2721_s9 }
 0xb3b   :  { %v1532_v35 = vpop.permute.xlu2 %1531 }
 0xb3c   :  { %v1534_v10 = vadd.f32 %v1532_v35, %v1524_v7 }
 0xb3e   :  { %2350 = vtanh.f32 %v1534_v10 }
 0xb44   :  { %v2351_v11 = vpop.eup %2350 }
 0xb45   :  { %1543 = vrot.lane.b32.xlu1 %v2351_v11, %s2721_s9 }
 0xb4d   :  { %1548 = vrot.lane.b32.xlu1 %v1518_v4, %s2722_s10 }
 0xb87   :  { %v1538_v12 = vpop.permute.xlu0 %1537 }
 0xb88   :  { %v3007_v13 = vmul.f32 %v1538_v12, %v1480_v42 }
 0xb8a   :  { %1553 = vrot.lane.b32.xlu2 %v3007_v13, %s2717_s25 }
 0xb92   :  { %1558 = vrot.lane.b32.xlu2 %v1534_v10, %s2722_s10 }
 0xbb7   :  { %v1544_v14 = vpop.permute.xlu1 %1543 }
 0xbb8   :  { %v3012_v15 = vmul.f32 %v1544_v14, %v1500_v60 }
 0xbba   :  { %1563 = vrot.lane.b32.xlu0 %v3012_v15, %s2717_s25 }
 0xbbf   :  { %v1549_v16 = vpop.permute.xlu1 %1548 }
 0xbc0   :  { %1551 = vst.msk [vmem:[#allocation5] sm:$0x3] %vm225_vm1, %v1549_v16 }
 0xbc7   :  { %v1673_v17 = vld [vmem:[#allocation5] sm:$0x3] }
 0xbc8   :  { %1675 = vrot.lane.b32.xlu2 %v1673_v17, %s2721_s9 }
 0xbe4   :  { %v1554_v18 = vpop.permute.xlu2 %1553 }
 0xbe5   :  { %1556 = vst.msk [vmem:[#allocation4] sm:$0x3] %vm225_vm1, %v1554_v18 }
 0xbec   :  { %v1559_v19 = vpop.permute.xlu2 %1558  ;;  %v1593_v20 = vld [vmem:[#allocation4] sm:$0x3] }
 0xbed   :  { %1561 = vst.msk [vmem:[#allocation7] sm:$0x3] %vm225_vm1, %v1559_v19  ;;  %v1594_v21 = vpack.c.bf16 %v1593_v20, %v1593_v20 }
 0xbef   :  { %2227 = vmatmul.msk.bf16.vlgmr.msrb.gmra.mxu2 %vm371_vm0, %v1594_v21 }
 0xbf4   :  { %v1689_v29 = vld [vmem:[#allocation7] sm:$0x3] }
 0xc22   :  { %v1676_v10 = vpop.permute.xlu2 %1675 }
 0xc2c   :  { %v1564_v24 = vpop.permute.xlu0 %1563 }
 0xc2d   :  { %1566 = vst.msk [vmem:[#allocation6] sm:$0x3] %vm225_vm1, %v1564_v24 }
 0xc34   :  { %v1614_v37 = vld [vmem:[#allocation6] sm:$0x3] }
 0xc35   :  { %v1615_v22 = vpack.c.bf16 %v1614_v37, %v1614_v37 }
 0xc37   :  { %2228 = vmatmul.msk.bf16.vlgmr.msrb.gmra.mxu3 %vm371_vm0, %v1615_v22 }
 0xc72   :  { %v1607_v25 = vpop.f32.mrf.mxu2 }
 0xc73   :  { %v1611_v26 = vadd.f32 %v1607_v25, %v1592_v23 }
 0xc75   :  { %2352 = vtanh.f32 %v1611_v26  ;;  %v2229_v33 = vmul.f32 -1.442695, %v1611_v26 }
 0xc7a   :  { %v1609_v27 = vpop.f32.mrf.mxu2 }
 0xc7b   :  { %v2353_v28 = vpop.eup %2352 }
 0xc7c   :  { %1680 = vrot.lane.b32.xlu0 %v2353_v28, %s2721_s9 }
 0xc84   :  { %1691 = vrot.lane.b32.xlu0 %v1689_v29, %s2721_s9 }
 0xcba   :  { %v1628_v31 = vpop.f32.mrf.mxu3 }
 0xcbb   :  { %v1632_v32 = vadd.f32 %v1628_v31, %v1613_v30 }
 0xcbd   :  { %2354 = vtanh.f32 %v1632_v32  ;;  %v2230_v54 = vmul.f32 -1.442695, %v1632_v32 }
 0xcbe   :  { %2356 = vpow2.f32 %v2229_v33 }
 0xcc2   :  { %v1630_v34 = vpop.f32.mrf.mxu3 }
 0xcc3   :  { %v2355_v36 = vpop.eup %2354  ;;  %v1762_v34 = vld [vmem:[#allocation2 + $0xc] sm:$0x3] }
 0xcc4   :  { %1696 = vrot.lane.b32.xlu1 %v2355_v36, %s2721_s9  ;;  %v2357_v38 = vpop.eup %2356 }
 0xcc5   :  { %v1636_v39 = vadd.f32 1.0, %v2357_v38 }
 0xcc7   :  { %2358 = vrcp.f32 %v1636_v39  ;;  %v1648_v45 = vand.u32 2147483648, %v1636_v39  ;;  %vm1642_vm15 = vweird.f32 %v1636_v39  ;;  %v1646_v46 = vand.u32 2147483647, %v1636_v39 }
 0xcc8   :  { %2360 = vpow2.f32 %v2230_v54 }
 0xcc9   :  { %v1649_v48 = vor.u32 1.1754944e-38, %v1648_v45  ;;  %vm1647_vm3 = vcmp.eq.f32.partialorder %v1646_v46, 8.507059e+37 }
 0xccd   :  { %v2359_v40 = vpop.eup %2358 }
 0xcce   :  { %v1638_v41 = vmul.f32 %v2359_v40, %v1636_v39  ;;  %vm1643_vm14 = vweird.f32 %v2359_v40  ;;  %v2361_v55 = vpop.eup %2360 }
 0xccf   :  { %vm1644_vm2 = vmor %vm1642_vm15, %vm1643_vm14  ;;  %v1656_v57 = vadd.f32 1.0, %v2361_v55 }
 0xcd0   :  { %v1639_v42 = vsub.f32 1.0, %v1638_v41 }
 0xcd1   :  { %2362 = vrcp.f32 %v1656_v57  ;;  %v1668_v2 = vand.u32 2147483648, %v1656_v57  ;;  %vm1662_vm5 = vweird.f32 %v1656_v57  ;;  %v1666_v3 = vand.u32 2147483647, %v1656_v57 }
 0xcd2   :  { %v1640_v43 = vmul.f32 %v2359_v40, %v1639_v42  ;;  %v1783_v42 = vld [vmem:[#allocation3 + $0x2] sm:$0x3] }
 0xcd3   :  { %v1669_v5 = vor.u32 1.1754944e-38, %v1668_v2  ;;  %vm1667_vm7 = vcmp.eq.f32.partialorder %v1666_v3, 8.507059e+37 }
 0xcd4   :  { %v1641_v44 = vadd.f32 %v2359_v40, %v1640_v43 }
 0xcd6   :  { %v1645_v47 = vsel %vm1644_vm2, %v2359_v40, %v1641_v44  ;;  %vm889_vm2 = vcmask 1040384  }
 0xcd7   :  { %v1650_v49 = vsel %vm1647_vm3, %v1649_v48, %v1645_v47  ;;  %v2363_v59 = vpop.eup %2362 }
 0xcd8   :  { %v1658_v60 = vmul.f32 %v2363_v59, %v1656_v57  ;;  %vm1663_vm4 = vweird.f32 %v2363_v59  ;;  %v1678_v11 = vmul.f32 %v1676_v10, %v1650_v49 }
 0xcd9   :  { %vm1664_vm6 = vmor %vm1662_vm5, %vm1663_vm4 }
 0xcda   :  { %v1659_v61 = vsub.f32 1.0, %v1658_v60 }
 0xcdc   :  { %v1660_v63 = vmul.f32 %v2363_v59, %v1659_v61 }
 0xcde   :  { %v1661_v1 = vadd.f32 %v2363_v59, %v1660_v63 }
 0xce0   :  { %v1665_v4 = vsel %vm1664_vm6, %v2363_v59, %v1661_v1  ;;  %vm897_vm6 = vcmask 253952  }
 0xce1   :  { %v1670_v8 = vsel %vm1667_vm7, %v1669_v5, %v1665_v4 }
 0xcee   :  { %v1681_v51 = vpop.permute.xlu0 %1680 }
 0xcef   :  { %v1683_v53 = vmul.f32 %v1681_v51, %v1650_v49 }
 0xcf1   :  { %1685 = vrot.lane.b32.xlu1 %v1683_v53, %s2721_s9 }
 0xcf6   :  { %v1692_v17 = vpop.permute.xlu0 %1691 }
 0xcf7   :  { %v1694_v18 = vmul.f32 %v1692_v17, %v1670_v8 }
 0xd36   :  { %v1697_v7 = vpop.permute.xlu1 %1696 }
 0xd37   :  { %v1699_v35 = vmul.f32 %v1697_v7, %v1670_v8 }
 0xd39   :  { %1701 = vrot.lane.b32.xlu2 %v1699_v35, %s2721_s9 }
 0xd63   :  { %v1686_v12 = vpop.permute.xlu1 %1685 }
 0xd64   :  { %v1688_v14 = vadd.f32 %v1686_v12, %v1678_v11 }
 0xd66   :  { %2364 = vtanh.f32 %v1688_v14 }
 0xd6c   :  { %v2365_v16 = vpop.eup %2364 }
 0xd6d   :  { %1707 = vrot.lane.b32.xlu0 %v2365_v16, %s2721_s9 }
 0xd93   :  { %v1702_v19 = vpop.permute.xlu2 %1701 }
 0xd94   :  { %v1704_v20 = vadd.f32 %v1702_v19, %v1694_v18 }
 0xd96   :  { %2366 = vtanh.f32 %v1704_v20 }
 0xd9c   :  { %v2367_v21 = vpop.eup %2366 }
 0xd9d   :  { %1713 = vrot.lane.b32.xlu1 %v2367_v21, %s2721_s9 }
 0xda5   :  { %1718 = vrot.lane.b32.xlu1 %v1688_v14, %s2722_s10 }
 0xddf   :  { %v1708_v24 = vpop.permute.xlu0 %1707 }
 0xde0   :  { %v3031_v37 = vmul.f32 %v1708_v24, %v1650_v49 }
 0xde2   :  { %1723 = vrot.lane.b32.xlu2 %v3031_v37, %s2717_s25 }
 0xdea   :  { %1728 = vrot.lane.b32.xlu2 %v1704_v20, %s2722_s10 }
 0xe0f   :  { %v1714_v22 = vpop.permute.xlu1 %1713 }
 0xe10   :  { %v3036_v23 = vmul.f32 %v1714_v22, %v1670_v8 }
 0xe12   :  { %1733 = vrot.lane.b32.xlu0 %v3036_v23, %s2717_s25 }
 0xe17   :  { %v1719_v25 = vpop.permute.xlu1 %1718 }
 0xe18   :  { %1721 = vst.msk [vmem:[#allocation5] sm:$0x3] %vm225_vm1, %v1719_v25 }
 0xe1f   :  { %v1843_v26 = vld [vmem:[#allocation5] sm:$0x3] }
 0xe20   :  { %1845 = vrot.lane.b32.xlu2 %v1843_v26, %s2721_s9 }
 0xe3c   :  { %v1724_v27 = vpop.permute.xlu2 %1723 }
 0xe3d   :  { %1726 = vst.msk [vmem:[#allocation4] sm:$0x3] %vm225_vm1, %v1724_v27 }
 0xe44   :  { %v1729_v28 = vpop.permute.xlu2 %1728  ;;  %v1763_v29 = vld [vmem:[#allocation4] sm:$0x3] }
 0xe45   :  { %1731 = vst.msk [vmem:[#allocation7] sm:$0x3] %vm225_vm1, %v1729_v28  ;;  %v1764_v30 = vpack.c.bf16 %v1763_v29, %v1763_v29 }
 0xe47   :  { %2231 = vmatmul.msk.bf16.vlgmr.msra.gmra.mxu0 %vm371_vm0, %v1764_v30 }
 0xe4c   :  { %v1859_v41 = vld [vmem:[#allocation7] sm:$0x3] }
 0xe7a   :  { %v1846_v24 = vpop.permute.xlu2 %1845 }
 0xe84   :  { %v1734_v31 = vpop.permute.xlu0 %1733 }
 0xe85   :  { %1736 = vst.msk [vmem:[#allocation6] sm:$0x3] %vm225_vm1, %v1734_v31 }
 0xe8c   :  { %v1784_v32 = vld [vmem:[#allocation6] sm:$0x3] }
 0xe8d   :  { %v1785_v33 = vpack.c.bf16 %v1784_v32, %v1784_v32 }
 0xe8f   :  { %2232 = vmatmul.msk.bf16.vlgmr.msra.gmra.mxu1 %vm371_vm0, %v1785_v33 }
 0xec4   :  { %v1777_v36 = vpop.f32.mrf.mxu0 }
 0xec5   :  { %v1781_v38 = vadd.f32 %v1777_v36, %v1762_v34 }
 0xec7   :  { %2368 = vtanh.f32 %v1781_v38  ;;  %v2233_v45 = vmul.f32 -1.442695, %v1781_v38 }
 0xecc   :  { %v1779_v39 = vpop.f32.mrf.mxu0 }
 0xecd   :  { %v2369_v40 = vpop.eup %2368 }
 0xece   :  { %1850 = vrot.lane.b32.xlu0 %v2369_v40, %s2721_s9 }
 0xed6   :  { %1861 = vrot.lane.b32.xlu0 %v1859_v41, %s2721_s9 }
 0xf0c   :  { %v1798_v43 = vpop.f32.mrf.mxu1 }
 0xf0d   :  { %v1802_v44 = vadd.f32 %v1798_v43, %v1783_v42 }
 0xf0f   :  { %2370 = vtanh.f32 %v1802_v44  ;;  %v2234_v4 = vmul.f32 -1.442695, %v1802_v44 }
 0xf10   :  { %2372 = vpow2.f32 %v2233_v45 }
 0xf14   :  { %v1800_v46 = vpop.f32.mrf.mxu1 }
 0xf15   :  { %v2371_v47 = vpop.eup %2370 }
 0xf16   :  { %1866 = vrot.lane.b32.xlu1 %v2371_v47, %s2721_s9  ;;  %v2373_v48 = vpop.eup %2372 }
 0xf17   :  { %v1806_v49 = vadd.f32 1.0, %v2373_v48  ;;  %v1932_v48 = vld [vmem:[#allocation2 + $0xe] sm:$0x3] }
 0xf19   :  { %2374 = vrcp.f32 %v1806_v49  ;;  %v1818_v59 = vand.u32 2147483648, %v1806_v49  ;;  %vm1812_vm9 = vweird.f32 %v1806_v49  ;;  %v1816_v60 = vand.u32 2147483647, %v1806_v49 }
 0xf1a   :  { %2376 = vpow2.f32 %v2234_v4 }
 0xf1b   :  { %v1819_v63 = vor.u32 1.1754944e-38, %v1818_v59  ;;  %vm1817_vm11 = vcmp.eq.f32.partialorder %v1816_v60, 8.507059e+37 }
 0xf1f   :  { %v2375_v51 = vpop.eup %2374 }
 0xf20   :  { %v1808_v53 = vmul.f32 %v2375_v51, %v1806_v49  ;;  %vm1813_vm8 = vweird.f32 %v2375_v51  ;;  %v2377_v5 = vpop.eup %2376 }
 0xf21   :  { %vm1814_vm10 = vmor %vm1812_vm9, %vm1813_vm8  ;;  %v1826_v8 = vadd.f32 1.0, %v2377_v5 }
 0xf22   :  { %v1809_v54 = vsub.f32 1.0, %v1808_v53 }
 0xf23   :  { %2378 = vrcp.f32 %v1826_v8  ;;  %v1838_v14 = vand.u32 2147483648, %v1826_v8  ;;  %vm1832_vm13 = vweird.f32 %v1826_v8  ;;  %v1836_v16 = vand.u32 2147483647, %v1826_v8 }
 0xf24   :  { %v1810_v55 = vmul.f32 %v2375_v51, %v1809_v54 }
 0xf25   :  { %v1839_v18 = vor.u32 1.1754944e-38, %v1838_v14  ;;  %vm1837_vm15 = vcmp.eq.f32.partialorder %v1836_v16, 8.507059e+37 }
 0xf26   :  { %v1811_v57 = vadd.f32 %v2375_v51, %v1810_v55  ;;  %v899_v55 = vpack.c.bf16 %v2906_v52, %v2906_v52 }
 0xf28   :  { %v1815_v61 = vsel %vm1814_vm10, %v2375_v51, %v1811_v57  ;;  %v901_v59 = vrot.slane %v899_v55, 3 }
 0xf29   :  { %v1820_v2 = vsel %vm1817_vm11, %v1819_v63, %v1815_v61  ;;  %v2379_v7 = vpop.eup %2378  ;;  %v1952_v61 = vld [vmem:[#allocation3] sm:$0x3] }
 0xf2a   :  { %v1828_v35 = vmul.f32 %v2379_v7, %v1826_v8  ;;  %vm1833_vm12 = vweird.f32 %v2379_v7  ;;  %v1848_v22 = vmul.f32 %v1846_v24, %v1820_v2  ;;  %v904_v60 = vsel %vm889_vm2, %v899_v55, %v901_v59 }
 0xf2b   :  { %vm1834_vm14 = vmor %vm1832_vm13, %vm1833_vm12 }
 0xf2c   :  { %v1829_v10 = vsub.f32 1.0, %v1828_v35 }
 0xf2e   :  { %v1830_v11 = vmul.f32 %v2379_v7, %v1829_v10 }
 0xf30   :  { %v1831_v12 = vadd.f32 %v2379_v7, %v1830_v11 }
 0xf32   :  { %v1835_v17 = vsel %vm1834_vm14, %v2379_v7, %v1831_v12 }
 0xf33   :  { %v1840_v19 = vsel %vm1837_vm15, %v1839_v18, %v1835_v17 }
 0xf40   :  { %v1851_v1 = vpop.permute.xlu0 %1850 }
 0xf41   :  { %v1853_v3 = vmul.f32 %v1851_v1, %v1820_v2 }
 0xf43   :  { %1855 = vrot.lane.b32.xlu1 %v1853_v3, %s2721_s9 }
 0xf48   :  { %v1862_v28 = vpop.permute.xlu0 %1861 }
 0xf49   :  { %v1864_v29 = vmul.f32 %v1862_v28, %v1840_v19 }
 0xf88   :  { %v1867_v20 = vpop.permute.xlu1 %1866 }
 0xf89   :  { %v1869_v21 = vmul.f32 %v1867_v20, %v1840_v19 }
 0xf8b   :  { %1871 = vrot.lane.b32.xlu2 %v1869_v21, %s2721_s9 }
 0xfb5   :  { %v1856_v25 = vpop.permute.xlu1 %1855 }
 0xfb6   :  { %v1858_v26 = vadd.f32 %v1856_v25, %v1848_v22 }
 0xfb8   :  { %2380 = vtanh.f32 %v1858_v26 }
 0xfbe   :  { %v2381_v27 = vpop.eup %2380 }
 0xfbf   :  { %1877 = vrot.lane.b32.xlu0 %v2381_v27, %s2721_s9 }
 0xfe5   :  { %v1872_v30 = vpop.permute.xlu2 %1871 }
 0xfe6   :  { %v1874_v31 = vadd.f32 %v1872_v30, %v1864_v29 }
 0xfe8   :  { %2382 = vtanh.f32 %v1874_v31 }
 0xfee   :  { %v2383_v32 = vpop.eup %2382 }
 0xfef   :  { %1883 = vrot.lane.b32.xlu1 %v2383_v32, %s2721_s9 }
 0xff7   :  { %1888 = vrot.lane.b32.xlu1 %v1858_v26, %s2722_s10 }
0x1031   :  { %v1878_v33 = vpop.permute.xlu0 %1877 }
0x1032   :  { %v3055_v34 = vmul.f32 %v1878_v33, %v1820_v2 }
0x1034   :  { %1893 = vrot.lane.b32.xlu2 %v3055_v34, %s2717_s25 }
0x103c   :  { %1898 = vrot.lane.b32.xlu2 %v1874_v31, %s2722_s10 }
0x1061   :  { %v1884_v36 = vpop.permute.xlu1 %1883 }
0x1062   :  { %v3060_v38 = vmul.f32 %v1884_v36, %v1840_v19 }
0x1064   :  { %1903 = vrot.lane.b32.xlu0 %v3060_v38, %s2717_s25 }
0x1069   :  { %v1889_v39 = vpop.permute.xlu1 %1888 }
0x106a   :  { %1891 = vst.msk [vmem:[#allocation5] sm:$0x3] %vm225_vm1, %v1889_v39 }
0x1071   :  { %v2012_v40 = vld [vmem:[#allocation5] sm:$0x3] }
0x1072   :  { %2014 = vrot.lane.b32.xlu2 %v2012_v40, %s2721_s9 }
0x108e   :  { %v1894_v41 = vpop.permute.xlu2 %1893 }
0x108f   :  { %1896 = vst.msk [vmem:[#allocation4] sm:$0x3] %vm225_vm1, %v1894_v41 }
0x1096   :  { %v1899_v42 = vpop.permute.xlu2 %1898  ;;  %v1933_v43 = vld [vmem:[#allocation4] sm:$0x3] }
0x1097   :  { %1901 = vst.msk [vmem:[#allocation7] sm:$0x3] %vm225_vm1, %v1899_v42  ;;  %v1934_v44 = vpack.c.bf16 %v1933_v43, %v1933_v43  ;;  %v886_v43 = vpack.c.bf16 %v2901_v50, %v2901_v50  ;;  %v1579_v50 = vpack.c.bf16 %v3012_v15, %v3012_v15 }
0x1099   :  { %2235 = vmatmul.msk.bf16.vlgmr.msra.gmra.mxu2 %vm371_vm0, %v1934_v44  ;;  %v888_v44 = vrot.slane %v886_v43, 3 }
0x109e   :  { %v2028_v57 = vld [vmem:[#allocation7] sm:$0x3] }
0x10cc   :  { %v2015_v59 = vpop.permute.xlu2 %2014 }
0x10d6   :  { %v1904_v45 = vpop.permute.xlu0 %1903 }
0x10d7   :  { %1906 = vst.msk [vmem:[#allocation6] sm:$0x3] %vm225_vm1, %v1904_v45  ;;  %v1069_v45 = vpack.c.bf16 %v2934_v58, %v2934_v58  ;;  %v1581_v58 = vrot.slane %v1579_v50, 3 }
0x10d9   :  { %v1584_v55 = vsel %vm889_vm2, %v1579_v50, %v1581_v58 }
0x10de   :  { %v1953_v46 = vld [vmem:[#allocation6] sm:$0x3] }
0x10df   :  { %v1954_v47 = vpack.c.bf16 %v1953_v46, %v1953_v46  ;;  %v892_v46 = vsel %vm889_vm2, %v886_v43, %v888_v44 }
0x10e1   :  { %2236 = vmatmul.msk.bf16.vlgmr.msra.gmra.mxu3 %vm371_vm0, %v1954_v47  ;;  %v1071_v47 = vrot.slane %v1069_v45, 3 }
0x111c   :  { %v1947_v49 = vpop.f32.mrf.mxu2 }
0x111d   :  { %v1951_v51 = vadd.f32 %v1947_v49, %v1932_v48  ;;  %v1397_v48 = vpack.c.bf16 %v2983_v6, %v2983_v6  ;;  %v1074_v49 = vsel %vm889_vm2, %v1069_v45, %v1071_v47 }
0x111f   :  { %2384 = vtanh.f32 %v1951_v51  ;;  %v2237_v2 = vmul.f32 -1.442695, %v1951_v51  ;;  %v1399_v51 = vrot.slane %v1397_v48, 3 }
0x1124   :  { %v1949_v53 = vpop.f32.mrf.mxu2 }
0x1125   :  { %v2385_v54 = vpop.eup %2384  ;;  %v1402_v53 = vsel %vm889_vm2, %v1397_v48, %v1399_v51 }
0x1126   :  { %2019 = vrot.lane.b32.xlu0 %v2385_v54, %s2721_s9  ;;  %v1907_v54 = vpack.c.bf16 %v3055_v34, %v3055_v34 }
0x1128   :  { %v1909_v6 = vrot.slane %v1907_v54, 3 }
0x112e   :  { %2030 = vrot.lane.b32.xlu0 %v2028_v57, %s2721_s9  ;;  %v1912_v57 = vsel %vm889_vm2, %v1907_v54, %v1909_v6 }
0x1136   :  { %906 = vrot.lane.b32.xlu0 %v904_v60, %s2717_s25 }
0x1164   :  { %v1967_v63 = vpop.f32.mrf.mxu3 }
0x1165   :  { %v1971_v1 = vadd.f32 %v1967_v63, %v1952_v61 }
0x1167   :  { %2386 = vtanh.f32 %v1971_v1  ;;  %v2238_v22 = vmul.f32 -1.442695, %v1971_v1  ;;  %v1227_v1 = vpack.c.bf16 %v2957_v62, %v2957_v62  ;;  %v1919_v62 = vpack.c.bf16 %v3060_v38, %v3060_v38 }
0x1168   :  { %2388 = vpow2.f32 %v2237_v2  ;;  %v1409_v2 = vpack.c.bf16 %v2988_v9, %v2988_v9  ;;  %v1057_v38 = vpack.c.bf16 %v2929_v56, %v2929_v56  ;;  %v1567_v56 = vpack.c.bf16 %v3007_v13, %v3007_v13 }
0x1169   :  { %v1229_v34 = vrot.slane %v1227_v1, 3  ;;  %v1921_v9 = vrot.slane %v1919_v62, 3 }
0x116c   :  { %v1969_v3 = vpop.f32.mrf.mxu3 }
0x116d   :  { %v2387_v4 = vpop.eup %2386  ;;  %v1232_v3 = vsel %vm889_vm2, %v1227_v1, %v1229_v34 }
0x116e   :  { %2035 = vrot.lane.b32.xlu1 %v2387_v4, %s2721_s9  ;;  %v2389_v52 = vpop.eup %2388  ;;  %v1411_v4 = vrot.slane %v1409_v2, 3 }
0x116f   :  { %v1975_v5 = vadd.f32 1.0, %v2389_v52  ;;  %v1737_v52 = vpack.c.bf16 %v3031_v37, %v3031_v37 }
0x1171   :  { %2390 = vrcp.f32 %v1975_v5  ;;  %v1987_v12 = vand.u32 2147483648, %v1975_v5  ;;  %vm1981_vm3 = vweird.f32 %v1975_v5  ;;  %v1985_v14 = vand.u32 2147483647, %v1975_v5 }
0x1172   :  { %2392 = vpow2.f32 %v2238_v22 }
0x1173   :  { %v1988_v17 = vor.u32 1.1754944e-38, %v1987_v12  ;;  %vm1986_vm5 = vcmp.eq.f32.partialorder %v1985_v14, 8.507059e+37 }
0x1177   :  { %v2391_v8 = vpop.eup %2390 }
0x1178   :  { %v1977_v7 = vmul.f32 %v2391_v8, %v1975_v5  ;;  %vm1982_vm0 = vweird.f32 %v2391_v8  ;;  %v2393_v25 = vpop.eup %2392  ;;  %v1414_v5 = vsel %vm889_vm2, %v1409_v2, %v1411_v4 }
0x1179   :  { %vm1983_vm4 = vmor %vm1981_vm3, %vm1982_vm0  ;;  %v1995_v26 = vadd.f32 1.0, %v2393_v25  ;;  %v1569_v25 = vrot.slane %v1567_v56, 3 }
0x117a   :  { %v1978_v35 = vsub.f32 1.0, %v1977_v7 }
0x117b   :  { %2394 = vrcp.f32 %v1995_v26  ;;  %v2007_v32 = vand.u32 2147483648, %v1995_v26  ;;  %vm2001_vm8 = vweird.f32 %v1995_v26  ;;  %v2005_v33 = vand.u32 2147483647, %v1995_v26 }
0x117c   :  { %v1979_v10 = vmul.f32 %v2391_v8, %v1978_v35  ;;  %v1924_v35 = vsel %vm889_vm2, %v1919_v62, %v1921_v9 }
0x117d   :  { %v2008_v39 = vor.u32 1.1754944e-38, %v2007_v32  ;;  %vm2006_vm10 = vcmp.eq.f32.partialorder %v2005_v33, 8.507059e+37 }
0x117e   :  { %v1980_v11 = vadd.f32 %v2391_v8, %v1979_v10 }
0x1180   :  { %v1984_v16 = vsel %vm1983_vm4, %v2391_v8, %v1980_v11  ;;  %v1739_v8 = vrot.slane %v1737_v52, 3 }
0x1181   :  { %v3078_v18 = vsel %vm1986_vm5, %v1988_v17, %v1984_v16  ;;  %v2395_v27 = vpop.eup %2394  ;;  %v1059_v16 = vrot.slane %v1057_v38, 3 }
0x1182   :  { %v1997_v28 = vmul.f32 %v2395_v27, %v1995_v26  ;;  %vm2002_vm7 = vweird.f32 %v2395_v27  ;;  %v2017_v15 = vmul.f32 %v2015_v59, %v3078_v18  ;;  %v1742_v7 = vsel %vm889_vm2, %v1737_v52, %v1739_v8 }
0x1183   :  { %vm2003_vm9 = vmor %vm2001_vm8, %vm2002_vm7 }
0x1184   :  { %v1998_v29 = vsub.f32 1.0, %v1997_v28 }
0x1186   :  { %v1999_v30 = vmul.f32 %v2395_v27, %v1998_v29 }
0x1188   :  { %v2000_v31 = vadd.f32 %v2395_v27, %v1999_v30 }
0x118a   :  { %v2004_v36 = vsel %vm2003_vm9, %v2395_v27, %v2000_v31  ;;  %v1572_v27 = vsel %vm889_vm2, %v1567_v56, %v1569_v25 }
0x118b   :  { %v3085_v40 = vsel %vm2006_vm10, %v2008_v39, %v2004_v36 }
0x1198   :  { %v2020_v19 = vpop.permute.xlu0 %2019 }
0x1199   :  { %v2022_v20 = vmul.f32 %v2020_v19, %v3078_v18  ;;  %v1239_v19 = vpack.c.bf16 %v2962_v0, %v2962_v0  ;;  %v1749_v0 = vpack.c.bf16 %v3036_v23, %v3036_v23 }
0x119b   :  { %2024 = vrot.lane.b32.xlu1 %v2022_v20, %s2721_s9  ;;  %v1062_v20 = vsel %vm889_vm2, %v1057_v38, %v1059_v16  ;;  %v1751_v28 = vrot.slane %v1749_v0, 3 }
0x119d   :  { %v1754_v13 = vsel %vm889_vm2, %v1749_v0, %v1751_v28 }
0x11a0   :  { %v3082_v21 = vpop.permute.xlu0 %2030 }
0x11a1   :  { %v2033_v37 = vmul.f32 %v3082_v21, %v3085_v40  ;;  %v1241_v21 = vrot.slane %v1239_v19, 3 }
0x11a3   :  { %v1244_v22 = vsel %vm889_vm2, %v1239_v19, %v1241_v21 }
0x11a8   :  { %v907_v24 = vpop.permute.xlu0 %906 }
0x11a9   :  { %910 = vst.msk [vmem:[#allocation26 + $0x7] sm:$0x1] %vm897_vm6, %v907_v24 }
0x11e0   :  { %v2036_v41 = vpop.permute.xlu1 %2035 }
0x11e1   :  { %v2038_v42 = vmul.f32 %v2036_v41, %v3085_v40 }
0x11e3   :  { %2040 = vrot.lane.b32.xlu2 %v2038_v42, %s2721_s9 }
0x11eb   :  { %894 = vrot.lane.b32.xlu2 %v892_v46, %s2717_s25 }
0x11f3   :  { %1076 = vrot.lane.b32.xlu2 %v1074_v49, %s2717_s25 }
0x11fb   :  { %1404 = vrot.lane.b32.xlu2 %v1402_v53, %s2717_s25 }
0x1203   :  { %1586 = vrot.lane.b32.xlu2 %v1584_v55, %s2717_s25 }
0x120b   :  { %1914 = vrot.lane.b32.xlu2 %v1912_v57, %s2717_s25 }
0x120d   :  { %v2025_v60 = vpop.permute.xlu1 %2024 }
0x120e   :  { %v2027_v61 = vadd.f32 %v2025_v60, %v2017_v15 }
0x1210   :  { %2396 = vtanh.f32 %v2027_v61 }
0x1216   :  { %v2397_v63 = vpop.eup %2396 }
0x1217   :  { %2046 = vrot.lane.b32.xlu0 %v2397_v63, %s2721_s9 }
0x121f   :  { %1234 = vrot.lane.b32.xlu0 %v1232_v3, %s2717_s25 }
0x1227   :  { %1416 = vrot.lane.b32.xlu0 %v1414_v5, %s2717_s25 }
0x122f   :  { %1744 = vrot.lane.b32.xlu0 %v1742_v7, %s2717_s25 }
0x1237   :  { %1926 = vrot.lane.b32.xlu0 %v1924_v35, %s2717_s25 }
0x123d   :  { %v2041_v10 = vpop.permute.xlu2 %2040 }
0x123e   :  { %v2043_v11 = vadd.f32 %v2041_v10, %v2033_v37 }
0x123f   :  { %2057 = vrot.lane.b32.xlu0 %v2027_v61, %s2722_s10 }
0x1240   :  { %2398 = vtanh.f32 %v2043_v11 }
0x1245   :  { %v895_v12 = vpop.permute.xlu2 %894 }
0x1246   :  { %v2399_v14 = vpop.eup %2398  ;;  %898 = vst.msk [vmem:[#allocation25] sm:$0x1] %vm897_vm6, %v895_v12 }
0x1247   :  { %2052 = vrot.lane.b32.xlu1 %v2399_v14, %s2721_s9 }
0x124d   :  { %v1077_v17 = vpop.permute.xlu2 %1076 }
0x124e   :  { %1080 = vst.msk [vmem:[#allocation26 + $0x6] sm:$0x1] %vm897_vm6, %v1077_v17 }
0x124f   :  { %1064 = vrot.lane.b32.xlu1 %v1062_v20, %s2717_s25 }
0x1255   :  { %v1405_v24 = vpop.permute.xlu2 %1404 }
0x1256   :  { %1408 = vst.msk [vmem:[#allocation25 + $0x3] sm:$0x1] %vm897_vm6, %v1405_v24 }
0x1257   :  { %1246 = vrot.lane.b32.xlu1 %v1244_v22, %s2717_s25 }
0x125d   :  { %v1587_v26 = vpop.permute.xlu2 %1586 }
0x125e   :  { %1590 = vst.msk [vmem:[#allocation26 + $0x3] sm:$0x1] %vm897_vm6, %v1587_v26 }
0x125f   :  { %1574 = vrot.lane.b32.xlu1 %v1572_v27, %s2717_s25 }
0x1265   :  { %v1915_v29 = vpop.permute.xlu2 %1914 }
0x1266   :  { %1918 = vst.msk [vmem:[#allocation25 + $0x6] sm:$0x1] %vm897_vm6, %v1915_v29 }
0x1267   :  { %1756 = vrot.lane.b32.xlu1 %v1754_v13, %s2717_s25 }
0x1289   :  { %v2047_v30 = vpop.permute.xlu0 %2046 }
0x128a   :  { %v2049_v31 = vmul.f32 %v2047_v30, %v3078_v18 }
0x128c   :  { %v2076_v32 = vpack.c.bf16 %v2049_v31, %v2049_v31 }
0x128e   :  { %v2078_v33 = vrot.slane %v2076_v32, 3 }
0x1290   :  { %v2081_v23 = vsel %vm889_vm2, %v2076_v32, %v2078_v33 }
0x1291   :  { %2083 = vrot.lane.b32.xlu1 %v2081_v23, %s2717_s25  ;;  %v1235_v36 = vpop.permute.xlu0 %1234 }
0x1292   :  { %1238 = vst.msk [vmem:[#allocation25 + $0x2] sm:$0x1] %vm897_vm6, %v1235_v36 }
0x1299   :  { %2062 = vrot.lane.b32.xlu1 %v2049_v31, %s2717_s25  ;;  %v1417_v39 = vpop.permute.xlu0 %1416 }
0x129a   :  { %1420 = vst.msk [vmem:[#allocation26 + $0x4] sm:$0x1] %vm897_vm6, %v1417_v39 }
0x12a1   :  { %v1745_v41 = vpop.permute.xlu0 %1744 }
0x12a2   :  { %1748 = vst.msk [vmem:[#allocation25 + $0x5] sm:$0x1] %vm897_vm6, %v1745_v41 }
0x12a9   :  { %v1927_v42 = vpop.permute.xlu0 %1926 }
0x12aa   :  { %1930 = vst.msk [vmem:[#allocation26 + $0x1] sm:$0x1] %vm897_vm6, %v1927_v42 }
0x12b1   :  { %v2058_v18 = vpop.permute.xlu0 %2057 }
0x12b2   :  { %2060 = vst.msk [vmem:[#allocation5] sm:$0x3] %vm225_vm1, %v2058_v18 }
0x12b9   :  { %v2053_v43 = vpop.permute.xlu1 %2052 }
0x12ba   :  { %v2055_v44 = vmul.f32 %v2053_v43, %v3085_v40 }
0x12bc   :  { %v2088_v45 = vpack.c.bf16 %v2055_v44, %v2055_v44  ;;  %2072 = vrot.lane.b32.xlu0 %v2055_v44, %s2717_s25 }
0x12be   :  { %v2090_v46 = vrot.slane %v2088_v45, 3 }
0x12c0   :  { %v2093_v47 = vsel %vm889_vm2, %v2088_v45, %v2090_v46 }
0x12c1   :  { %2095 = vrot.lane.b32.xlu2 %v2093_v47, %s2717_s25  ;;  %v1065_v48 = vpop.permute.xlu1 %1064 }
0x12c2   :  { %1068 = vst.msk [vmem:[#allocation25 + $0x1] sm:$0x1] %vm897_vm6, %v1065_v48 }
0x12c9   :  { %2067 = vrot.lane.b32.xlu2 %v2043_v11, %s2722_s10  ;;  %v1247_v49 = vpop.permute.xlu1 %1246 }
0x12ca   :  { %1250 = vst.msk [vmem:[#allocation26 + $0x5] sm:$0x1] %vm897_vm6, %v1247_v49 }
0x12d1   :  { %v1575_v51 = vpop.permute.xlu1 %1574 }
0x12d2   :  { %1578 = vst.msk [vmem:[#allocation25 + $0x4] sm:$0x1] %vm897_vm6, %v1575_v51 }
0x12d9   :  { %v1757_v40 = vpop.permute.xlu1 %1756 }
0x12da   :  { %1760 = vst.msk [vmem:[#allocation26 + $0x2] sm:$0x1] %vm897_vm6, %v1757_v40 }
0x1303   :  { %v2084_v50 = vpop.permute.xlu1 %2083 }
0x1304   :  { %2087 = vst.msk [vmem:[#allocation25 + $0x7] sm:$0x1] %vm897_vm6, %v2084_v50 }
0x1305   :  { %2111 = dma.vmem_to_hbm [thread:$0]  %s2104_s16, 128, %s2106_s3, [#allocation10], %s2707_s29, %s2707_s29, %s2708_s30  }
0x130b   :  { %v2063_v53 = vpop.permute.xlu1 %2062 }
0x130c   :  { %2065 = vst.msk [vmem:[#allocation4] sm:$0x3] %vm225_vm1, %v2063_v53 }
0x131b   :  { %v2096_v58 = vpop.permute.xlu2 %2095 }
0x131c   :  { %2098 = vst.msk [vmem:[#allocation26] sm:$0x1] %vm897_vm6, %v2096_v58 }
0x131d   :  { %2127 = dma.vmem_to_hbm [thread:$0]  %s2120_s18, 128, %s2122_s20, [#allocation27], %s2707_s29, %s2707_s29, %s2708_s30  }
0x1323   :  { %v2068_v54 = vpop.permute.xlu2 %2067 }
0x1324   :  { %2070 = vst.msk [vmem:[#allocation7] sm:$0x3] %vm225_vm1, %v2068_v54 }
0x132e   :  { %v2073_v55 = vpop.permute.xlu0 %2072 }
0x132f   :  { %2075 = vst.msk [vmem:[#allocation6] sm:$0x3] %vm225_vm1, %v2073_v55 }
0x1330   :  { %2702 = dma.done.wait [#allocation10], 128  }
0x1331   :  { %2703 = vsyncadd [#allocation10], 4294967168 }
0x1332   :  { %2704 = dma.done.wait [#allocation27], 128  }
0x1333   :  { %2705 = vsyncadd [#allocation27], 4294967168 }
0x1334   :  { %2136 = vsyncpa [#allocation9], 1 }
0x1335   :  { %2137 = vsyncpa [#allocation12], 1 }
0x1336   :  { %2138 = vsyncpa [#allocation15], 1 }
0x1337   :  { %2139 = vsyncpa [#allocation18], 1 }
0x1338   :  { %2140 = vsyncpa [#allocation21], 1 }
0x1339   :  { %2141 = vsyncpa [#allocation24], 1 }
0x133a   :  { %2142 = vsyncpa [#allocation10], 1 }
0x133b   :  { %2143 = vsyncpa [#allocation27], 1 }

</bundles_post_ra>
